<compile_context>
chip_gen: v7x
topology: tpu7x:2x2x1
jax: 0.10.0
libtpu: 0.0.40
codegen_flags: <defaults>
</compile_context>

<pallas_src>
import functools

import jax
import jax.numpy as jnp
import numpy as np
from jax.experimental import pallas as pl
from jax.experimental.pallas import tpu as pltpu


# ----------------------------------------------------------------------------
# Pass 1: per-image conv (k*k shifted-slice matmuls) + BN sum/sumsq accumulation.
# ----------------------------------------------------------------------------
def conv_stats_kernel(x_ref, w_ref, conv_ref, stats_ref, *, k, wp, w_valid, rows):
    # stats_ref uses a constant index_map -> resident accumulator across the grid.
    @pl.when(pl.program_id(0) == 0)
    def _init():
        stats_ref[...] = jnp.zeros_like(stats_ref)

    c_out = conv_ref.shape[-1]
    acc = jnp.zeros((rows, c_out), jnp.float32)
    # In-VMEM im2col: each (dy, dx) tap is a static shifted slice of the
    # flattened padded image; contraction over C_in on the MXU, f32 accumulate.
    for dy in range(k):
        for dx in range(k):
            off = dy * wp + dx                               # static per tap
            patch = x_ref[0, pl.ds(off, rows), :]            # (rows, C_in) bf16
            acc = acc + jnp.dot(patch, w_ref[dy * k + dx],
                                preferred_element_type=jnp.float32)

    conv_ref[0] = acc

    # BN statistics must ignore the wrap-around columns (w >= W) that exist
    # because the flattened output keeps the padded row stride Wp.
    col = jax.lax.broadcasted_iota(jnp.int32, (rows, 1), 0) % wp
    masked = jnp.where(col < w_valid, acc, 0.0)
    stats_ref[0:1, :] += jnp.sum(masked, axis=0, keepdims=True)          # sum
    stats_ref[1:2, :] += jnp.sum(masked * acc, axis=0, keepdims=True)    # sumsq


# ----------------------------------------------------------------------------
# Pass 2: finalize BN from global sum/sumsq, add beta, ReLU.  f32 throughout.
# ----------------------------------------------------------------------------
def bn_relu_kernel(conv_ref, stats_ref, bias_ref, out_ref, *, count, eps):
    inv_n = 1.0 / count
    mean = stats_ref[0:1, :] * inv_n
    var = stats_ref[1:2, :] * inv_n - mean * mean            # single-pass variance
    scale = jax.lax.rsqrt(var + eps)                         # EUP slot
    shift = bias_ref[...] - mean * scale
    out_ref[0] = jnp.maximum(conv_ref[0] * scale + shift, 0.0)


# ----------------------------------------------------------------------------
# Parameters (PyTorch-style layout + init) and one-time prep/transform.
# ----------------------------------------------------------------------------
def init_params(key, kernel_size, input_channels, output_channels=None):
    if output_channels is None:
        output_channels = input_channels
    k = kernel_size
    bound = 1.0 / np.sqrt(input_channels * k * k)
    k1, k2 = jax.random.split(key)
    return {
        # nn.Conv2d weight layout (C_out, C_in, kh, kw), bias=False.
        "conv_w": jax.random.uniform(k1, (output_channels, input_channels, k, k),
                                     jnp.float32, -bound, bound),
        # BN beta (PyTorch inits to 0; small random so the add path is exercised).
        "bn_bias": jax.random.uniform(k2, (output_channels,), jnp.float32, -0.1, 0.1),
        "bn_eps": 1e-5,
    }


def prepare_params(params):
    """One-time weight transform (hoisted out of the per-call path).

    (C_out, C_in, kh, kw) -> (k*k, C_in, C_out) bf16 weight slabs (one per tap);
    BN beta -> (1, C_out) f32.  No lane padding of C_out or the contraction dim.
    """
    w = params["conv_w"]
    c_out, c_in, k, _ = w.shape
    w_slab = jnp.transpose(w, (2, 3, 1, 0)).reshape(k * k, c_in, c_out)
    w_slab = w_slab.astype(jnp.bfloat16)
    bias = params["bn_bias"].reshape(1, c_out).astype(jnp.float32)
    return {"w_slab": w_slab, "bias": bias, "k": int(k), "eps": float(params["bn_eps"])}


# ----------------------------------------------------------------------------
# Forward wrapper: minimal layout glue + two pipelined pallas_calls.
# ----------------------------------------------------------------------------
@functools.partial(jax.jit, static_argnames=("k", "eps"))
def conv_block_forward(x_nchw, w_slab, bias, *, k, eps):
    N, C_in, H, W = x_nchw.shape
    C_out = w_slab.shape[-1]
    p = k // 2
    Hp, Wp = H + 2 * p, W + 2 * p
    rows = H * Wp                                    # per-image output rows (padded stride)
    # A little extra bottom padding so every shifted slice [off, off + rows) is in bounds.
    need = rows + (k - 1) * Wp + (k - 1)
    extra = max(0, -(-(need - Hp * Wp) // Wp))
    in_rows = (Hp + extra) * Wp

    # Layout glue: NCHW -> NHWC (channels on lanes), halo zero-pad, bf16, flatten spatial.
    # TODO(synk): accept NHWC inputs and fold the halo pad into an in-kernel manual DMA
    # (with H-tiling + halo for images too large for one VMEM block) to drop these XLA passes.
    x = jnp.transpose(x_nchw, (0, 2, 3, 1)).astype(jnp.bfloat16)
    xp = jnp.pad(x, ((0, 0), (p, p + extra), (p, p), (0, 0)))
    xp = xp.reshape(N, in_rows, C_in)

    # ---- Pass 1: conv + global sum/sumsq (grid axis is a reduction -> "arbitrary").
    flops1 = 2 * N * rows * (k * k * C_in) * C_out + 6 * N * rows * C_out
    bytes1 = (2 * N * in_rows * C_in + 2 * k * k * C_in * C_out
              + 4 * N * rows * C_out + 4 * 2 * C_out)
    conv_flat, stats = pl.pallas_call(
        functools.partial(conv_stats_kernel, k=k, wp=Wp, w_valid=W, rows=rows),
        grid=(N,),
        in_specs=[
            pl.BlockSpec((1, in_rows, C_in), lambda n: (n, 0, 0)),
            pl.BlockSpec((k * k, C_in, C_out), lambda n: (0, 0, 0)),   # fetched once
        ],
        out_specs=[
            pl.BlockSpec((1, rows, C_out), lambda n: (n, 0, 0)),
            pl.BlockSpec((2, C_out), lambda n: (0, 0)),                # resident accumulator
        ],
        out_shape=[
            jax.ShapeDtypeStruct((N, rows, C_out), jnp.float32),
            jax.ShapeDtypeStruct((2, C_out), jnp.float32),
        ],
        compiler_params=pltpu.CompilerParams(
            dimension_semantics=("arbitrary",),
            vmem_limit_bytes=32 * 1024 * 1024),
        cost_estimate=pl.CostEstimate(flops=int(flops1), transcendentals=0,
                                      bytes_accessed=int(bytes1)),
    )(xp, w_slab)

    # ---- Pass 2: normalize + beta + ReLU, in place, independent per image ("parallel").
    # TODO(synk): for v7x dual-TC, pass 1 could additionally split a parallel axis over
    # output-channel blocks (per-channel stats are independent).
    flops2 = 4 * N * rows * C_out
    bytes2 = 8 * N * rows * C_out + 4 * (2 * C_out + C_out)
    out_flat = pl.pallas_call(
        functools.partial(bn_relu_kernel, count=float(N * H * W), eps=eps),
        grid=(N,),
        in_specs=[
            pl.BlockSpec((1, rows, C_out), lambda n: (n, 0, 0)),
            pl.BlockSpec((2, C_out), lambda n: (0, 0)),
            pl.BlockSpec((1, C_out), lambda n: (0, 0)),
        ],
        out_specs=pl.BlockSpec((1, rows, C_out), lambda n: (n, 0, 0)),
        out_shape=jax.ShapeDtypeStruct((N, rows, C_out), jnp.float32),
        input_output_aliases={0: 0},                                    # reuse conv buffer
        compiler_params=pltpu.CompilerParams(
            dimension_semantics=("parallel",),
            vmem_limit_bytes=32 * 1024 * 1024),
        cost_estimate=pl.CostEstimate(flops=int(flops2), transcendentals=int(C_out),
                                      bytes_accessed=int(bytes2)),
    )(conv_flat, stats, bias)

    # Drop the wrap-around columns, restore (N, C_out, H, W).
    out = out_flat.reshape(N, H, Wp, C_out)[:, :, :W, :]
    return jnp.transpose(out, (0, 3, 1, 2))


# ----------------------------------------------------------------------------
# Pure-JAX reference.  The kernel feeds the MXU bf16 operands (f32 accumulate),
# so the reference rounds the conv operands to bf16 the same way; all BN math f32.
# ----------------------------------------------------------------------------
def reference_forward(params, x_nchw):
    w = params["conv_w"].astype(jnp.bfloat16).astype(jnp.float32)
    x = x_nchw.astype(jnp.bfloat16).astype(jnp.float32)
    b = params["bn_bias"]
    eps = params["bn_eps"]
    k = w.shape[-1]
    p = k // 2
    conv = jax.lax.conv_general_dilated(
        x, w, window_strides=(1, 1), padding=[(p, p), (p, p)],
        dimension_numbers=("NCHW", "OIHW", "NCHW"),
        precision=jax.lax.Precision.HIGHEST)
    mean = jnp.mean(conv, axis=(0, 2, 3), keepdims=True)
    var = jnp.mean(jnp.square(conv - mean), axis=(0, 2, 3), keepdims=True)
    y = (conv - mean) * jax.lax.rsqrt(var + eps) + b[None, :, None, None]
    return jnp.maximum(y, 0.0)


if __name__ == "__main__":
    kernel_size = 3
    input_channels = 4
    output_channels = 8
    N, H, W = 2, 16, 16

    key = jax.random.PRNGKey(0)
    k_par, k_x = jax.random.split(key)
    params = init_params(k_par, kernel_size, input_channels, output_channels)
    x = jax.random.normal(k_x, (N, input_channels, H, W), jnp.float32)

    prepped = prepare_params(params)          # one-time weight transform
    out = conv_block_forward(x, prepped["w_slab"], prepped["bias"],
                             k=prepped["k"], eps=prepped["eps"])
    out = jax.block_until_ready(out)

    ref = jax.block_until_ready(reference_forward(params, x))

    assert out.shape == (N, output_channels, H, W)
    np.testing.assert_allclose(np.asarray(out), np.asarray(ref), atol=2e-3, rtol=2e-3)

    # TODO(synk): BatchNorm running-stat buffer updates (training-time side effect)
    # are intentionally not reproduced; only the forward output is.
    print("KERNEL_OK")
</pallas_src>

<mosaic_0001>
module attributes {stable_mosaic.version = 11 : i64} {
  func.func @bn_relu_kernel(%arg0: i32, %arg1: memref<1x288x8xf32, #tpu.memory_space<vmem>>, %arg2: memref<2x8xf32, #tpu.memory_space<vmem>>, %arg3: memref<1x8xf32, #tpu.memory_space<vmem>>, %arg4: memref<1x288x8xf32, #tpu.memory_space<vmem>>) attributes {dimension_semantics = [#tpu.dimension_semantics<parallel>], iteration_bounds = array<i64: 2>, scalar_prefetch = 0 : i64, scratch_operands = 0 : i64, tpu.core_type = #tpu.core_type<tc>, window_params = [{transform_indices = @transform_0, window_bounds = array<i64: 1, 288, 8>}, {pipeline_mode = #tpu.pipeline_mode<synchronous>, transform_indices = @transform_1, window_bounds = array<i64: 2, 8>}, {pipeline_mode = #tpu.pipeline_mode<synchronous>, transform_indices = @transform_2, window_bounds = array<i64: 1, 8>}, {transform_indices = @transform_3, window_bounds = array<i64: 1, 288, 8>}]} {
    %c0 = arith.constant 0 : index
    %c0_0 = arith.constant 0 : index
    %0 = vector.load %arg2[%c0, %c0_0] : memref<2x8xf32, #tpu.memory_space<vmem>>, vector<1x8xf32>
    %cst = arith.constant 0.001953125 : f32
    %1 = vector.broadcast %cst : f32 to vector<1x8xf32>
    %2 = arith.mulf %0, %1 : vector<1x8xf32>
    %c1 = arith.constant 1 : index
    %c0_1 = arith.constant 0 : index
    %3 = vector.load %arg2[%c1, %c0_1] : memref<2x8xf32, #tpu.memory_space<vmem>>, vector<1x8xf32>
    %cst_2 = arith.constant 0.001953125 : f32
    %4 = vector.broadcast %cst_2 : f32 to vector<1x8xf32>
    %5 = arith.mulf %3, %4 : vector<1x8xf32>
    %6 = arith.mulf %2, %2 : vector<1x8xf32>
    %7 = arith.subf %5, %6 : vector<1x8xf32>
    %cst_3 = arith.constant 9.99999974E-6 : f32
    %8 = vector.broadcast %cst_3 : f32 to vector<1x8xf32>
    %9 = arith.addf %7, %8 : vector<1x8xf32>
    %10 = math.rsqrt %9 : vector<1x8xf32>
    %c0_4 = arith.constant 0 : index
    %c0_5 = arith.constant 0 : index
    %11 = vector.load %arg3[%c0_4, %c0_5] : memref<1x8xf32, #tpu.memory_space<vmem>>, vector<1x8xf32>
    %12 = arith.mulf %2, %10 : vector<1x8xf32>
    %13 = arith.subf %11, %12 : vector<1x8xf32>
    %c0_6 = arith.constant 0 : index
    %c0_7 = arith.constant 0 : index
    %c0_8 = arith.constant 0 : index
    %14 = vector.load %arg1[%c0_6, %c0_7, %c0_8] : memref<1x288x8xf32, #tpu.memory_space<vmem>>, vector<1x288x8xf32>
    %15 = vector.shape_cast %14 : vector<1x288x8xf32> to vector<288x8xf32>
    %16 = vector.broadcast %10 : vector<1x8xf32> to vector<288x8xf32>
    %17 = arith.mulf %15, %16 : vector<288x8xf32>
    %18 = vector.broadcast %13 : vector<1x8xf32> to vector<288x8xf32>
    %19 = arith.addf %17, %18 : vector<288x8xf32>
    %cst_9 = arith.constant 0.000000e+00 : f32
    %20 = vector.broadcast %cst_9 : f32 to vector<288x8xf32>
    %21 = arith.maximumf %19, %20 : vector<288x8xf32>
    %c0_10 = arith.constant 0 : index
    %c0_11 = arith.constant 0 : index
    %c0_12 = arith.constant 0 : index
    %22 = vector.load %arg4[%c0_10, %c0_11, %c0_12] : memref<1x288x8xf32, #tpu.memory_space<vmem>>, vector<1x288x8xf32>
    %23 = vector.shape_cast %22 : vector<1x288x8xf32> to vector<288x8xf32>
    %24 = vector.shape_cast %21 : vector<288x8xf32> to vector<1x288x8xf32>
    tpu.vector_store %arg4[%c0_10, %c0_11, %c0_12], %24 {strides = array<i32>} : memref<1x288x8xf32, #tpu.memory_space<vmem>>, vector<1x288x8xf32>,
    return
  }
  func.func @transform_0(%arg0: i32) -> (i32, i32, i32) {
    %c0_i32 = arith.constant 0 : i32
    %c0_i32_0 = arith.constant 0 : i32
    %c0_i32_1 = arith.constant 0 : i32
    return %arg0, %c0_i32, %c0_i32_0 : i32, i32, i32
  }
  func.func @transform_1(%arg0: i32) -> (i32, i32) {
    %c0_i32 = arith.constant 0 : i32
    %c0_i32_0 = arith.constant 0 : i32
    %c0_i32_1 = arith.constant 0 : i32
    return %c0_i32, %c0_i32_0 : i32, i32
  }
  func.func @transform_2(%arg0: i32) -> (i32, i32) {
    %c0_i32 = arith.constant 0 : i32
    %c0_i32_0 = arith.constant 0 : i32
    %c0_i32_1 = arith.constant 0 : i32
    return %c0_i32, %c0_i32_0 : i32, i32
  }
  func.func @transform_3(%arg0: i32) -> (i32, i32, i32) {
    %c0_i32 = arith.constant 0 : i32
    %c0_i32_0 = arith.constant 0 : i32
    %c0_i32_1 = arith.constant 0 : i32
    return %arg0, %c0_i32, %c0_i32_0 : i32, i32, i32
  }
}

module attributes {stable_mosaic.version = 11 : i64} {
  func.func @conv_stats_kernel(%arg0: i32, %arg1: memref<1x342x4xbf16, #tpu.memory_space<vmem>>, %arg2: memref<9x4x8xbf16, #tpu.memory_space<vmem>>, %arg3: memref<1x288x8xf32, #tpu.memory_space<vmem>>, %arg4: memref<2x8xf32, #tpu.memory_space<vmem>>) attributes {dimension_semantics = [#tpu.dimension_semantics<arbitrary>], iteration_bounds = array<i64: 2>, scalar_prefetch = 0 : i64, scratch_operands = 0 : i64, tpu.core_type = #tpu.core_type<tc>, window_params = [{transform_indices = @transform_0, window_bounds = array<i64: 1, 342, 4>}, {pipeline_mode = #tpu.pipeline_mode<synchronous>, transform_indices = @transform_1, window_bounds = array<i64: 9, 4, 8>}, {transform_indices = @transform_2, window_bounds = array<i64: 1, 288, 8>}, {pipeline_mode = #tpu.pipeline_mode<synchronous>, transform_indices = @transform_3, window_bounds = array<i64: 2, 8>}]} {
    %c0_i32 = arith.constant 0 : i32
    %0 = arith.cmpi eq, %arg0, %c0_i32 : i32
    %1 = arith.extui %0 : i1 to i32
    %c0_i32_0 = arith.constant 0 : i32
    %2 = arith.cmpi ne, %1, %c0_i32_0 : i32
    scf.if %2 {
      %cst_67 = arith.constant 0.000000e+00 : f32
      %95 = vector.broadcast %cst_67 : f32 to vector<2x8xf32>
      %c0_68 = arith.constant 0 : index
      %c0_69 = arith.constant 0 : index
      %96 = vector.load %arg4[%c0_68, %c0_69] : memref<2x8xf32, #tpu.memory_space<vmem>>, vector<2x8xf32>
      tpu.vector_store %arg4[%c0_68, %c0_69], %95 {strides = array<i32>} : memref<2x8xf32, #tpu.memory_space<vmem>>, vector<2x8xf32>,
    } else {
    }
    %cst = arith.constant 0.000000e+00 : f32
    %3 = vector.broadcast %cst : f32 to vector<288x8xf32>
    %c0 = arith.constant 0 : index
    %c0_1 = arith.constant 0 : index
    %c0_2 = arith.constant 0 : index
    %4 = vector.load %arg1[%c0, %c0_1, %c0_2] : memref<1x342x4xbf16, #tpu.memory_space<vmem>>, vector<1x288x4xbf16>
    %5 = vector.shape_cast %4 : vector<1x288x4xbf16> to vector<288x4xbf16>
    %c0_3 = arith.constant 0 : index
    %c0_4 = arith.constant 0 : index
    %c0_5 = arith.constant 0 : index
    %6 = vector.load %arg2[%c0_3, %c0_4, %c0_5] : memref<9x4x8xbf16, #tpu.memory_space<vmem>>, vector<1x4x8xbf16>
    %7 = vector.shape_cast %6 : vector<1x4x8xbf16> to vector<4x8xbf16>
    %cst_6 = arith.constant dense<0.000000e+00> : vector<288x8xf32>
    %8 = tpu.matmul %5, %7, %cst_6 {dimension_numbers = #tpu.dot_dimension_numbers<[1], [0], [0], [1], [0, 0, 1, 1], [], []>} : vector<288x4xbf16>, vector<4x8xbf16>, vector<288x8xf32> -> vector<288x8xf32>
    %9 = arith.addf %3, %8 : vector<288x8xf32>
    %c0_7 = arith.constant 0 : index
    %c1 = arith.constant 1 : index
    %c0_8 = arith.constant 0 : index
    %10 = vector.load %arg1[%c0_7, %c1, %c0_8] : memref<1x342x4xbf16, #tpu.memory_space<vmem>>, vector<1x288x4xbf16>
    %11 = vector.shape_cast %10 : vector<1x288x4xbf16> to vector<288x4xbf16>
    %c1_9 = arith.constant 1 : index
    %c0_10 = arith.constant 0 : index
    %c0_11 = arith.constant 0 : index
    %12 = vector.load %arg2[%c1_9, %c0_10, %c0_11] : memref<9x4x8xbf16, #tpu.memory_space<vmem>>, vector<1x4x8xbf16>
    %13 = vector.shape_cast %12 : vector<1x4x8xbf16> to vector<4x8xbf16>
    %cst_12 = arith.constant dense<0.000000e+00> : vector<288x8xf32>
    %14 = tpu.matmul %11, %13, %cst_12 {dimension_numbers = #tpu.dot_dimension_numbers<[1], [0], [0], [1], [0, 0, 1, 1], [], []>} : vector<288x4xbf16>, vector<4x8xbf16>, vector<288x8xf32> -> vector<288x8xf32>
    %15 = arith.addf %9, %14 : vector<288x8xf32>
    %c0_13 = arith.constant 0 : index
    %c2 = arith.constant 2 : index
    %c0_14 = arith.constant 0 : index
    %16 = vector.load %arg1[%c0_13, %c2, %c0_14] : memref<1x342x4xbf16, #tpu.memory_space<vmem>>, vector<1x288x4xbf16>
    %17 = vector.shape_cast %16 : vector<1x288x4xbf16> to vector<288x4xbf16>
    %c2_15 = arith.constant 2 : index
    %c0_16 = arith.constant 0 : index
    %c0_17 = arith.constant 0 : index
    %18 = vector.load %arg2[%c2_15, %c0_16, %c0_17] : memref<9x4x8xbf16, #tpu.memory_space<vmem>>, vector<1x4x8xbf16>
    %19 = vector.shape_cast %18 : vector<1x4x8xbf16> to vector<4x8xbf16>
    %cst_18 = arith.constant dense<0.000000e+00> : vector<288x8xf32>
    %20 = tpu.matmul %17, %19, %cst_18 {dimension_numbers = #tpu.dot_dimension_numbers<[1], [0], [0], [1], [0, 0, 1, 1], [], []>} : vector<288x4xbf16>, vector<4x8xbf16>, vector<288x8xf32> -> vector<288x8xf32>
    %21 = arith.addf %15, %20 : vector<288x8xf32>
    %c0_19 = arith.constant 0 : index
    %c18 = arith.constant 18 : index
    %c0_20 = arith.constant 0 : index
    %22 = vector.load %arg1[%c0_19, %c18, %c0_20] : memref<1x342x4xbf16, #tpu.memory_space<vmem>>, vector<1x288x4xbf16>
    %23 = vector.shape_cast %22 : vector<1x288x4xbf16> to vector<288x4xbf16>
    %c3 = arith.constant 3 : index
    %c0_21 = arith.constant 0 : index
    %c0_22 = arith.constant 0 : index
    %24 = vector.load %arg2[%c3, %c0_21, %c0_22] : memref<9x4x8xbf16, #tpu.memory_space<vmem>>, vector<1x4x8xbf16>
    %25 = vector.shape_cast %24 : vector<1x4x8xbf16> to vector<4x8xbf16>
    %cst_23 = arith.constant dense<0.000000e+00> : vector<288x8xf32>
    %26 = tpu.matmul %23, %25, %cst_23 {dimension_numbers = #tpu.dot_dimension_numbers<[1], [0], [0], [1], [0, 0, 1, 1], [], []>} : vector<288x4xbf16>, vector<4x8xbf16>, vector<288x8xf32> -> vector<288x8xf32>
    %27 = arith.addf %21, %26 : vector<288x8xf32>
    %c0_24 = arith.constant 0 : index
    %c19 = arith.constant 19 : index
    %c0_25 = arith.constant 0 : index
    %28 = vector.load %arg1[%c0_24, %c19, %c0_25] : memref<1x342x4xbf16, #tpu.memory_space<vmem>>, vector<1x288x4xbf16>
    %29 = vector.shape_cast %28 : vector<1x288x4xbf16> to vector<288x4xbf16>
    %c4 = arith.constant 4 : index
    %c0_26 = arith.constant 0 : index
    %c0_27 = arith.constant 0 : index
    %30 = vector.load %arg2[%c4, %c0_26, %c0_27] : memref<9x4x8xbf16, #tpu.memory_space<vmem>>, vector<1x4x8xbf16>
    %31 = vector.shape_cast %30 : vector<1x4x8xbf16> to vector<4x8xbf16>
    %cst_28 = arith.constant dense<0.000000e+00> : vector<288x8xf32>
    %32 = tpu.matmul %29, %31, %cst_28 {dimension_numbers = #tpu.dot_dimension_numbers<[1], [0], [0], [1], [0, 0, 1, 1], [], []>} : vector<288x4xbf16>, vector<4x8xbf16>, vector<288x8xf32> -> vector<288x8xf32>
    %33 = arith.addf %27, %32 : vector<288x8xf32>
    %c0_29 = arith.constant 0 : index
    %c20 = arith.constant 20 : index
    %c0_30 = arith.constant 0 : index
    %34 = vector.load %arg1[%c0_29, %c20, %c0_30] : memref<1x342x4xbf16, #tpu.memory_space<vmem>>, vector<1x288x4xbf16>
    %35 = vector.shape_cast %34 : vector<1x288x4xbf16> to vector<288x4xbf16>
    %c5 = arith.constant 5 : index
    %c0_31 = arith.constant 0 : index
    %c0_32 = arith.constant 0 : index
    %36 = vector.load %arg2[%c5, %c0_31, %c0_32] : memref<9x4x8xbf16, #tpu.memory_space<vmem>>, vector<1x4x8xbf16>
    %37 = vector.shape_cast %36 : vector<1x4x8xbf16> to vector<4x8xbf16>
    %cst_33 = arith.constant dense<0.000000e+00> : vector<288x8xf32>
    %38 = tpu.matmul %35, %37, %cst_33 {dimension_numbers = #tpu.dot_dimension_numbers<[1], [0], [0], [1], [0, 0, 1, 1], [], []>} : vector<288x4xbf16>, vector<4x8xbf16>, vector<288x8xf32> -> vector<288x8xf32>
    %39 = arith.addf %33, %38 : vector<288x8xf32>
    %c0_34 = arith.constant 0 : index
    %c36 = arith.constant 36 : index
    %c0_35 = arith.constant 0 : index
    %40 = vector.load %arg1[%c0_34, %c36, %c0_35] : memref<1x342x4xbf16, #tpu.memory_space<vmem>>, vector<1x288x4xbf16>
    %41 = vector.shape_cast %40 : vector<1x288x4xbf16> to vector<288x4xbf16>
    %c6 = arith.constant 6 : index
    %c0_36 = arith.constant 0 : index
    %c0_37 = arith.constant 0 : index
    %42 = vector.load %arg2[%c6, %c0_36, %c0_37] : memref<9x4x8xbf16, #tpu.memory_space<vmem>>, vector<1x4x8xbf16>
    %43 = vector.shape_cast %42 : vector<1x4x8xbf16> to vector<4x8xbf16>
    %cst_38 = arith.constant dense<0.000000e+00> : vector<288x8xf32>
    %44 = tpu.matmul %41, %43, %cst_38 {dimension_numbers = #tpu.dot_dimension_numbers<[1], [0], [0], [1], [0, 0, 1, 1], [], []>} : vector<288x4xbf16>, vector<4x8xbf16>, vector<288x8xf32> -> vector<288x8xf32>
    %45 = arith.addf %39, %44 : vector<288x8xf32>
    %c0_39 = arith.constant 0 : index
    %c37 = arith.constant 37 : index
    %c0_40 = arith.constant 0 : index
    %46 = vector.load %arg1[%c0_39, %c37, %c0_40] : memref<1x342x4xbf16, #tpu.memory_space<vmem>>, vector<1x288x4xbf16>
    %47 = vector.shape_cast %46 : vector<1x288x4xbf16> to vector<288x4xbf16>
    %c7 = arith.constant 7 : index
    %c0_41 = arith.constant 0 : index
    %c0_42 = arith.constant 0 : index
    %48 = vector.load %arg2[%c7, %c0_41, %c0_42] : memref<9x4x8xbf16, #tpu.memory_space<vmem>>, vector<1x4x8xbf16>
    %49 = vector.shape_cast %48 : vector<1x4x8xbf16> to vector<4x8xbf16>
    %cst_43 = arith.constant dense<0.000000e+00> : vector<288x8xf32>
    %50 = tpu.matmul %47, %49, %cst_43 {dimension_numbers = #tpu.dot_dimension_numbers<[1], [0], [0], [1], [0, 0, 1, 1], [], []>} : vector<288x4xbf16>, vector<4x8xbf16>, vector<288x8xf32> -> vector<288x8xf32>
    %51 = arith.addf %45, %50 : vector<288x8xf32>
    %c0_44 = arith.constant 0 : index
    %c38 = arith.constant 38 : index
    %c0_45 = arith.constant 0 : index
    %52 = vector.load %arg1[%c0_44, %c38, %c0_45] : memref<1x342x4xbf16, #tpu.memory_space<vmem>>, vector<1x288x4xbf16>
    %53 = vector.shape_cast %52 : vector<1x288x4xbf16> to vector<288x4xbf16>
    %c8 = arith.constant 8 : index
    %c0_46 = arith.constant 0 : index
    %c0_47 = arith.constant 0 : index
    %54 = vector.load %arg2[%c8, %c0_46, %c0_47] : memref<9x4x8xbf16, #tpu.memory_space<vmem>>, vector<1x4x8xbf16>
    %55 = vector.shape_cast %54 : vector<1x4x8xbf16> to vector<4x8xbf16>
    %cst_48 = arith.constant dense<0.000000e+00> : vector<288x8xf32>
    %56 = tpu.matmul %53, %55, %cst_48 {dimension_numbers = #tpu.dot_dimension_numbers<[1], [0], [0], [1], [0, 0, 1, 1], [], []>} : vector<288x4xbf16>, vector<4x8xbf16>, vector<288x8xf32> -> vector<288x8xf32>
    %57 = arith.addf %51, %56 : vector<288x8xf32>
    %c0_49 = arith.constant 0 : index
    %c0_50 = arith.constant 0 : index
    %c0_51 = arith.constant 0 : index
    %58 = vector.load %arg3[%c0_49, %c0_50, %c0_51] : memref<1x288x8xf32, #tpu.memory_space<vmem>>, vector<1x288x8xf32>
    %59 = vector.shape_cast %58 : vector<1x288x8xf32> to vector<288x8xf32>
    %60 = vector.shape_cast %57 : vector<288x8xf32> to vector<1x288x8xf32>
    tpu.vector_store %arg3[%c0_49, %c0_50, %c0_51], %60 {strides = array<i32>} : memref<1x288x8xf32, #tpu.memory_space<vmem>>, vector<1x288x8xf32>,
    %61 = tpu.iota {dimensions = array<i32: 0>} : vector<288x1xi32>
    %c18_i32 = arith.constant 18 : i32
    %c0_i32_52 = arith.constant 0 : i32
    %62 = arith.cmpi eq, %c18_i32, %c0_i32_52 : i32
    %c1_i32 = arith.constant 1 : i32
    %63 = arith.select %62, %c1_i32, %c18_i32 : i32
    %64 = vector.broadcast %63 : i32 to vector<288x1xi32>
    %65 = arith.remsi %61, %64 : vector<288x1xi32>
    %c0_i32_53 = arith.constant 0 : i32
    %66 = vector.broadcast %c0_i32_53 : i32 to vector<288x1xi32>
    %67 = arith.cmpi ne, %65, %66 : vector<288x1xi32>
    %c0_i32_54 = arith.constant 0 : i32
    %68 = vector.broadcast %c0_i32_54 : i32 to vector<288x1xi32>
    %69 = arith.cmpi slt, %65, %68 : vector<288x1xi32>
    %c0_i32_55 = arith.constant 0 : i32
    %70 = arith.cmpi slt, %63, %c0_i32_55 : i32
    %71 = vector.broadcast %70 : i1 to vector<288x1xi1>
    %72 = vector.broadcast %71 : vector<288x1xi1> to vector<288x1xi1>
    %73 = arith.xori %69, %72 : vector<288x1xi1>
    %74 = arith.andi %73, %67 : vector<288x1xi1>
    %75 = vector.broadcast %63 : i32 to vector<288x1xi32>
    %76 = arith.addi %65, %75 : vector<288x1xi32>
    %77 = arith.select %74, %76, %65 : vector<288x1xi1>, vector<288x1xi32>
    %c16_i32 = arith.constant 16 : i32
    %78 = vector.broadcast %c16_i32 : i32 to vector<288x1xi32>
    %79 = arith.cmpi slt, %77, %78 : vector<288x1xi32>
    %cst_56 = arith.constant 0.000000e+00 : f32
    %80 = vector.shape_cast %79 : vector<288x1xi1> to vector<288x1xi1>
    %81 = vector.broadcast %80 : vector<288x1xi1> to vector<288x8xi1>
    %82 = vector.broadcast %cst_56 : f32 to vector<288x8xf32>
    %83 = arith.select %81, %57, %82 : vector<288x8xi1>, vector<288x8xf32>
    %c0_57 = arith.constant 0 : index
    %c0_58 = arith.constant 0 : index
    %84 = vector.load %arg4[%c0_57, %c0_58] : memref<2x8xf32, #tpu.memory_space<vmem>>, vector<1x8xf32>
    %cst_59 = arith.constant dense<0.000000e+00> : vector<8xf32>
    %85 = vector.multi_reduction <add>, %83, %cst_59 [0] : vector<288x8xf32> to vector<8xf32>
    %86 = vector.shape_cast %85 : vector<8xf32> to vector<1x8xf32>
    %87 = arith.addf %84, %86 : vector<1x8xf32>
    %c0_60 = arith.constant 0 : index
    %c0_61 = arith.constant 0 : index
    %88 = vector.load %arg4[%c0_60, %c0_61] : memref<2x8xf32, #tpu.memory_space<vmem>>, vector<1x8xf32>
    tpu.vector_store %arg4[%c0_60, %c0_61], %87 {strides = array<i32>} : memref<2x8xf32, #tpu.memory_space<vmem>>, vector<1x8xf32>,
    %c1_62 = arith.constant 1 : index
    %c0_63 = arith.constant 0 : index
    %89 = vector.load %arg4[%c1_62, %c0_63] : memref<2x8xf32, #tpu.memory_space<vmem>>, vector<1x8xf32>
    %90 = arith.mulf %83, %57 : vector<288x8xf32>
    %cst_64 = arith.constant dense<0.000000e+00> : vector<8xf32>
    %91 = vector.multi_reduction <add>, %90, %cst_64 [0] : vector<288x8xf32> to vector<8xf32>
    %92 = vector.shape_cast %91 : vector<8xf32> to vector<1x8xf32>
    %93 = arith.addf %89, %92 : vector<1x8xf32>
    %c1_65 = arith.constant 1 : index
    %c0_66 = arith.constant 0 : index
    %94 = vector.load %arg4[%c1_65, %c0_66] : memref<2x8xf32, #tpu.memory_space<vmem>>, vector<1x8xf32>
    tpu.vector_store %arg4[%c1_65, %c0_66], %93 {strides = array<i32>} : memref<2x8xf32, #tpu.memory_space<vmem>>, vector<1x8xf32>,
    return
  }
  func.func @transform_0(%arg0: i32) -> (i32, i32, i32) {
    %c0_i32 = arith.constant 0 : i32
    %c0_i32_0 = arith.constant 0 : i32
    %c0_i32_1 = arith.constant 0 : i32
    return %arg0, %c0_i32, %c0_i32_0 : i32, i32, i32
  }
  func.func @transform_1(%arg0: i32) -> (i32, i32, i32) {
    %c0_i32 = arith.constant 0 : i32
    %c0_i32_0 = arith.constant 0 : i32
    %c0_i32_1 = arith.constant 0 : i32
    %c0_i32_2 = arith.constant 0 : i32
    return %c0_i32, %c0_i32_0, %c0_i32_1 : i32, i32, i32
  }
  func.func @transform_2(%arg0: i32) -> (i32, i32, i32) {
    %c0_i32 = arith.constant 0 : i32
    %c0_i32_0 = arith.constant 0 : i32
    %c0_i32_1 = arith.constant 0 : i32
    return %arg0, %c0_i32, %c0_i32_0 : i32, i32, i32
  }
  func.func @transform_3(%arg0: i32) -> (i32, i32) {
    %c0_i32 = arith.constant 0 : i32
    %c0_i32_0 = arith.constant 0 : i32
    %c0_i32_1 = arith.constant 0 : i32
    return %c0_i32, %c0_i32_0 : i32, i32
  }
}

</mosaic_0001>

<bundles_post_ra>
// kernel: conv_block_forward.3
= control target key start
LH: loop header
LB: loop body
LE: loop exit
PB: predicated region body
PF: predicated region fallthrough
CT: control target
= control target key end

     0   :  { %s476_s12 = smov 0   ;;  %s745_s0 = inlined_call_operand.vmem [shape: f32[2,288,8], index: 0, kind: input, shape index: {}, may-alias: {0,3}]   ;;  %s746_s1 = inlined_call_operand.vmem [shape: f32[2,8], index: 1, kind: input, shape index: {}]   ;;  %s747_s2 = inlined_call_operand.vmem [shape: f32[1,8], index: 2, kind: input, shape index: {}]   ;;  %s748_s3 = inlined_call_operand.vmem [shape: f32[2,288,8], index: 3, kind: output, shape index: {}, may-alias: {0,3}]  }
   0x1 LB: > { %s428_s13 = sadd.s32 4294967295, %s454_s12   ;;  %p432_p0 = scmp.ge.s32.totalorder %s454_s12, 1  ;;  %s454_s12 = sphi %s476_s12, %s13_s12  }
   0x2   : > { %p137_p1 = scmp.lt.s32.totalorder %s454_s12, 3 }
   0x4   : > { %p138_p2 = pnand %p432_p0, %p137_p1 }
   0x5   : > { %v171_v0 = vld [vmem:[%s746_s1] sm:$0x1] (!%p138_p2)  ;;  %v173_v1 = vld [vmem:[%s746_s1 + $0x1] sm:$0x1] (!%p138_p2)  ;;  %p161_p3 = scmp.lt.s32.totalorder (!%p138_p2), %s428_s13, 1  ;;  %v218_v7 = vlaneseq (!%p138_p2)  ;;  %vm336_vm0 = vcmask (!%p138_p2), 64512  }
   0x6   : > { %141 = sbr.rel (%p138_p2) target bundleno = 60 (0x3c), region = 32  ;;  %v172_v2 = vmul.f32 (!%p138_p2), 0.001953125, %v171_v0  ;;  %v174_v3 = vmul.f32 (!%p138_p2), 0.001953125, %v173_v1  ;;  %v179_v10 = vld [vmem:[%s747_s2] sm:$0x1] (!%p138_p2) }
   0x7   : > { %v219_v8 = vshrl.u32 (!%p138_p2), %v218_v7, 7 }
   0x8   : > { %v175_v4 = vmul.f32 (!%p138_p2), %v172_v2, %v172_v2 }
   0x9   : > { %v220_v9 = vsub.s32 (!%p138_p2), 0, %v219_v8 }
   0xa   : > { %v176_v5 = vsub.f32 (!%p138_p2), %v174_v3, %v175_v4 }
   0xc   : > { %v177_v6 = vadd.f32 (!%p138_p2), 1e-05, %v176_v5 }
   0xd   : > { %s750_s13 = smov (!%p161_p3, %s428_s13), 1 }
   0xe   : > { %446 = vrsqrt.f32 %v177_v6  ;;  %s437_s18 = smul.u32 288, %s750_s13 }
  0x10   : > { %s498_s21 = scalar_lea.vmem %s745_s0, %s437_s18  ;;  %s546_s26 = scalar_lea.vmem %s748_s3, %s437_s18 }
  0x11   : > { %v182_v11 = vld [vmem:[%s498_s21] sm:$0xff]  ;;  %v183_v12 = vld [vmem:[%s498_s21 + $0x8] sm:$0xff]  ;;  %v184_v14 = vld [vmem:[%s498_s21 + $0x10] sm:$0xff] }
  0x12   : > { %v185_v15 = vld [vmem:[%s498_s21 + $0x18] sm:$0xff]  ;;  %v186_v16 = vld [vmem:[%s498_s21 + $0x20] sm:$0xff]  ;;  %v187_v18 = vld [vmem:[%s498_s21 + $0x28] sm:$0xff] }
  0x13   : > { %v188_v19 = vld [vmem:[%s498_s21 + $0x30] sm:$0xff]  ;;  %v189_v20 = vld [vmem:[%s498_s21 + $0x38] sm:$0xff]  ;;  %v190_v22 = vld [vmem:[%s498_s21 + $0x40] sm:$0xff] }
  0x14   : > { %v191_v23 = vld [vmem:[%s498_s21 + $0x48] sm:$0xff]  ;;  %v192_v24 = vld [vmem:[%s498_s21 + $0x50] sm:$0xff]  ;;  %v193_v26 = vld [vmem:[%s498_s21 + $0x58] sm:$0xff] }
  0x15   : > { %v194_v27 = vld [vmem:[%s498_s21 + $0x60] sm:$0xff]  ;;  %v195_v28 = vld [vmem:[%s498_s21 + $0x68] sm:$0xff]  ;;  %v196_v44 = vld [vmem:[%s498_s21 + $0x70] sm:$0xff] }
  0x16   : > { %v197_v45 = vld [vmem:[%s498_s21 + $0x78] sm:$0xff]  ;;  %v198_v50 = vld [vmem:[%s498_s21 + $0x80] sm:$0xff]  ;;  %v199_v51 = vld [vmem:[%s498_s21 + $0x88] sm:$0xff] }
  0x17   : > { %v200_v52 = vld [vmem:[%s498_s21 + $0x90] sm:$0xff]  ;;  %v201_v53 = vld [vmem:[%s498_s21 + $0x98] sm:$0xff]  ;;  %v553_v54 = vld [vmem:[%s498_s21 + $0xa0] sm:$0xff] }
  0x18   : > { %v447_v13 = vpop.eup %446  ;;  %v556_v55 = vld [vmem:[%s498_s21 + $0xa8] sm:$0xff]  ;;  %v559_v56 = vld [vmem:[%s498_s21 + $0xb0] sm:$0xff]  ;;  %v562_v57 = vld [vmem:[%s498_s21 + $0xb8] sm:$0xff] }
  0x19   : > { %v180_v17 = vmul.f32 %v447_v13, %v172_v2  ;;  %v511_v21 = vrot.slane %v447_v13, %v220_v9  ;;  %v565_v58 = vld [vmem:[%s498_s21 + $0xc0] sm:$0xff]  ;;  %v568_v59 = vld [vmem:[%s498_s21 + $0xc8] sm:$0xff]  ;;  %v571_v60 = vld [vmem:[%s498_s21 + $0xd0] sm:$0xff] }
  0x1a   : > { %v574_v61 = vld [vmem:[%s498_s21 + $0xd8] sm:$0xff]  ;;  %v577_v62 = vld [vmem:[%s498_s21 + $0xe0] sm:$0xff]  ;;  %v580_v63 = vld [vmem:[%s498_s21 + $0xe8] sm:$0xff] }
  0x1b   : > { %v181_v25 = vsub.f32 %v179_v10, %v180_v17  ;;  %v222_v29 = vmul.f32 %v511_v21, %v182_v11  ;;  %v223_v30 = vmul.f32 %v511_v21, %v183_v12  ;;  %v224_v31 = vmul.f32 %v511_v21, %v184_v14  ;;  %v583_v0 = vld [vmem:[%s498_s21 + $0xf0] sm:$0xff]  ;;  %v586_v1 = vld [vmem:[%s498_s21 + $0xf8] sm:$0xff]  ;;  %v593_v6 = vld [vmem:[%s498_s21 + $0x100] sm:$0xff] }
  0x1c   : > { %v225_v32 = vmul.f32 %v511_v21, %v185_v15  ;;  %v226_v33 = vmul.f32 %v511_v21, %v186_v16  ;;  %v227_v34 = vmul.f32 %v511_v21, %v187_v18  ;;  %v228_v35 = vmul.f32 %v511_v21, %v188_v19  ;;  %v596_v7 = vld [vmem:[%s498_s21 + $0x108] sm:$0xff]  ;;  %v599_v12 = vld [vmem:[%s498_s21 + $0x110] sm:$0xff]  ;;  %v602_v13 = vld [vmem:[%s498_s21 + $0x118] sm:$0xff] }
  0x1d   : > { %v526_v36 = vrot.slane %v181_v25, %v220_v9  ;;  %v229_v37 = vmul.f32 %v511_v21, %v189_v20  ;;  %v230_v38 = vmul.f32 %v511_v21, %v190_v22  ;;  %v231_v39 = vmul.f32 %v511_v21, %v191_v23 }
  0x1e   : > { %v232_v40 = vmul.f32 %v511_v21, %v192_v24  ;;  %v233_v41 = vmul.f32 %v511_v21, %v193_v26  ;;  %v234_v42 = vmul.f32 %v511_v21, %v194_v27  ;;  %v235_v43 = vmul.f32 %v511_v21, %v195_v28 }
  0x1f   : > { %v264_v46 = vadd.f32 %v526_v36, %v222_v29  ;;  %v265_v47 = vadd.f32 %v526_v36, %v223_v30  ;;  %v266_v48 = vadd.f32 %v526_v36, %v224_v31  ;;  %v267_v49 = vadd.f32 %v526_v36, %v225_v32 }
  0x20   : > { %v268_v2 = vadd.f32 %v526_v36, %v226_v33  ;;  %v269_v3 = vadd.f32 %v526_v36, %v227_v34  ;;  %v270_v4 = vadd.f32 %v526_v36, %v228_v35  ;;  %v271_v5 = vadd.f32 %v526_v36, %v229_v37 }
  0x21   : > { %v300_v8 = vmax.f32 %v264_v46, 0.0  ;;  %v301_v9 = vmax.f32 %v265_v47, 0.0  ;;  %v302_v10 = vmax.f32 %v266_v48, 0.0  ;;  %v303_v11 = vmax.f32 %v267_v49, 0.0 }
  0x22   : > { %v304_v14 = vmax.f32 %v268_v2, 0.0  ;;  %v305_v15 = vmax.f32 %v269_v3, 0.0  ;;  %v306_v16 = vmax.f32 %v270_v4, 0.0  ;;  %v307_v17 = vmax.f32 %v271_v5, 0.0 }
  0x23   : > { %337 = vst.msk [vmem:[%s546_s26] sm:$0xff] %vm336_vm0, %v300_v8  ;;  %338 = vst.msk [vmem:[%s546_s26 + $0x8] sm:$0xff] %vm336_vm0, %v301_v9  ;;  %v272_v18 = vadd.f32 %v526_v36, %v230_v38  ;;  %v273_v19 = vadd.f32 %v526_v36, %v231_v39  ;;  %v274_v20 = vadd.f32 %v526_v36, %v232_v40 }
  0x24   : > { %339 = vst.msk [vmem:[%s546_s26 + $0x10] sm:$0xff] %vm336_vm0, %v302_v10  ;;  %340 = vst.msk [vmem:[%s546_s26 + $0x18] sm:$0xff] %vm336_vm0, %v303_v11  ;;  %v275_v22 = vadd.f32 %v526_v36, %v233_v41  ;;  %v276_v23 = vadd.f32 %v526_v36, %v234_v42  ;;  %v277_v24 = vadd.f32 %v526_v36, %v235_v43 }
  0x25   : > { %341 = vst.msk [vmem:[%s546_s26 + $0x20] sm:$0xff] %vm336_vm0, %v304_v14  ;;  %342 = vst.msk [vmem:[%s546_s26 + $0x28] sm:$0xff] %vm336_vm0, %v305_v15  ;;  %v236_v25 = vmul.f32 %v511_v21, %v196_v44  ;;  %v237_v26 = vmul.f32 %v511_v21, %v197_v45  ;;  %v308_v27 = vmax.f32 %v272_v18, 0.0  ;;  %v309_v28 = vmax.f32 %v273_v19, 0.0 }
  0x26   : > { %343 = vst.msk [vmem:[%s546_s26 + $0x30] sm:$0xff] %vm336_vm0, %v306_v16  ;;  %344 = vst.msk [vmem:[%s546_s26 + $0x38] sm:$0xff] %vm336_vm0, %v307_v17  ;;  %v310_v29 = vmax.f32 %v274_v20, 0.0  ;;  %v311_v30 = vmax.f32 %v275_v22, 0.0  ;;  %v312_v31 = vmax.f32 %v276_v23, 0.0  ;;  %v313_v32 = vmax.f32 %v277_v24, 0.0 }
  0x27   : > { %v278_v33 = vadd.f32 %v526_v36, %v236_v25  ;;  %v279_v34 = vadd.f32 %v526_v36, %v237_v26  ;;  %345 = vst.msk [vmem:[%s546_s26 + $0x40] sm:$0xff] %vm336_vm0, %v308_v27  ;;  %346 = vst.msk [vmem:[%s546_s26 + $0x48] sm:$0xff] %vm336_vm0, %v309_v28  ;;  %v238_v35 = vmul.f32 %v511_v21, %v198_v50 }
  0x28   : > { %347 = vst.msk [vmem:[%s546_s26 + $0x50] sm:$0xff] %vm336_vm0, %v310_v29  ;;  %348 = vst.msk [vmem:[%s546_s26 + $0x58] sm:$0xff] %vm336_vm0, %v311_v30  ;;  %v239_v37 = vmul.f32 %v511_v21, %v199_v51  ;;  %v240_v38 = vmul.f32 %v511_v21, %v200_v52  ;;  %v241_v39 = vmul.f32 %v511_v21, %v201_v53 }
  0x29   : > { %349 = vst.msk [vmem:[%s546_s26 + $0x60] sm:$0xff] %vm336_vm0, %v312_v31  ;;  %350 = vst.msk [vmem:[%s546_s26 + $0x68] sm:$0xff] %vm336_vm0, %v313_v32  ;;  %v314_v40 = vmax.f32 %v278_v33, 0.0  ;;  %v315_v41 = vmax.f32 %v279_v34, 0.0  ;;  %v242_v42 = vmul.f32 %v511_v21, %v553_v54  ;;  %v243_v43 = vmul.f32 %v511_v21, %v556_v55 }
  0x2a   : > { %v280_v44 = vadd.f32 %v526_v36, %v238_v35  ;;  %v281_v45 = vadd.f32 %v526_v36, %v239_v37  ;;  %v282_v46 = vadd.f32 %v526_v36, %v240_v38  ;;  %v283_v47 = vadd.f32 %v526_v36, %v241_v39 }
  0x2b   : > { %351 = vst.msk [vmem:[%s546_s26 + $0x70] sm:$0xff] %vm336_vm0, %v314_v40  ;;  %352 = vst.msk [vmem:[%s546_s26 + $0x78] sm:$0xff] %vm336_vm0, %v315_v41  ;;  %v284_v48 = vadd.f32 %v526_v36, %v242_v42  ;;  %v285_v49 = vadd.f32 %v526_v36, %v243_v43  ;;  %v244_v50 = vmul.f32 %v511_v21, %v559_v56 }
  0x2c   : > { %v245_v51 = vmul.f32 %v511_v21, %v562_v57  ;;  %v316_v52 = vmax.f32 %v280_v44, 0.0  ;;  %v317_v53 = vmax.f32 %v281_v45, 0.0  ;;  %v318_v54 = vmax.f32 %v282_v46, 0.0 }
  0x2d   : > { %v319_v55 = vmax.f32 %v283_v47, 0.0  ;;  %v320_v2 = vmax.f32 %v284_v48, 0.0  ;;  %v321_v3 = vmax.f32 %v285_v49, 0.0  ;;  %v286_v4 = vadd.f32 %v526_v36, %v244_v50 }
  0x2e   : > { %v287_v5 = vadd.f32 %v526_v36, %v245_v51  ;;  %353 = vst.msk [vmem:[%s546_s26 + $0x80] sm:$0xff] %vm336_vm0, %v316_v52  ;;  %354 = vst.msk [vmem:[%s546_s26 + $0x88] sm:$0xff] %vm336_vm0, %v317_v53  ;;  %v246_v56 = vmul.f32 %v511_v21, %v565_v58  ;;  %v247_v57 = vmul.f32 %v511_v21, %v568_v59 }
  0x2f   : > { %355 = vst.msk [vmem:[%s546_s26 + $0x90] sm:$0xff] %vm336_vm0, %v318_v54  ;;  %356 = vst.msk [vmem:[%s546_s26 + $0x98] sm:$0xff] %vm336_vm0, %v319_v55  ;;  %v248_v8 = vmul.f32 %v511_v21, %v571_v60  ;;  %v249_v9 = vmul.f32 %v511_v21, %v574_v61  ;;  %v322_v10 = vmax.f32 %v286_v4, 0.0  ;;  %v250_v14 = vmul.f32 %v511_v21, %v577_v62 }
  0x30   : > { %357 = vst.msk [vmem:[%s546_s26 + $0xa0] sm:$0xff] %vm336_vm0, %v320_v2  ;;  %358 = vst.msk [vmem:[%s546_s26 + $0xa8] sm:$0xff] %vm336_vm0, %v321_v3  ;;  %v323_v11 = vmax.f32 %v287_v5, 0.0  ;;  %v251_v58 = vmul.f32 %v511_v21, %v580_v63  ;;  %v288_v59 = vadd.f32 %v526_v36, %v246_v56  ;;  %v289_v15 = vadd.f32 %v526_v36, %v247_v57 }
  0x31   : > { %v290_v60 = vadd.f32 %v526_v36, %v248_v8  ;;  %v291_v61 = vadd.f32 %v526_v36, %v249_v9  ;;  %359 = vst.msk [vmem:[%s546_s26 + $0xb0] sm:$0xff] %vm336_vm0, %v322_v10  ;;  %v292_v62 = vadd.f32 %v526_v36, %v250_v14  ;;  %v252_v16 = vmul.f32 %v511_v21, %v583_v0 }
  0x32   : > { %360 = vst.msk [vmem:[%s546_s26 + $0xb8] sm:$0xff] %vm336_vm0, %v323_v11  ;;  %v293_v63 = vadd.f32 %v526_v36, %v251_v58  ;;  %v253_v17 = vmul.f32 %v511_v21, %v586_v1  ;;  %v324_v18 = vmax.f32 %v288_v59, 0.0  ;;  %v325_v19 = vmax.f32 %v289_v15, 0.0 }
  0x33   : > { %v326_v20 = vmax.f32 %v290_v60, 0.0  ;;  %v327_v22 = vmax.f32 %v291_v61, 0.0  ;;  %v328_v23 = vmax.f32 %v292_v62, 0.0  ;;  %v294_v25 = vadd.f32 %v526_v36, %v252_v16 }
  0x34   : > { %v329_v24 = vmax.f32 %v293_v63, 0.0  ;;  %v295_v26 = vadd.f32 %v526_v36, %v253_v17  ;;  %361 = vst.msk [vmem:[%s546_s26 + $0xc0] sm:$0xff] %vm336_vm0, %v324_v18  ;;  %362 = vst.msk [vmem:[%s546_s26 + $0xc8] sm:$0xff] %vm336_vm0, %v325_v19  ;;  %v254_v0 = vmul.f32 %v511_v21, %v593_v6  ;;  %v255_v1 = vmul.f32 %v511_v21, %v596_v7 }
  0x35   : > { %363 = vst.msk [vmem:[%s546_s26 + $0xd0] sm:$0xff] %vm336_vm0, %v326_v20  ;;  %364 = vst.msk [vmem:[%s546_s26 + $0xd8] sm:$0xff] %vm336_vm0, %v327_v22  ;;  %v256_v27 = vmul.f32 %v511_v21, %v599_v12  ;;  %v257_v28 = vmul.f32 %v511_v21, %v602_v13  ;;  %v330_v29 = vmax.f32 %v294_v25, 0.0 }
  0x36   : > { %365 = vst.msk [vmem:[%s546_s26 + $0xe0] sm:$0xff] %vm336_vm0, %v328_v23  ;;  %366 = vst.msk [vmem:[%s546_s26 + $0xe8] sm:$0xff] %vm336_vm0, %v329_v24  ;;  %v331_v30 = vmax.f32 %v295_v26, 0.0  ;;  %v296_v6 = vadd.f32 %v526_v36, %v254_v0  ;;  %v297_v7 = vadd.f32 %v526_v36, %v255_v1 }
  0x37   : > { %v298_v31 = vadd.f32 %v526_v36, %v256_v27  ;;  %v299_v12 = vadd.f32 %v526_v36, %v257_v28  ;;  %367 = vst.msk [vmem:[%s546_s26 + $0xf0] sm:$0xff] %vm336_vm0, %v330_v29 }
  0x38   : > { %368 = vst.msk [vmem:[%s546_s26 + $0xf8] sm:$0xff] %vm336_vm0, %v331_v30  ;;  %v332_v21 = vmax.f32 %v296_v6, 0.0  ;;  %v333_v13 = vmax.f32 %v297_v7, 0.0 }
  0x39   : > { %v334_v32 = vmax.f32 %v298_v31, 0.0  ;;  %v335_v33 = vmax.f32 %v299_v12, 0.0 }
  0x3a   : > { %369 = vst.msk [vmem:[%s546_s26 + $0x100] sm:$0xff] %vm336_vm0, %v332_v21  ;;  %370 = vst.msk [vmem:[%s546_s26 + $0x108] sm:$0xff] %vm336_vm0, %v333_v13 }
  0x3b   : > { %371 = vst.msk [vmem:[%s546_s26 + $0x110] sm:$0xff] %vm336_vm0, %v334_v32  ;;  %372 = vst.msk [vmem:[%s546_s26 + $0x118] sm:$0xff] %vm336_vm0, %v335_v33 }
  0x3c PF: > { %s13_s12 = sadd.s32 1, %s454_s12  }
  0x3d   : > { %p10_p4 = scmp.ge.s32.totalorder %s13_s12, 4  }
  0x3f   :  { %12 = sbr.rel (!%p10_p4) target bundleno = 1 (0x1), region = 62 }

// kernel: conv_block_forward.2
= control target key start
LH: loop header
LB: loop body
LE: loop exit
PB: predicated region body
PF: predicated region fallthrough
CT: control target
= control target key end

     0   :  { %s5915_s12 = smov 0   ;;  %s8353_s0 = inlined_call_operand.vmem [shape: bf16[2,342,4], index: 0, kind: input, shape index: {}]   ;;  %s8354_s1 = inlined_call_operand.vmem [shape: bf16[9,4,8], index: 1, kind: input, shape index: {}]   ;;  %s8355_s2 = inlined_call_operand.vmem [shape: f32[2,288,8], index: 2, kind: output, shape index: {0}]   ;;  %s8356_s3 = inlined_call_operand.vmem [shape: f32[2,8], index: 3, kind: output, shape index: {1}]  }
   0x1 LB: > { %s4676_s13 = sadd.s32 4294967295, %s5892_s12   ;;  %p4680_p0 = scmp.ge.s32.totalorder %s5892_s12, 1  ;;  %s5892_s12 = sphi %s5915_s12, %s14_s12  }
   0x2   : > { %p135_p1 = scmp.lt.s32.totalorder %s5892_s12, 3 }
   0x4   : > { %p136_p2 = pnand %p4680_p0, %p135_p1 }
   0x6   : > { %139 = sbr.rel (%p136_p2) target bundleno = 638 (0x27e), region = 28 }
   0xd   : > { %p159_p3 = scmp.lt.s32.totalorder %s4676_s13, 1  ;;  %p4683_p4 = scmp.ne.s32.totalorder %s4676_s13, 0 }
   0xe   : > { %vm174_vm0 = vcmask (!%p4683_p4), 58368   ;;  %v5894_v0 = vmov (!%p4683_p4), 0.0  }
   0xf   : > { %s160_s14 = scalar_select %p159_p3, %s4676_s13, 1 }
  0x10   : > { %173 = sbr.rel (%p4683_p4) target bundleno = 23 (0x17), region = 32  ;;  %175 = vst.msk [vmem:[%s8356_s3] sm:$0x3] (!%p4683_p4), %vm174_vm0, %v5894_v0 }
  0x11   : > { %s5731_s15 = smul.u32 172, %s160_s14 }
  0x12   : > { %s5732_s16 = smul.u32 288, %s160_s14 }
  0x13   : > { %s5926_s19 = scalar_lea.vmem %s8353_s0, %s5731_s15 }
  0x14   : > { %s5931_s22 = scalar_lea.vmem %s8355_s2, %s5732_s16 }
  0x17 PF: > { %vm513_vm1 = vcmask 1041408   ;;  %v5939_v1 = vld [vmem:[%s8354_s1 + $0x8] sm:$0x3]  ;;  %v4684_v2 = vld [vmem:[%s8354_s1 + $0x2] sm:$0x3]  ;;  %vm458_vm3 = vcmask 31744  }
  0x18   : > { %v5945_v3 = vld [vmem:[%s5926_s19 + $0x8] sm:$0xff]   ;;  %5725 = vmatprep.subr.msk.bf16.mxu0 %vm513_vm1, %v5939_v1  ;;  %5721 = vmatprep.subr.msk.bf16.mxu1 %vm513_vm1, %v4684_v2  ;;  %v5952_v4 = vsel %vm513_vm1, %v5939_v1, 0  ;;  %v515_v5 = vsel %vm513_vm1, %v4684_v2, 0  ;;  %v176_v6 = vld [vmem:[%s5926_s19] sm:$0xf]  ;;  %v5967_v12 = vld [vmem:[%s5926_s19 + $0x10] sm:$0xff]  }
  0x19   : > { %v5957_v7 = vld [vmem:[%s5926_s19 + $0x4] sm:$0xf]  ;;  %5242 = vmatpush3.bf16.msra.mxu0 %v5952_v4  ;;  %5090 = vmatpush3.bf16.msra.mxu1 %v515_v5  ;;  %vm309_vm2 = vsmask.f32 7424  ;;  %v318_v9 = vshll.u32 %v5945_v3, 16  ;;  %v322_v10 = vshrl.u32 %v5945_v3, 16 }
  0x1a   : > { %v5961_v8 = vcombine.low %v176_v6, %v5957_v7  ;;  %v1224_v11 = vld [vmem:[%s5926_s19 + $0x8] sm:$0xe]  ;;  %v5972_v15 = vld [vmem:[%s5926_s19 + $0xc] sm:$0xf]  ;;  %vm1669_vm4 = vsmask.f32 6400 }
  0x1b   : > { %v320_v16 = vrot.slane %v318_v9, 1  ;;  %v5975_v17 = vcombine.low %v1224_v11, %v5972_v15  ;;  %v1679_v18 = vshrl.u32 %v5967_v12, 16  ;;  %v1682_v20 = vshll.u32 %v5967_v12, 16  ;;  %v4818_v21 = vld [vmem:[%s8354_s1 + $0xa] sm:$0x3]  ;;  %v5986_v25 = vld [vmem:[%s5926_s19 + $0x10] sm:$0xff]  }
  0x1c   : > { %v311_v13 = vshrl.u32 %v5961_v8, 16  ;;  %v313_v14 = vshll.u32 %v5961_v8, 16  ;;  %5727 = vmatprep.subr.msk.bf16.mxu0 %vm513_vm1, %v4818_v21  ;;  %v5989_v29 = vld [vmem:[%s5926_s19 + $0x18] sm:$0xff]   ;;  %v326_v32 = vshll.u32 %v5986_v25, 16  ;;  %v2209_v33 = vsel %vm513_vm1, %v4818_v21, 0  ;;  %v6000_v39 = vld [vmem:[%s5926_s19 + $0x20] sm:$0xff]  }
  0x1d   : > { %v1671_v22 = vshrl.u32 %v5975_v17, 16  ;;  %v1674_v23 = vshll.u32 %v5975_v17, 16  ;;  %v1681_v24 = vrot.slane %v1679_v18, 1  ;;  %v324_v27 = vor.u32 %v322_v10, %v320_v16  ;;  %v5997_v38 = vld [vmem:[%s5926_s19 + $0x18] sm:$0xff]   ;;  %v212_v43 = vld [vmem:[%s8354_s1] sm:$0x3] }
  0x1e   : > { %v315_v19 = vrot.slane %v313_v14, 1  ;;  %v1684_v28 = vrot.slane %v1682_v20, 2  ;;  %v1688_v36 = vshrl.u32 %v5989_v29, 16  ;;  %v1691_v37 = vshll.u32 %v5989_v29, 16  ;;  %5722 = vmatprep.subr.msk.bf16.mxu1 %vm513_vm1, %v212_v43  ;;  %v6014_v52 = vld [vmem:[%s5926_s19 + $0x20] sm:$0xff]   ;;  %v6020_v57 = vld [vmem:[%s5926_s19 + $0x28] sm:$0xff]  }
  0x1f   : > { %v1673_v30 = vrot.slane %v1671_v22, 1  ;;  %v1676_v31 = vrot.slane %v1674_v23, 2  ;;  %v328_v41 = vrot.slane %v326_v32, 1  ;;  %v330_v42 = vshrl.u32 %v5986_v25, 16  ;;  %v6025_v61 = vld [vmem:[%s5926_s19 + $0x28] sm:$0xff]   ;;  %v6031_v5 = vld [vmem:[%s5926_s19 + $0x30] sm:$0xff]  }
  0x20   : > { %v316_v26 = vor.u32 %v315_v19, %v311_v13  ;;  %v1685_v35 = vor.u32 %v1684_v28, %v1681_v24  ;;  %v1690_v44 = vrot.slane %v1688_v36, 1  ;;  %v1693_v45 = vrot.slane %v1691_v37, 2  ;;  %v6038_v13 = vld [vmem:[%s5926_s19 + $0x30] sm:$0xff]   ;;  %v6046_v24 = vld [vmem:[%s5926_s19 + $0x38] sm:$0xff]  }
  0x21   : > { %v1677_v40 = vor.u32 %v1676_v31, %v1673_v30  ;;  %v334_v46 = vshll.u32 %v5997_v38, 16  ;;  %v1697_v47 = vshrl.u32 %v6000_v39, 16  ;;  %v329_v49 = vsel %vm309_vm2, %v324_v27, %v328_v41 }
  0x22   : > { %v321_v34 = vsel %vm309_vm2, %v316_v26, %v320_v16  ;;  %v332_v50 = vor.u32 %v330_v42, %v328_v41  ;;  %v1700_v51 = vshll.u32 %v6000_v39, 16  ;;  %v1694_v53 = vor.u32 %v1693_v45, %v1690_v44  ;;  %v6060_v42 = vld [vmem:[%s5926_s19 + $0x40] sm:$0xff]  }
  0x23   : > { %5091 = vmatprep.mubr.msk.bf16.mxu1 %vm458_vm3, %v321_v34  ;;  %v1686_v48 = vsel %vm1669_vm4, %v1677_v40, %v1685_v35  ;;  %v336_v54 = vrot.slane %v334_v46, 1  ;;  %v1699_v55 = vrot.slane %v1697_v47, 1  ;;  %v338_v56 = vshrl.u32 %v5997_v38, 16  ;;  %v6065_v47 = vld [vmem:[%s5926_s19 + $0x40] sm:$0xff]  }
  0x24   : > { %5243 = vmatprep.mubr.msk.bf16.mxu0 %vm458_vm3, %v1686_v48  ;;  %5092 = vmatmul.mubr.msk.bf16.vlgmr.msra.gmra.mrb[0].mxu1 %vm458_vm3, %v329_v49  ;;  %v1702_v58 = vrot.slane %v1700_v51, 2  ;;  %v342_v59 = vshll.u32 %v6014_v52, 16  ;;  %v731_v60 = vsel %vm513_vm1, %v212_v43, 0  ;;  %v1695_v62 = vsel %vm1669_vm4, %v1685_v35, %v1694_v53  ;;  %v6054_v35 = vld [vmem:[%s5926_s19 + $0x38] sm:$0xff]  }
  0x25   : > { %v337_v63 = vsel %vm309_vm2, %v332_v50, %v336_v54  ;;  %v340_v0 = vor.u32 %v338_v56, %v336_v54  ;;  %5128 = vmatpush3.bf16.msra.mxu1 %v731_v60  ;;  %v1706_v2 = vshrl.u32 %v6020_v57, 16  ;;  %5244 = vmatmul.mubr.msk.bf16.vlgmr.msra.gmra.mrb[0].mxu0 %vm458_vm3, %v1695_v62  ;;  %v1709_v10 = vshll.u32 %v6020_v57, 16 }
  0x26   : > { %5095 = vmatprep.mubr.msk.bf16.mxu1 %vm458_vm3, %v337_v63  ;;  %v1703_v6 = vor.u32 %v1702_v58, %v1699_v55  ;;  %v344_v9 = vrot.slane %v342_v59, 1  ;;  %v346_v11 = vshrl.u32 %v6014_v52, 16  ;;  %5280 = vmatpush3.bf16.msra.mxu0 %v2209_v33  ;;  %v350_v16 = vshll.u32 %v6025_v61, 16  ;;  %v6077_v58 = vld [vmem:[%s5926_s19 + $0x48] sm:$0xff]  }
  0x27   : > { %v1708_v14 = vrot.slane %v1706_v2, 1  ;;  %v1715_v18 = vshrl.u32 %v6031_v5, 16  ;;  %v1718_v19 = vshll.u32 %v6031_v5, 16  ;;  %v1711_v22 = vrot.slane %v1709_v10, 2 }
  0x28   : > { %v1704_v20 = vsel %vm1669_vm4, %v1694_v53, %v1703_v6  ;;  %v345_v21 = vsel %vm309_vm2, %v340_v0, %v344_v9  ;;  %v348_v23 = vor.u32 %v346_v11, %v344_v9  ;;  %v352_v26 = vrot.slane %v350_v16, 1  ;;  %v6072_v53 = vld [vmem:[%s5926_s19 + $0x48] sm:$0xff]  }
  0x29   : > { %5247 = vmatprep.mubr.msk.bf16.mxu0 %vm458_vm3, %v1704_v20  ;;  %v1717_v27 = vrot.slane %v1715_v18, 1  ;;  %v1720_v28 = vrot.slane %v1718_v19, 2  ;;  %v354_v30 = vshrl.u32 %v6025_v61, 16  ;;  %v1712_v31 = vor.u32 %v1711_v22, %v1708_v14  ;;  %v6086_v14 = vld [vmem:[%s5926_s19 + $0x50] sm:$0xff]  }
  0x2a   : > { %v358_v32 = vshll.u32 %v6038_v13, 16  ;;  %v1724_v33 = vshrl.u32 %v6046_v24, 16  ;;  %v1727_v34 = vshll.u32 %v6046_v24, 16  ;;  %v353_v36 = vsel %vm309_vm2, %v348_v23, %v352_v26 }
  0x2b   : > { %v1721_v37 = vor.u32 %v1720_v28, %v1717_v27  ;;  %v356_v40 = vor.u32 %v354_v30, %v352_v26  ;;  %v362_v41 = vshrl.u32 %v6038_v13, 16  ;;  %v1713_v43 = vsel %vm1669_vm4, %v1703_v6, %v1712_v31  ;;  %v6097_v30 = vld [vmem:[%s5926_s19 + $0x50] sm:$0xff]  }
  0x2c   : > { %5096 = vmatmul.mubr.msk.bf16.gmra.mrb[4].mxu1 %vm458_vm3, %v345_v21  ;;  %v360_v44 = vrot.slane %v358_v32, 1  ;;  %v1726_v45 = vrot.slane %v1724_v33, 1  ;;  %v1729_v46 = vrot.slane %v1727_v34, 2  ;;  %v366_v49 = vshll.u32 %v6054_v35, 16 }
  0x2d   : > { %5099 = vmatprep.mubr.msk.bf16.mxu1 %vm458_vm3, %v353_v36  ;;  %v1722_v48 = vsel %vm1669_vm4, %v1712_v31, %v1721_v37  ;;  %v1733_v50 = vshrl.u32 %v6060_v42, 16  ;;  %v1736_v51 = vshll.u32 %v6060_v42, 16  ;;  %5248 = vmatmul.mubr.msk.bf16.gmra.mrb[4].mxu0 %vm458_vm3, %v1713_v43  ;;  %v370_v56 = vshrl.u32 %v6054_v35, 16  ;;  %v6100_v31 = vld [vmem:[%s5926_s19 + $0x58] sm:$0xff]  }
  0x2e   : > { %v1730_v54 = vor.u32 %v1729_v46, %v1726_v45  ;;  %v364_v55 = vor.u32 %v362_v41, %v360_v44  ;;  %5251 = vmatprep.mubr.msk.bf16.mxu0 %vm458_vm3, %v1722_v48  ;;  %v368_v59 = vrot.slane %v366_v49, 1  ;;  %v374_v63 = vshll.u32 %v6065_v47, 16  ;;  %v6104_v36 = vld [vmem:[%s5926_s19 + $0x58] sm:$0xff]  }
  0x2f   : > { %v1735_v60 = vrot.slane %v1733_v50, 1  ;;  %v1738_v62 = vrot.slane %v1736_v51, 2  ;;  %v361_v0 = vsel %vm309_vm2, %v356_v40, %v360_v44  ;;  %v1742_v2 = vshrl.u32 %v6072_v53, 16  ;;  %v4838_v44 = vld [vmem:[%s8354_s1 + $0xc] sm:$0x3] }
  0x30   : > { %v1745_v6 = vshll.u32 %v6072_v53, 16  ;;  %v369_v9 = vsel %vm309_vm2, %v364_v55, %v368_v59  ;;  %v376_v11 = vrot.slane %v374_v63, 1  ;;  %v378_v19 = vshrl.u32 %v6065_v47, 16  ;;  %5728 = vmatprep.subr.msk.bf16.mxu0 %vm513_vm1, %v4838_v44 }
  0x31   : > { %v1739_v10 = vor.u32 %v1738_v62, %v1735_v60  ;;  %v1744_v16 = vrot.slane %v1742_v2, 1  ;;  %v382_v20 = vshll.u32 %v6077_v58, 16  ;;  %v1731_v21 = vsel %vm1669_vm4, %v1721_v37, %v1730_v54  ;;  %v6123_v62 = vld [vmem:[%s5926_s19 + $0x60] sm:$0xff]  }
  0x32   : > { %v1747_v18 = vrot.slane %v1745_v6, 2  ;;  %v1751_v22 = vshrl.u32 %v6086_v14, 16  ;;  %v1754_v23 = vshll.u32 %v6086_v14, 16  ;;  %v372_v27 = vor.u32 %v370_v56, %v368_v59 }
  0x33   : > { %v1740_v26 = vsel %vm1669_vm4, %v1730_v54, %v1739_v10  ;;  %v384_v28 = vrot.slane %v382_v20, 1  ;;  %v380_v32 = vor.u32 %v378_v19, %v376_v11  ;;  %v390_v40 = vshll.u32 %v6097_v30, 16  ;;  %v2110_v54 = vld [vmem:[%s5926_s19 + $0x8] sm:$0xc] }
  0x34   : > { %5100 = vmatmul.mubr.msk.bf16.gmra.mrb[8].mxu1 %vm458_vm3, %v361_v0  ;;  %v1753_v33 = vrot.slane %v1751_v22, 1  ;;  %v1756_v34 = vrot.slane %v1754_v23, 2  ;;  %v1748_v37 = vor.u32 %v1747_v18, %v1744_v16  ;;  %v1760_v41 = vshrl.u32 %v6100_v31, 16 }
  0x35   : > { %5103 = vmatprep.mubr.msk.bf16.mxu1 %vm458_vm3, %v369_v9  ;;  %5252 = vmatmul.mubr.msk.bf16.gmra.mrb[8].mxu0 %vm458_vm3, %v1731_v21  ;;  %v1763_v43 = vshll.u32 %v6100_v31, 16  ;;  %v377_v45 = vsel %vm309_vm2, %v372_v27, %v376_v11  ;;  %v386_v48 = vshrl.u32 %v6077_v58, 16  ;;  %v385_v49 = vsel %vm309_vm2, %v380_v32, %v384_v28  ;;  %v6129_v11 = vld [vmem:[%s5926_s19 + $0x68] sm:$0xff]  }
  0x36   : > { %5255 = vmatprep.mubr.msk.bf16.mxu0 %vm458_vm3, %v1740_v26  ;;  %v1757_v46 = vor.u32 %v1756_v34, %v1753_v33  ;;  %v394_v50 = vshrl.u32 %v6097_v30, 16  ;;  %v398_v51 = vshll.u32 %v6104_v36, 16  ;;  %v1749_v55 = vsel %vm1669_vm4, %v1739_v10, %v1748_v37  ;;  %v6145_v26 = vld [vmem:[%s8354_s1 + $0x4] sm:$0x3] }
  0x37   : > { %v392_v56 = vrot.slane %v390_v40, 1  ;;  %v1762_v59 = vrot.slane %v1760_v41, 1  ;;  %v1765_v60 = vrot.slane %v1763_v43, 2  ;;  %v388_v0 = vor.u32 %v386_v48, %v384_v28  ;;  %v6151_v28 = vld [vmem:[%s5926_s19 + $0x70] sm:$0xff]   ;;  %5723 = vmatprep.subr.msk.bf16.mxu1 %vm513_vm1, %v6145_v26  ;;  %v6158_v40 = vld [vmem:[%s5926_s19 + $0x78] sm:$0xff]  }
  0x38   : > { %v1758_v63 = vsel %vm1669_vm4, %v1748_v37, %v1757_v46  ;;  %v4819_v2 = vcombine.low %v2110_v54, %v5972_v15  ;;  %v400_v9 = vrot.slane %v398_v51, 1  ;;  %v406_v16 = vshll.u32 %v6123_v62, 16 }
  0x39   : > { %v396_v6 = vor.u32 %v394_v50, %v392_v56  ;;  %v6133_v10 = vor.u32 %v1765_v60, %v1762_v59  ;;  %v393_v18 = vsel %vm309_vm2, %v388_v0, %v392_v56  ;;  %v2118_v20 = vrot.slane %v5967_v12, 2  ;;  %v6179_v0 = vld [vmem:[%s5926_s19 + $0x88] sm:$0xff]  }
  0x3a   : > { %v2117_v19 = vrot.slane %v4819_v2, 2  ;;  %v402_v15 = vshrl.u32 %v6104_v36, 16  ;;  %vm2116_vm5 = vcmask 1045504   ;;  %v410_v22 = vshrl.u32 %v6123_v62, 16  ;;  %v6185_v2 = vld [vmem:[%s8354_s1 + $0xe] sm:$0x3] }
  0x3b   : > { %v401_v21 = vsel %vm309_vm2, %v396_v6, %v400_v9  ;;  %v414_v23 = vshll.u32 %v6129_v11, 16  ;;  %v1767_v12 = vsel %vm1669_vm4, %v1757_v46, %v6133_v10  ;;  %v408_v27 = vrot.slane %v406_v16, 1 }
  0x3c   : > { %5104 = vmatmul.mubr.msk.bf16.gmra.mrb[12].mxu1 %vm458_vm3, %v377_v45  ;;  %v2119_v32 = vsel %vm2116_vm5, %v2117_v19, %v2118_v20  ;;  %v404_v33 = vor.u32 %v402_v15, %v400_v9  ;;  %v2120_v41 = vrot.slane %v5989_v29, 2  ;;  %v422_v43 = vshll.u32 %v6151_v28, 16 }
  0x3d   : > { %5107 = vmatprep.mubr.msk.bf16.mxu1 %vm458_vm3, %v385_v49  ;;  %5256 = vmatmul.mubr.msk.bf16.gmra.mrb[12].mxu0 %vm458_vm3, %v1749_v55  ;;  %v412_v34 = vor.u32 %v410_v22, %v408_v27  ;;  %v416_v37 = vrot.slane %v414_v23, 1  ;;  %v2122_v46 = vrot.slane %v6000_v39, 2  ;;  %v418_v48 = vshrl.u32 %v6129_v11, 16  ;;  %v6173_v55 = vld [vmem:[%s5926_s19 + $0x80] sm:$0xff]  }
  0x3e   : > { %5259 = vmatprep.mubr.msk.bf16.mxu0 %vm458_vm3, %v1758_v63  ;;  %v409_v45 = vsel %vm309_vm2, %v404_v33, %v408_v27  ;;  %v426_v50 = vshrl.u32 %v6151_v28, 16  ;;  %v430_v51 = vshll.u32 %v6158_v40, 16  ;;  %v2121_v54 = vsel %vm2116_vm5, %v2118_v20, %v2120_v41 }
  0x3f   : > { %v417_v49 = vsel %vm309_vm2, %v412_v34, %v416_v37  ;;  %v424_v29 = vrot.slane %v422_v43, 1  ;;  %v2648_v56 = vsel %vm513_vm1, %v4838_v44, 0  ;;  %v2123_v39 = vsel %vm2116_vm5, %v2120_v41, %v2122_v46 }
  0x40   : > { %v420_v59 = vor.u32 %v418_v48, %v416_v37  ;;  %v432_v63 = vrot.slane %v430_v51, 1  ;;  %v2124_v44 = vrot.slane %v6020_v57, 2  ;;  %v438_v6 = vshll.u32 %v6173_v55, 16 }
  0x41   : > { %v428_v60 = vor.u32 %v426_v50, %v424_v29  ;;  %v2126_v16 = vrot.slane %v6031_v5, 2  ;;  %v442_v20 = vshrl.u32 %v6173_v55, 16  ;;  %v446_v15 = vshll.u32 %v6179_v0, 16 }
  0x42   : > { %v425_v9 = vsel %vm309_vm2, %v420_v59, %v424_v29  ;;  %v2125_v57 = vsel %vm2116_vm5, %v2122_v46, %v2124_v44  ;;  %v440_v22 = vrot.slane %v438_v6, 1  ;;  %v2130_v34 = vrot.slane %v6060_v42, 2  ;;  %v6228_v29 = vld [vmem:[%s5926_s19 + $0x60] sm:$0xff]   ;;  %v6245_v59 = vld [vmem:[%s5926_s19 + $0x68] sm:$0xff]   ;;  %v6263_v6 = vld [vmem:[%s5926_s19 + $0x78] sm:$0xff]  }
  0x43   : > { %v433_v19 = vsel %vm309_vm2, %v428_v60, %v432_v63  ;;  %v2127_v5 = vsel %vm2116_vm5, %v2124_v44, %v2126_v16  ;;  %v448_v27 = vrot.slane %v446_v15, 1  ;;  %v450_v37 = vshrl.u32 %v6179_v0, 16  ;;  %v6279_v15 = vld [vmem:[%s5926_s19 + $0x88] sm:$0xff]  }
  0x44   : > { %5108 = vmatmul.mubr.msk.bf16.gmra.mrb[16].mxu1 %vm458_vm3, %v393_v18  ;;  %v434_v18 = vshrl.u32 %v6158_v40, 16  ;;  %v2132_v42 = vrot.slane %v6072_v53, 2  ;;  %v2134_v50 = vrot.slane %v6086_v14, 2  ;;  %v2136_v53 = vrot.slane %v6100_v31, 2 }
  0x45   : > { %5111 = vmatprep.mubr.msk.bf16.mxu1 %vm458_vm3, %v401_v21  ;;  %5260 = vmatmul.mubr.msk.bf16.gmra.mrb[16].mxu0 %vm458_vm3, %v1767_v12  ;;  %v6199_v21 = vld [vmem:[%s5926_s19 + $0x90] ss:$0 sps:$4 sm:$0x11]   ;;  %v444_v12 = vor.u32 %v442_v20, %v440_v22  ;;  %v2138_v14 = vrot.slane %v6228_v29, 2  ;;  %v2140_v60 = vrot.slane %v6245_v59, 2  ;;  %vm916_vm6 = vcmask 1046528  }
  0x46   : > { %5281 = vmatprep.mubr.msk.bf16.mxu0 %vm458_vm3, %v2119_v32  ;;  %v436_v23 = vor.u32 %v434_v18, %v432_v63  ;;  %v2128_v32 = vrot.slane %v6046_v24, 2  ;;  %v454_v41 = vshll.u32 %v6199_v21, 16  ;;  %v452_v24 = vor.u32 %v450_v37, %v448_v27 }
  0x47   : > { %v449_v43 = vsel %vm309_vm2, %v444_v12, %v448_v27  ;;  %v2133_v51 = vsel %vm2116_vm5, %v2130_v34, %v2132_v42  ;;  %v2139_v31 = vsel %vm2116_vm5, %v2136_v53, %v2138_v14  ;;  %v2141_v44 = vsel %vm2116_vm5, %v2138_v14, %v2140_v60  ;;  %v2424_v12 = vld [vmem:[%s5926_s19 + $0x10] sm:$0xc]  ;;  %v6293_v27 = vld [vmem:[%s5926_s19 + $0x14] sm:$0xf] }
  0x48   : > { %v441_v33 = vsel %vm309_vm2, %v436_v23, %v440_v22  ;;  %v2131_v46 = vsel %vm2116_vm5, %v2128_v32, %v2130_v34  ;;  %v456_v48 = vrot.slane %v454_v41, 1  ;;  %v2144_v18 = vrot.slane %v6263_v6, 2  ;;  %v6285_v22 = vld [vmem:[%s5926_s19 + $0x90] sm:$0xff]   ;;  %v6308_v41 = vld [vmem:[%s5926_s19 + $0x18] sm:$0xff]  }
  0x49   : > { %v2150_v23 = vrot.slane %v6285_v22, 2  ;;  %v6305_v37 = vcombine.low %v2424_v12, %v6293_v27  ;;  %v3095_v14 = vsel %vm513_vm1, %v6185_v2, 0  ;;  %v6378_v12 = vld [vmem:[%s5926_s19 + $0x50] sm:$0xff]   ;;  %vm2869_vm7 = vsmask.f32 5376 }
  0x4a   : > { %vm3316_vm8 = vcmask 1044480  }
  0x4c   : > { %5112 = vmatmul.mubr.msk.bf16.gmra.mrb[20].mxu1 %vm458_vm3, %v409_v45  ;;  %v2129_v45 = vsel %vm2116_vm5, %v2126_v16, %v2128_v32  ;;  %v6269_v16 = vld [vmem:[%s5926_s19 + $0x80] sm:$0xff]  }
  0x4d   : > { %5115 = vmatprep.mubr.msk.bf16.mxu1 %vm458_vm3, %v417_v49  ;;  %5282 = vmatmul.mubr.msk.bf16.vlgmr.msra.gmra.mrb[0].mxu0 %vm458_vm3, %v2121_v54  ;;  %v457_v49 = vsel %vm309_vm2, %v452_v24, %v456_v48  ;;  %v2135_v54 = vsel %vm2116_vm5, %v2132_v42, %v2134_v50  ;;  %v6319_v48 = vld [vmem:[%s5926_s19 + $0x20] sm:$0xff]  }
  0x4e   : > { %5318 = vmatpush3.bf16.msra.mxu0 %v2648_v56  ;;  %5285 = vmatprep.mubr.msk.bf16.mxu0 %vm458_vm3, %v2123_v39  ;;  %v1009_v56 = vsel %vm513_vm1, %v6145_v26, 0  ;;  %v2137_v39 = vsel %vm2116_vm5, %v2134_v50, %v2136_v53  ;;  %v6251_v26 = vld [vmem:[%s5926_s19 + $0x70] sm:$0xff]   ;;  %v2559_v50 = vrot.slane %v6319_v48, 2 }
  0x4f   : > { %5729 = vmatprep.subr.msk.bf16.mxu0 %vm513_vm1, %v6185_v2  ;;  %v2142_v63 = vrot.slane %v6251_v26, 2  ;;  %v6335_v53 = vld [vmem:[%s5926_s19 + $0x30] sm:$0xff]  }
  0x50   : > { %v2563_v2 = vrot.slane %v6335_v53, 2 }
  0x51   : > { %v2145_v20 = vsel %vm2116_vm5, %v2142_v63, %v2144_v18 }
  0x54   : > { %5116 = vmatmul.mubr.msk.bf16.gmra.mrb[24].mxu1 %vm458_vm3, %v425_v9  ;;  %v2143_v9 = vsel %vm2116_vm5, %v2140_v60, %v2142_v63 }
  0x55   : > { %5119 = vmatprep.mubr.msk.bf16.mxu1 %vm458_vm3, %v433_v19  ;;  %5286 = vmatmul.mubr.msk.bf16.gmra.mrb[4].mxu0 %vm458_vm3, %v2125_v57  ;;  %v2146_v19 = vrot.slane %v6269_v16, 2 }
  0x56   : > { %5289 = vmatprep.mubr.msk.bf16.mxu0 %vm458_vm3, %v2127_v5  ;;  %v2148_v5 = vrot.slane %v6279_v15, 2 }
  0x57   : > { %v2147_v57 = vsel %vm2116_vm5, %v2144_v18, %v2146_v19  ;;  %v6366_v18 = vld [vmem:[%s5926_s19 + $0x48] sm:$0xff]  }
  0x58   : > { %v2149_v32 = vsel %vm2116_vm5, %v2146_v19, %v2148_v5  ;;  %v2151_v34 = vsel %vm2116_vm5, %v2148_v5, %v2150_v23  ;;  %v910_v19 = vld [vmem:[%s5926_s19] sm:$0xe] }
  0x59   : > { %v4741_v5 = vcombine.low %v910_v19, %v5957_v7  ;;  %v2571_v7 = vrot.slane %v6378_v12, 2 }
  0x5c   : > { %5120 = vmatmul.mubr.msk.bf16.gmra.mrb[28].mxu1 %vm458_vm3, %v441_v33  ;;  %v6299_v33 = vld [vmem:[%s5926_s19 + $0x98] ss:$0 sps:$4 sm:$0x33]  }
  0x5d   : > { %5123 = vmatprep.mubr.msk.bf16.mxu1 %vm458_vm3, %v449_v43  ;;  %5290 = vmatmul.mubr.msk.bf16.gmra.mrb[8].mxu0 %vm458_vm3, %v2129_v45  ;;  %v2152_v43 = vrot.slane %v6299_v33, 2  ;;  %v2556_v45 = vrot.slane %v6305_v37, 2 }
  0x5e   : > { %5293 = vmatprep.mubr.msk.bf16.mxu0 %vm458_vm3, %v2131_v46  ;;  %v2557_v46 = vrot.slane %v6308_v41, 2 }
  0x5f   : > { %v2153_v24 = vsel %vm2116_vm5, %v2150_v23, %v2152_v43  ;;  %v917_v43 = vrot.slane %v4741_v5, 1  ;;  %v926_v5 = vrot.slane %v6025_v61, 1 }
  0x60   : > { %v2558_v42 = vsel %vm2116_vm5, %v2556_v45, %v2557_v46  ;;  %v918_v45 = vrot.slane %v5945_v3, 1 }
  0x64   : > { %5124 = vmatmul.mubr.msk.bf16.gmra.mrb[32].mxu1 %vm458_vm3, %v457_v49  ;;  %v6325_v49 = vld [vmem:[%s5926_s19 + $0x28] sm:$0xff]  }
  0x65   : > { %5129 = vmatprep.mubr.msk.bf16.mxu1 %vm458_vm3, %v5961_v8  ;;  %5294 = vmatmul.mubr.msk.bf16.gmra.mrb[12].mxu0 %vm458_vm3, %v2133_v51  ;;  %v6239_v8 = vld [vmem:[%s8354_s1 + $0x6] sm:$0x3]  ;;  %v2561_v51 = vrot.slane %v6325_v49, 2 }
  0x66   : > { %5297 = vmatprep.mubr.msk.bf16.mxu0 %vm458_vm3, %v2135_v54  ;;  %v2560_v54 = vsel %vm2116_vm5, %v2557_v46, %v2559_v50 }
  0x67   : > { %v2564_v63 = vsel %vm2116_vm5, %v2561_v51, %v2563_v2 }
  0x6c   : > { %5130 = vmatmul.mubr.msk.bf16.vlgmr.msra.gmra.mrb[0].mxu1 %vm458_vm3, %v5945_v3 }
  0x6d   : > { %5133 = vmatprep.mubr.msk.bf16.mxu1 %vm458_vm3, %v5986_v25  ;;  %5166 = vmatpush3.bf16.msra.mxu1 %v1009_v56  ;;  %v2562_v56 = vsel %vm2116_vm5, %v2559_v50, %v2561_v51  ;;  %v6396_v50 = vld [vmem:[%s5926_s19 + $0x60] sm:$0xff]   ;;  %v920_v51 = vrot.slane %v5986_v25, 1  ;;  %v1448_v25 = vsel %vm513_vm1, %v6239_v8, 0 }
  0x6e   : > { %5724 = vmatprep.subr.msk.bf16.mxu1 %vm513_vm1, %v6239_v8  ;;  %5298 = vmatmul.mubr.msk.bf16.gmra.mrb[16].mxu0 %vm458_vm3, %v2137_v39  ;;  %v6343_v39 = vld [vmem:[%s5926_s19 + $0x38] sm:$0xff]  }
  0x6f   : > { %5301 = vmatprep.mubr.msk.bf16.mxu0 %vm458_vm3, %v2139_v31  ;;  %v6348_v31 = vld [vmem:[%s8354_s1 + $0x10] sm:$0x3]  ;;  %v2565_v60 = vrot.slane %v6343_v39, 2 }
  0x74   : > { %5134 = vmatmul.mubr.msk.bf16.gmra.mrb[4].mxu1 %vm458_vm3, %v5997_v38 }
  0x75   : > { %5137 = vmatprep.mubr.msk.bf16.mxu1 %vm458_vm3, %v6014_v52 }
  0x76   : > { %5302 = vmatmul.mubr.msk.bf16.gmra.mrb[20].mxu0 %vm458_vm3, %v2141_v44  ;;  %v6360_v44 = vld [vmem:[%s5926_s19 + $0x40] sm:$0xff]  }
  0x77   : > { %5305 = vmatprep.mubr.msk.bf16.mxu0 %vm458_vm3, %v2143_v9  ;;  %v2566_v9 = vsel %vm2116_vm5, %v2563_v2, %v2565_v60  ;;  %v921_v2 = vsel %vm916_vm6, %v918_v45, %v920_v51 }
  0x7c   : > { %5138 = vmatmul.mubr.msk.bf16.gmra.mrb[8].mxu1 %vm458_vm3, %v6025_v61  ;;  %v6436_v61 = vld [vmem:[%s5926_s19 + $0x80] sm:$0xff]  }
  0x7d   : > { %5141 = vmatprep.mubr.msk.bf16.mxu1 %vm458_vm3, %v6038_v13 }
  0x7e   : > { %5306 = vmatmul.mubr.msk.bf16.gmra.mrb[24].mxu0 %vm458_vm3, %v2145_v20  ;;  %v2567_v20 = vrot.slane %v6360_v44, 2 }
  0x7f   : > { %5309 = vmatprep.mubr.msk.bf16.mxu0 %vm458_vm3, %v2147_v57  ;;  %v2569_v57 = vrot.slane %v6366_v18, 2 }
  0x80   : > { %v2568_v23 = vsel %vm2116_vm5, %v2565_v60, %v2567_v20 }
  0x84   : > { %5142 = vmatmul.mubr.msk.bf16.gmra.mrb[12].mxu1 %vm458_vm3, %v6054_v35 }
  0x85   : > { %5145 = vmatprep.mubr.msk.bf16.mxu1 %vm458_vm3, %v6065_v47 }
  0x86   : > { %5310 = vmatmul.mubr.msk.bf16.gmra.mrb[28].mxu0 %vm458_vm3, %v2149_v32  ;;  %v2570_v32 = vsel %vm2116_vm5, %v2567_v20, %v2569_v57  ;;  %v924_v20 = vrot.slane %v6014_v52, 1 }
  0x87   : > { %5313 = vmatprep.mubr.msk.bf16.mxu0 %vm458_vm3, %v2151_v34  ;;  %v6384_v34 = vld [vmem:[%s5926_s19 + $0x58] sm:$0xff]  }
  0x88   : > { %v2573_v46 = vrot.slane %v6384_v34, 2  ;;  %v927_v52 = vsel %vm916_vm6, %v924_v20, %v926_v5 }
  0x8a   : > { %v2574_v3 = vsel %vm2116_vm5, %v2571_v7, %v2573_v46 }
  0x8c   : > { %5146 = vmatmul.mubr.msk.bf16.gmra.mrb[16].mxu1 %vm458_vm3, %v6077_v58 }
  0x8d   : > { %5149 = vmatprep.mubr.msk.bf16.mxu1 %vm458_vm3, %v6097_v30 }
  0x8e   : > { %5314 = vmatmul.mubr.msk.bf16.gmra.mrb[32].mxu0 %vm458_vm3, %v2153_v24  ;;  %v919_v24 = vsel %vm916_vm6, %v917_v43, %v918_v45  ;;  %v928_v45 = vrot.slane %v6038_v13, 1 }
  0x8f   : > { %5319 = vmatprep.mubr.msk.bf16.mxu0 %vm458_vm3, %v2558_v42  ;;  %v2572_v42 = vsel %vm2116_vm5, %v2569_v57, %v2571_v7  ;;  %v6422_v57 = vld [vmem:[%s5926_s19 + $0x78] sm:$0xff]   ;;  %v6442_v7 = vld [vmem:[%s5926_s19 + $0x88] sm:$0xff]  }
  0x94   : > { %5150 = vmatmul.mubr.msk.bf16.gmra.mrb[20].mxu1 %vm458_vm3, %v6104_v36 }
  0x95   : > { %5153 = vmatprep.mubr.msk.bf16.mxu1 %vm458_vm3, %v6123_v62 }
  0x96   : > { %5320 = vmatmul.mubr.msk.bf16.vlgmr.msra.gmra.mrb[0].mxu0 %vm458_vm3, %v2560_v54  ;;  %v6402_v54 = vld [vmem:[%s5926_s19 + $0x68] sm:$0xff]  }
  0x97   : > { %5356 = vmatpush3.bf16.msra.mxu0 %v3095_v14  ;;  %5323 = vmatprep.mubr.msk.bf16.mxu0 %vm458_vm3, %v2562_v56  ;;  %v922_v14 = vrot.slane %v5997_v38, 1  ;;  %v2575_v56 = vrot.slane %v6396_v50, 2  ;;  %v2577_v60 = vrot.slane %v6402_v54, 2  ;;  %v6416_v38 = vld [vmem:[%s5926_s19 + $0x70] sm:$0xff]  }
  0x98   : > { %5730 = vmatprep.subr.msk.bf16.mxu0 %vm513_vm1, %v6348_v31  ;;  %v2579_v8 = vrot.slane %v6416_v38, 2 }
  0x99   : > { %v2578_v19 = vsel %vm2116_vm5, %v2575_v56, %v2577_v60 }
  0x9a   : > { %v2580_v43 = vsel %vm2116_vm5, %v2577_v60, %v2579_v8  ;;  %v934_v60 = vrot.slane %v6077_v58, 1 }
  0x9c   : > { %5154 = vmatmul.mubr.msk.bf16.gmra.mrb[24].mxu1 %vm458_vm3, %v6129_v11 }
  0x9d   : > { %5157 = vmatprep.mubr.msk.bf16.mxu1 %vm458_vm3, %v6151_v28 }
  0x9e   : > { %5324 = vmatmul.mubr.msk.bf16.gmra.mrb[4].mxu0 %vm458_vm3, %v2564_v63  ;;  %v923_v63 = vsel %vm916_vm6, %v920_v51, %v922_v14 }
  0x9f   : > { %5327 = vmatprep.mubr.msk.bf16.mxu0 %vm458_vm3, %v2566_v9  ;;  %v2576_v9 = vsel %vm2116_vm5, %v2573_v46, %v2575_v56  ;;  %v930_v46 = vrot.slane %v6054_v35, 1  ;;  %v6455_v56 = vld [vmem:[%s5926_s19 + $0x90] sm:$0xff]   ;;  %v6458_v35 = vld [vmem:[%s5926_s19 + $0x98] sm:$0xff]  }
  0xa1   : > { %v931_v51 = vsel %vm916_vm6, %v928_v45, %v930_v46 }
  0xa4   : > { %5158 = vmatmul.mubr.msk.bf16.gmra.mrb[28].mxu1 %vm458_vm3, %v6158_v40 }
  0xa5   : > { %5161 = vmatprep.mubr.msk.bf16.mxu1 %vm458_vm3, %v6173_v55 }
  0xa6   : > { %5328 = vmatmul.mubr.msk.bf16.gmra.mrb[8].mxu0 %vm458_vm3, %v2568_v23  ;;  %v925_v23 = vsel %vm916_vm6, %v922_v14, %v924_v20  ;;  %v932_v14 = vrot.slane %v6065_v47, 1  ;;  %v2589_v47 = vrot.slane %v6458_v35, 2  ;;  %v2879_v20 = vshrl.u32 %v6308_v41, 16 }
  0xa7   : > { %5331 = vmatprep.mubr.msk.bf16.mxu0 %vm458_vm3, %v2570_v32  ;;  %v2581_v32 = vrot.slane %v6422_v57, 2 }
  0xa8   : > { %v935_v58 = vsel %vm916_vm6, %v932_v14, %v934_v60 }
  0xac   : > { %5162 = vmatmul.mubr.msk.bf16.gmra.mrb[32].mxu1 %vm458_vm3, %v6179_v0 }
  0xad   : > { %5167 = vmatprep.mubr.msk.bf16.mxu1 %vm458_vm3, %v919_v24  ;;  %v2583_v24 = vrot.slane %v6436_v61, 2 }
  0xae   : > { %5332 = vmatmul.mubr.msk.bf16.gmra.mrb[12].mxu0 %vm458_vm3, %v2572_v42  ;;  %v929_v42 = vsel %vm916_vm6, %v926_v5, %v928_v45  ;;  %v2882_v5 = vshll.u32 %v6308_v41, 16 }
  0xaf   : > { %5335 = vmatprep.mubr.msk.bf16.mxu0 %vm458_vm3, %v2574_v3  ;;  %v2585_v3 = vrot.slane %v6442_v7, 2  ;;  %v2584_v13 = vsel %vm2116_vm5, %v2581_v32, %v2583_v24 }
  0xb0   : > { %v2884_v45 = vrot.slane %v2882_v5, 3 }
  0xb4   : > { %5168 = vmatmul.mubr.msk.bf16.vlgmr.msra.gmra.mrb[0].mxu1 %vm458_vm3, %v921_v2  ;;  %v2586_v2 = vsel %vm2116_vm5, %v2583_v24, %v2585_v3 }
  0xb5   : > { %5171 = vmatprep.mubr.msk.bf16.mxu1 %vm458_vm3, %v923_v63  ;;  %5204 = vmatpush3.bf16.msra.mxu1 %v1448_v25  ;;  %v933_v63 = vsel %vm916_vm6, %v930_v46, %v932_v14  ;;  %v2587_v25 = vrot.slane %v6455_v56, 2  ;;  %v938_v46 = vrot.slane %v6104_v36, 1  ;;  %v2897_v14 = vshrl.u32 %v6325_v49, 16 }
  0xb6   : > { %5726 = vmatprep.subr.msk.bf16.mxu1 %vm513_vm1, %v5939_v1  ;;  %5336 = vmatmul.mubr.msk.bf16.gmra.mrb[16].mxu0 %vm458_vm3, %v2576_v9  ;;  %v2582_v1 = vsel %vm2116_vm5, %v2579_v8, %v2581_v32  ;;  %v2871_v9 = vshrl.u32 %v6305_v37, 16  ;;  %v936_v32 = vrot.slane %v6097_v30, 1  ;;  %v2891_v30 = vshll.u32 %v6319_v48, 16 }
  0xb7   : > { %5339 = vmatprep.mubr.msk.bf16.mxu0 %vm458_vm3, %v2578_v19  ;;  %v2874_v19 = vshll.u32 %v6305_v37, 16  ;;  %v2588_v8 = vsel %vm2116_vm5, %v2585_v3, %v2587_v25  ;;  %v2881_v37 = vrot.slane %v2879_v20, 2  ;;  %v2888_v3 = vshrl.u32 %v6319_v48, 16 }
  0xb8   : > { %v937_v24 = vsel %vm916_vm6, %v934_v60, %v936_v32  ;;  %v2893_v60 = vrot.slane %v2891_v30, 3  ;;  %v2899_v20 = vrot.slane %v2897_v14, 2  ;;  %v2927_v14 = vshll.u32 %v6360_v44, 16 }
  0xbc   : > { %5172 = vmatmul.mubr.msk.bf16.gmra.mrb[4].mxu1 %vm458_vm3, %v925_v23  ;;  %v2590_v23 = vsel %vm2116_vm5, %v2587_v25, %v2589_v47  ;;  %v2890_v25 = vrot.slane %v2888_v3, 2 }
  0xbd   : > { %5175 = vmatprep.mubr.msk.bf16.mxu1 %vm458_vm3, %v927_v52  ;;  %v5872_v52 = vld [vmem:[%s5926_s19 + $0xa0] ss:$0 sps:$4 sm:$0x33]  }
  0xbe   : > { %5340 = vmatmul.mubr.msk.bf16.gmra.mrb[20].mxu0 %vm458_vm3, %v2580_v43  ;;  %v2873_v43 = vrot.slane %v2871_v9, 2 }
  0xbf   : > { %5343 = vmatprep.mubr.msk.bf16.mxu0 %vm458_vm3, %v2582_v1  ;;  %v2876_v1 = vrot.slane %v2874_v19, 3  ;;  %v940_v19 = vrot.slane %v6123_v62, 1  ;;  %v2918_v62 = vshll.u32 %v6343_v39, 16 }
  0xc1   : > { %v2920_v30 = vrot.slane %v2918_v62, 3  ;;  %v2951_v62 = vshrl.u32 %v6384_v34, 16 }
  0xc4   : > { %5176 = vmatmul.mubr.msk.bf16.gmra.mrb[8].mxu1 %vm458_vm3, %v929_v42  ;;  %v2591_v42 = vrot.slane %v5872_v52, 2 }
  0xc5   : > { %5179 = vmatprep.mubr.msk.bf16.mxu1 %vm458_vm3, %v931_v51  ;;  %v2877_v51 = vor.u32 %v2876_v1, %v2873_v43  ;;  %v2915_v43 = vshrl.u32 %v6343_v39, 16 }
  0xc6   : > { %5344 = vmatmul.mubr.msk.bf16.gmra.mrb[24].mxu0 %vm458_vm3, %v2584_v13  ;;  %v2885_v13 = vor.u32 %v2884_v45, %v2881_v37  ;;  %v2592_v36 = vsel %vm2116_vm5, %v2589_v47, %v2591_v42  ;;  %v2909_v47 = vshll.u32 %v6335_v53, 16  ;;  %v3409_v37 = vsel %vm513_vm1, %v6348_v31, 0 }
  0xc7   : > { %5347 = vmatprep.mubr.msk.bf16.mxu0 %vm458_vm3, %v2586_v2  ;;  %v2900_v2 = vshll.u32 %v6325_v49, 16  ;;  %v944_v42 = vrot.slane %v6151_v28, 1  ;;  %v2917_v3 = vrot.slane %v2915_v43, 2  ;;  %v2924_v31 = vshrl.u32 %v6360_v44, 16 }
  0xc8   : > { %v2886_v9 = vsel %vm2869_vm7, %v2877_v51, %v2885_v13  ;;  %v946_v51 = vrot.slane %v6158_v40, 1  ;;  %v2936_v28 = vshll.u32 %v6366_v18, 16 }
  0xc9   : > { %v2902_v5 = vrot.slane %v2900_v2, 3 }
  0xcb   : > { %v2903_v52 = vor.u32 %v2902_v5, %v2899_v20  ;;  %v948_v20 = vrot.slane %v6173_v55, 1  ;;  %v2954_v55 = vshll.u32 %v6384_v34, 16 }
  0xcc   : > { %5180 = vmatmul.mubr.msk.bf16.gmra.mrb[12].mxu1 %vm458_vm3, %v933_v63  ;;  %v939_v63 = vsel %vm916_vm6, %v936_v32, %v938_v46  ;;  %v941_v32 = vsel %vm916_vm6, %v938_v46, %v940_v19 }
  0xcd   : > { %5183 = vmatprep.mubr.msk.bf16.mxu1 %vm458_vm3, %v935_v58  ;;  %v942_v58 = vrot.slane %v6129_v11, 1 }
  0xce   : > { %5348 = vmatmul.mubr.msk.bf16.gmra.mrb[28].mxu0 %vm458_vm3, %v2588_v8  ;;  %v2894_v8 = vor.u32 %v2893_v60, %v2890_v25  ;;  %v947_v25 = vsel %vm916_vm6, %v944_v42, %v946_v51  ;;  %v2926_v60 = vrot.slane %v2924_v31, 2  ;;  %v2960_v31 = vshrl.u32 %v6396_v50, 16 }
  0xcf   : > { %5351 = vmatprep.mubr.msk.bf16.mxu0 %vm458_vm3, %v2590_v23  ;;  %v2906_v23 = vshrl.u32 %v6335_v53, 16  ;;  %v943_v1 = vsel %vm916_vm6, %v940_v19, %v942_v58  ;;  %v945_v2 = vsel %vm916_vm6, %v942_v58, %v944_v42  ;;  %v2938_v58 = vrot.slane %v2936_v28, 3 }
  0xd0   : > { %v2895_v11 = vsel %vm2869_vm7, %v2885_v13, %v2894_v8  ;;  %v2904_v46 = vsel %vm2869_vm7, %v2894_v8, %v2903_v52  ;;  %v950_v8 = vrot.slane %v6179_v0, 1  ;;  %v2956_v42 = vrot.slane %v2954_v55, 3 }
  0xd1   : > { %v2908_v45 = vrot.slane %v2906_v23, 2  ;;  %v2990_v55 = vshll.u32 %v6422_v57, 16 }
  0xd4   : > { %5184 = vmatmul.mubr.msk.bf16.gmra.mrb[16].mxu1 %vm458_vm3, %v937_v24  ;;  %v2911_v24 = vrot.slane %v2909_v47, 3  ;;  %v2942_v47 = vshrl.u32 %v6378_v12, 16 }
  0xd5   : > { %5187 = vmatprep.mubr.msk.bf16.mxu1 %vm458_vm3, %v939_v63  ;;  %v2921_v63 = vor.u32 %v2920_v30, %v2917_v3  ;;  %v1356_v3 = vrot.slane %v5975_v17, 1  ;;  %v5876_v30 = vld [vmem:[%s5926_s19 + $0x10] sm:$0xff]   ;;  %v2972_v17 = vshll.u32 %v6402_v54, 16 }
  0xd6   : > { %5352 = vmatmul.mubr.msk.bf16.gmra.mrb[32].mxu0 %vm458_vm3, %v2592_v36  ;;  %v2912_v13 = vor.u32 %v2911_v24, %v2908_v45  ;;  %v2933_v36 = vshrl.u32 %v6366_v18, 16  ;;  %v952_v24 = vrot.slane %v6199_v21, 1 }
  0xd7   : > { %5357 = vmatprep.mubr.msk.bf16.mxu0 %vm458_vm3, %v2886_v9  ;;  %v2929_v9 = vrot.slane %v2927_v14, 3  ;;  %v2963_v14 = vshll.u32 %v6396_v50, 16 }
  0xd8   : > { %v2913_v40 = vsel %vm2869_vm7, %v2903_v52, %v2912_v13  ;;  %v2922_v19 = vsel %vm2869_vm7, %v2912_v13, %v2921_v63  ;;  %v2935_v5 = vrot.slane %v2933_v36, 2  ;;  %v949_v52 = vsel %vm916_vm6, %v946_v51, %v948_v20 }
  0xd9   : > { %v2930_v23 = vor.u32 %v2929_v9, %v2926_v60  ;;  %v1357_v51 = vrot.slane %v5876_v30, 1  ;;  %v5877_v9 = vld [vmem:[%s5926_s19 + $0x18] sm:$0xff]   ;;  %v5880_v30 = vld [vmem:[%s5926_s19 + $0x30] sm:$0xff]  }
  0xda   : > { %v2939_v43 = vor.u32 %v2938_v58, %v2935_v5  ;;  %v2974_v5 = vrot.slane %v2972_v17, 3  ;;  %v5878_v58 = vld [vmem:[%s5926_s19 + $0x20] sm:$0xff]  }
  0xdb   : > { %v2931_v0 = vsel %vm2869_vm7, %v2921_v63, %v2930_v23  ;;  %v2969_v63 = vshrl.u32 %v6402_v54, 16  ;;  %v1358_v36 = vsel %vm916_vm6, %v1356_v3, %v1357_v51  ;;  %v2992_v3 = vrot.slane %v2990_v55, 3 }
  0xdc   : > { %5188 = vmatmul.mubr.msk.bf16.gmra.mrb[20].mxu1 %vm458_vm3, %v941_v32  ;;  %v2945_v32 = vshll.u32 %v6378_v12, 16  ;;  %v2940_v45 = vsel %vm2869_vm7, %v2930_v23, %v2939_v43 }
  0xdd   : > { %5191 = vmatprep.mubr.msk.bf16.mxu1 %vm458_vm3, %v943_v1  ;;  %v951_v1 = vsel %vm916_vm6, %v948_v20, %v950_v8  ;;  %v2971_v20 = vrot.slane %v2969_v63, 2  ;;  %v3008_v63 = vshll.u32 %v6442_v7, 16 }
  0xde   : > { %5358 = vmatmul.mubr.msk.bf16.vlgmr.msra.gmra.mrb[0].mxu0 %vm458_vm3, %v2895_v11  ;;  %v2944_v11 = vrot.slane %v2942_v47, 2  ;;  %v2978_v47 = vshrl.u32 %v6416_v38, 16 }
  0xdf   : > { %5394 = vmatpush3.bf16.msra.mxu0 %v3409_v37  ;;  %5361 = vmatprep.mubr.msk.bf16.mxu0 %vm458_vm3, %v2904_v46  ;;  %v2947_v37 = vrot.slane %v2945_v32, 3  ;;  %v2953_v46 = vrot.slane %v2951_v62, 2  ;;  %v2981_v32 = vshll.u32 %v6416_v38, 16  ;;  %v2987_v62 = vshrl.u32 %v6422_v57, 16 }
  0xe1   : > { %v2948_v13 = vor.u32 %v2947_v37, %v2944_v11  ;;  %v2957_v21 = vor.u32 %v2956_v42, %v2953_v46  ;;  %v2980_v11 = vrot.slane %v2978_v47, 2  ;;  %v2983_v37 = vrot.slane %v2981_v32, 3 }
  0xe2   : > { %v2989_v42 = vrot.slane %v2987_v62, 2  ;;  %v3017_v47 = vshll.u32 %v6455_v56, 16  ;;  %v3026_v62 = vshll.u32 %v6458_v35, 16 }
  0xe3   : > { %v2949_v28 = vsel %vm2869_vm7, %v2939_v43, %v2948_v13  ;;  %v2958_v60 = vsel %vm2869_vm7, %v2948_v13, %v2957_v21  ;;  %v2975_v43 = vor.u32 %v2974_v5, %v2971_v20  ;;  %v2984_v13 = vor.u32 %v2983_v37, %v2980_v11  ;;  %v5882_v5 = vld [vmem:[%s5926_s19 + $0x40] sm:$0xff]  }
  0xe4   : > { %5192 = vmatmul.mubr.msk.bf16.gmra.mrb[24].mxu1 %vm458_vm3, %v945_v2  ;;  %v953_v2 = vsel %vm916_vm6, %v950_v8, %v952_v24  ;;  %v1361_v8 = vrot.slane %v5878_v58, 1  ;;  %v5879_v24 = vld [vmem:[%s5926_s19 + $0x28] sm:$0xff]   ;;  %v3010_v20 = vrot.slane %v3008_v63, 3  ;;  %v1369_v58 = vrot.slane %v5882_v5, 1  ;;  %v3310_v63 = vld [vmem:[%s5926_s19 + $0x10] sm:$0x8] }
  0xe5   : > { %5195 = vmatprep.mubr.msk.bf16.mxu1 %vm458_vm3, %v947_v25  ;;  %v2962_v25 = vrot.slane %v2960_v31, 2  ;;  %v1363_v46 = vrot.slane %v5879_v24, 1  ;;  %v2996_v31 = vshrl.u32 %v6436_v61, 16  ;;  %v3019_v11 = vrot.slane %v3017_v47, 3  ;;  %v5883_v24 = vld [vmem:[%s5926_s19 + $0x48] sm:$0xff]  }
  0xe6   : > { %5362 = vmatmul.mubr.msk.bf16.gmra.mrb[4].mxu0 %vm458_vm3, %v2913_v40  ;;  %v2965_v40 = vrot.slane %v2963_v14, 3  ;;  %v2999_v14 = vshll.u32 %v6436_v61, 16  ;;  %v6593_v37 = vld [vmem:[%s5926_s19 + $0xa0] ss:$0 sps:$4 sm:$0x77]  }
  0xe7   : > { %5365 = vmatprep.mubr.msk.bf16.mxu0 %vm458_vm3, %v2922_v19  ;;  %v1359_v19 = vrot.slane %v5877_v9, 1 }
  0xe8   : > { %v2966_v23 = vor.u32 %v2965_v40, %v2962_v25  ;;  %v3001_v25 = vrot.slane %v2999_v14, 3  ;;  %v3035_v14 = vshll.u32 %v6593_v37, 16 }
  0xec   : > { %5196 = vmatmul.mubr.msk.bf16.gmra.mrb[28].mxu1 %vm458_vm3, %v949_v52  ;;  %v1360_v52 = vsel %vm916_vm6, %v1357_v51, %v1359_v19  ;;  %v1365_v51 = vrot.slane %v5880_v30, 1  ;;  %v5884_v30 = vld [vmem:[%s5926_s19 + $0x50] sm:$0xff]  }
  0xed   : > { %5199 = vmatprep.mubr.msk.bf16.mxu1 %vm458_vm3, %v951_v1  ;;  %v1362_v1 = vsel %vm916_vm6, %v1359_v19, %v1361_v8 }
  0xee   : > { %5366 = vmatmul.mubr.msk.bf16.gmra.mrb[8].mxu0 %vm458_vm3, %v2931_v0  ;;  %v2967_v0 = vsel %vm2869_vm7, %v2957_v21, %v2966_v23  ;;  %v2993_v21 = vor.u32 %v2992_v3, %v2989_v42  ;;  %v1366_v17 = vsel %vm916_vm6, %v1363_v46, %v1365_v51  ;;  %v3028_v3 = vrot.slane %v3026_v62, 3 }
  0xef   : > { %5369 = vmatprep.mubr.msk.bf16.mxu0 %vm458_vm3, %v2940_v45  ;;  %v2976_v45 = vsel %vm2869_vm7, %v2966_v23, %v2975_v43  ;;  %v3014_v23 = vshrl.u32 %v6455_v56, 16  ;;  %v3322_v62 = vrot.slane %v6325_v49, 3 }
  0xf0   : > { %v2994_v40 = vsel %vm2869_vm7, %v2984_v13, %v2993_v21 }
  0xf4   : > { %5200 = vmatmul.mubr.msk.bf16.gmra.mrb[32].mxu1 %vm458_vm3, %v953_v2  ;;  %v1364_v2 = vsel %vm916_vm6, %v1361_v8, %v1363_v46  ;;  %v1371_v46 = vrot.slane %v5883_v24, 1  ;;  %v3326_v24 = vrot.slane %v6343_v39, 3  ;;  %v3328_v39 = vrot.slane %v6360_v44, 3 }
  0xf5   : > { %5205 = vmatprep.mubr.msk.bf16.mxu1 %vm458_vm3, %v1358_v36  ;;  %v2985_v36 = vsel %vm2869_vm7, %v2975_v43, %v2984_v13  ;;  %v3023_v43 = vshrl.u32 %v6458_v35, 16  ;;  %v1778_v44 = vshrl.u32 %v6245_v59, 16 }
  0xf6   : > { %5370 = vmatmul.mubr.msk.bf16.gmra.mrb[12].mxu0 %vm458_vm3, %v2949_v28  ;;  %v2998_v28 = vrot.slane %v2996_v31, 2  ;;  %v3032_v31 = vshrl.u32 %v6593_v37, 16 }
  0xf7   : > { %5373 = vmatprep.mubr.msk.bf16.mxu0 %vm458_vm3, %v2958_v60  ;;  %v5881_v60 = vld [vmem:[%s5926_s19 + $0x38] sm:$0xff]   ;;  %v3025_v42 = vrot.slane %v3023_v43, 2 }
  0xf8   : > { %v1367_v9 = vrot.slane %v5881_v60, 1  ;;  %v3002_v8 = vor.u32 %v3001_v25, %v2998_v28  ;;  %v3037_v28 = vrot.slane %v3035_v14, 3  ;;  %v3330_v14 = vrot.slane %v6366_v18, 3 }
  0xf9   : > { %v1787_v18 = vshrl.u32 %v6251_v26, 16 }
  0xfa   : > { %v1368_v32 = vsel %vm916_vm6, %v1365_v51, %v1367_v9  ;;  %v1370_v55 = vsel %vm916_vm6, %v1367_v9, %v1369_v58  ;;  %v1373_v51 = vrot.slane %v5884_v30, 1  ;;  %v4897_v9 = vcombine.low %v3310_v63, %v6293_v27 }
  0xfb   : > { %v1387_v30 = vrot.slane %v6279_v15, 1 }
  0xfc   : > { %5206 = vmatmul.mubr.msk.bf16.vlgmr.msra.gmra.mrb[0].mxu1 %vm458_vm3, %v1360_v52 }
  0xfd   : > { %5209 = vmatprep.mubr.msk.bf16.mxu1 %vm458_vm3, %v1362_v1  ;;  %5432 = vmatpush3.bf16.msra.mxu1 %v5952_v4  ;;  %v3005_v4 = vshrl.u32 %v6442_v7, 16  ;;  %v3003_v1 = vsel %vm2869_vm7, %v2993_v21, %v3002_v8  ;;  %v3029_v21 = vor.u32 %v3028_v3, %v3025_v42 }
  0xfe   : > { %5374 = vmatmul.mubr.msk.bf16.gmra.mrb[16].mxu0 %vm458_vm3, %v2967_v0  ;;  %v3016_v0 = vrot.slane %v3014_v23, 2 }
  0xff   : > { %5377 = vmatprep.mubr.msk.bf16.mxu0 %vm458_vm3, %v2976_v45  ;;  %v3007_v19 = vrot.slane %v3005_v4, 2  ;;  %v1374_v4 = vsel %vm916_vm6, %v1371_v46, %v1373_v51 }
 0x100   : > { %v3020_v13 = vor.u32 %v3019_v11, %v3016_v0  ;;  %v1383_v11 = vrot.slane %v6263_v6, 1 }
 0x101   : > { %v3011_v52 = vor.u32 %v3010_v20, %v3007_v19  ;;  %v1377_v19 = vrot.slane %v6228_v29, 1 }
 0x102   : > { %v3030_v25 = vsel %vm2869_vm7, %v3020_v13, %v3029_v21 }
 0x103   : > { %v3012_v45 = vsel %vm2869_vm7, %v3002_v8, %v3011_v52  ;;  %v3318_v8 = vrot.slane %v6308_v41, 3  ;;  %v3320_v41 = vrot.slane %v6319_v48, 3  ;;  %v3324_v48 = vrot.slane %v6335_v53, 3 }
 0x104   : > { %5210 = vmatmul.mubr.msk.bf16.gmra.mrb[4].mxu1 %vm458_vm3, %v1364_v2  ;;  %v1372_v2 = vsel %vm916_vm6, %v1369_v58, %v1371_v46  ;;  %v3317_v58 = vrot.slane %v4897_v9, 3  ;;  %v1769_v53 = vshrl.u32 %v6228_v29, 16 }
 0x105   : > { %5213 = vmatprep.mubr.msk.bf16.mxu1 %vm458_vm3, %v1366_v17  ;;  %v3021_v17 = vsel %vm2869_vm7, %v3011_v52, %v3020_v13  ;;  %v1381_v52 = vrot.slane %v6251_v26, 1  ;;  %v3323_v0 = vsel %vm3316_vm8, %v3320_v41, %v3322_v62  ;;  %v3325_v42 = vsel %vm3316_vm8, %v3322_v62, %v3324_v48 }
 0x106   : > { %5378 = vmatmul.mubr.msk.bf16.gmra.mrb[20].mxu0 %vm458_vm3, %v2985_v36  ;;  %v3034_v36 = vrot.slane %v3032_v31, 2  ;;  %v3319_v27 = vsel %vm3316_vm8, %v3317_v58, %v3318_v8  ;;  %v3327_v3 = vsel %vm3316_vm8, %v3324_v48, %v3326_v24  ;;  %v1772_v13 = vshll.u32 %v6228_v29, 16 }
 0x107   : > { %5381 = vmatprep.mubr.msk.bf16.mxu0 %vm458_vm3, %v2994_v40  ;;  %v5885_v40 = vld [vmem:[%s5926_s19 + $0x58] sm:$0xff]   ;;  %v1384_v49 = vsel %vm916_vm6, %v1381_v52, %v1383_v11  ;;  %v3331_v29 = vsel %vm3316_vm8, %v3328_v39, %v3330_v14  ;;  %v1789_v58 = vrot.slane %v1787_v18, 1  ;;  %v1817_v48 = vshll.u32 %v6279_v15, 16 }
 0x108   : > { %v1375_v60 = vrot.slane %v5885_v40, 1  ;;  %v3038_v20 = vor.u32 %v3037_v28, %v3034_v36  ;;  %v1774_v63 = vrot.slane %v1772_v13, 2  ;;  %v1781_v28 = vshll.u32 %v6245_v59, 16 }
 0x109   : > { %v1790_v40 = vshll.u32 %v6251_v26, 16 }
 0x10a   : > { %v1376_v5 = vsel %vm916_vm6, %v1373_v51, %v1375_v60  ;;  %v1378_v23 = vsel %vm916_vm6, %v1375_v60, %v1377_v19  ;;  %v3039_v47 = vsel %vm2869_vm7, %v3029_v21, %v3038_v20  ;;  %v1389_v51 = vrot.slane %v6285_v22, 1 }
 0x10b   : > { %v3332_v60 = vrot.slane %v6378_v12, 3  ;;  %v1780_v20 = vrot.slane %v1778_v44, 1 }
 0x10c   : > { %5214 = vmatmul.mubr.msk.bf16.gmra.mrb[8].mxu1 %vm458_vm3, %v1368_v32  ;;  %v1379_v32 = vrot.slane %v6245_v59, 1  ;;  %v1390_v21 = vsel %vm916_vm6, %v1387_v30, %v1389_v51 }
 0x10d   : > { %5217 = vmatprep.mubr.msk.bf16.mxu1 %vm458_vm3, %v1370_v55  ;;  %v3333_v26 = vsel %vm3316_vm8, %v3330_v14, %v3332_v60  ;;  %v1835_v14 = vshll.u32 %v6299_v33, 16 }
 0x10e   : > { %5382 = vmatmul.mubr.msk.bf16.gmra.mrb[24].mxu0 %vm458_vm3, %v3003_v1  ;;  %v1380_v43 = vsel %vm916_vm6, %v1377_v19, %v1379_v32  ;;  %v1382_v55 = vsel %vm916_vm6, %v1379_v32, %v1381_v52  ;;  %v3321_v1 = vsel %vm3316_vm8, %v3318_v8, %v3320_v41  ;;  %v3334_v19 = vrot.slane %v6384_v34, 3 }
 0x10f   : > { %5385 = vmatprep.mubr.msk.bf16.mxu0 %vm458_vm3, %v3012_v45  ;;  %v1385_v45 = vrot.slane %v6269_v16, 1  ;;  %v1792_v8 = vrot.slane %v1790_v40, 2  ;;  %v1799_v34 = vshll.u32 %v6263_v6, 16  ;;  %v1805_v32 = vshrl.u32 %v6269_v16, 16 }
 0x110   : > { %v3336_v52 = vrot.slane %v6396_v50, 3  ;;  %v1814_v50 = vshrl.u32 %v6279_v15, 16  ;;  %v3352_v40 = vrot.slane %v6593_v37, 3 }
 0x111   : > { %v1386_v46 = vsel %vm916_vm6, %v1383_v11, %v1385_v45  ;;  %v1388_v31 = vsel %vm916_vm6, %v1385_v45, %v1387_v30 }
 0x112   : > { %v1816_v30 = vrot.slane %v1814_v50, 1 }
 0x114   : > { %5218 = vmatmul.mubr.msk.bf16.gmra.mrb[12].mxu1 %vm458_vm3, %v1372_v2  ;;  %v5875_v2 = vld [vmem:[%s5926_s19 + $0x98] ss:$0 sps:$4 sm:$0x11]  }
 0x115   : > { %5221 = vmatprep.mubr.msk.bf16.mxu1 %vm458_vm3, %v1374_v4  ;;  %v1771_v4 = vrot.slane %v1769_v53, 1  ;;  %v1391_v36 = vrot.slane %v5875_v2, 1  ;;  %v3344_v2 = vrot.slane %v6436_v61, 3  ;;  %v3348_v61 = vrot.slane %v6455_v56, 3 }
 0x116   : > { %5386 = vmatmul.mubr.msk.bf16.gmra.mrb[28].mxu0 %vm458_vm3, %v3021_v17  ;;  %v3329_v17 = vsel %vm3316_vm8, %v3326_v24, %v3328_v39  ;;  %v1826_v24 = vshll.u32 %v6285_v22, 16  ;;  %v3661_v56 = vlaneseq }
 0x117   : > { %5389 = vmatprep.mubr.msk.bf16.mxu0 %vm458_vm3, %v3030_v25  ;;  %v1775_v25 = vor.u32 %v1774_v63, %v1771_v4  ;;  %v1392_v9 = vsel %vm916_vm6, %v1389_v51, %v1391_v36  ;;  %v1819_v51 = vrot.slane %v1817_v48, 2  ;;  %v3346_v4 = vrot.slane %v6442_v7, 3 }
 0x118   : > { %v1828_v13 = vrot.slane %v1826_v24, 2 }
 0x119   : > { %v1776_v59 = vsel %vm1669_vm4, %v6133_v10, %v1775_v25  ;;  %v1808_v10 = vshll.u32 %v6269_v16, 16  ;;  %v3337_v16 = vsel %vm3316_vm8, %v3334_v19, %v3336_v52 }
 0x11c   : > { %5222 = vmatmul.mubr.msk.bf16.gmra.mrb[16].mxu1 %vm458_vm3, %v1376_v5  ;;  %v1783_v5 = vrot.slane %v1781_v28, 2  ;;  %v3350_v28 = vrot.slane %v6458_v35, 3 }
 0x11d   : > { %5225 = vmatprep.mubr.msk.bf16.mxu1 %vm458_vm3, %v1378_v23  ;;  %v3335_v23 = vsel %vm3316_vm8, %v3332_v60, %v3334_v19 }
 0x11e   : > { %5390 = vmatmul.mubr.msk.bf16.gmra.mrb[32].mxu0 %vm458_vm3, %v3039_v47  ;;  %v1784_v12 = vor.u32 %v1783_v5, %v1780_v20  ;;  %v1796_v47 = vshrl.u32 %v6263_v6, 16  ;;  %v1807_v6 = vrot.slane %v1805_v32, 1  ;;  %v3351_v18 = vsel %vm3316_vm8, %v3348_v61, %v3350_v28 }
 0x11f   : > { %5395 = vmatprep.mubr.msk.bf16.mxu0 %vm458_vm3, %v3319_v27  ;;  %v1793_v27 = vor.u32 %v1792_v8, %v1789_v58  ;;  %v3353_v60 = vsel %vm3316_vm8, %v3350_v28, %v3352_v40 }
 0x120   : > { %v1785_v41 = vsel %vm1669_vm4, %v1775_v25, %v1784_v12  ;;  %v1798_v62 = vrot.slane %v1796_v47, 1  ;;  %v3349_v25 = vsel %vm3316_vm8, %v3346_v4, %v3348_v61 }
 0x124   : > { %5226 = vmatmul.mubr.msk.bf16.gmra.mrb[20].mxu1 %vm458_vm3, %v1380_v43  ;;  %v3338_v43 = vrot.slane %v6402_v54, 3 }
 0x125   : > { %5229 = vmatprep.mubr.msk.bf16.mxu1 %vm458_vm3, %v1382_v55  ;;  %v1801_v55 = vrot.slane %v1799_v34, 2 }
 0x126   : > { %5396 = vmatmul.mubr.msk.bf16.vlgmr.msra.gmra.mrb[0].mxu0 %vm458_vm3, %v3321_v1  ;;  %v1794_v1 = vsel %vm1669_vm4, %v1784_v12, %v1793_v27  ;;  %v3339_v11 = vsel %vm3316_vm8, %v3336_v52, %v3338_v43 }
 0x127   : > { %5399 = vmatprep.mubr.msk.bf16.mxu0 %vm458_vm3, %v3323_v0  ;;  %v1810_v0 = vrot.slane %v1808_v10, 2  ;;  %v1802_v45 = vor.u32 %v1801_v55, %v1798_v62 }
 0x129   : > { %v1811_v54 = vor.u32 %v1810_v0, %v1807_v6 }
 0x12b   : > { %v1812_v53 = vsel %vm1669_vm4, %v1802_v45, %v1811_v54 }
 0x12c   : > { %5230 = vmatmul.mubr.msk.bf16.gmra.mrb[24].mxu1 %vm458_vm3, %v1384_v49  ;;  %v1823_v49 = vshrl.u32 %v6285_v22, 16 }
 0x12d   : > { %5233 = vmatprep.mubr.msk.bf16.mxu1 %vm458_vm3, %v1386_v46  ;;  %v3340_v46 = vrot.slane %v6416_v38, 3  ;;  %v1832_v38 = vshrl.u32 %v6299_v33, 16  ;;  %v3347_v33 = vsel %vm3316_vm8, %v3344_v2, %v3346_v4 }
 0x12e   : > { %5400 = vmatmul.mubr.msk.bf16.gmra.mrb[4].mxu0 %vm458_vm3, %v3325_v42  ;;  %v1803_v42 = vsel %vm1669_vm4, %v1793_v27, %v1802_v45  ;;  %v1825_v15 = vrot.slane %v1823_v49, 1 }
 0x12f   : > { %5403 = vmatprep.mubr.msk.bf16.mxu0 %vm458_vm3, %v3327_v3  ;;  %v3342_v3 = vrot.slane %v6422_v57, 3  ;;  %v3341_v22 = vsel %vm3316_vm8, %v3338_v43, %v3340_v46  ;;  %v1834_v63 = vrot.slane %v1832_v38, 1 }
 0x130   : > { %v1829_v57 = vor.u32 %v1828_v13, %v1825_v15 }
 0x131   : > { %v3343_v39 = vsel %vm3316_vm8, %v3340_v46, %v3342_v3  ;;  %v3345_v36 = vsel %vm3316_vm8, %v3342_v3, %v3344_v2 }
 0x134   : > { %5234 = vmatmul.mubr.msk.bf16.gmra.mrb[28].mxu1 %vm458_vm3, %v1388_v31  ;;  %v1820_v31 = vor.u32 %v1819_v51, %v1816_v30 }
 0x135   : > { %5237 = vmatprep.mubr.msk.bf16.mxu1 %vm458_vm3, %v1390_v21 }
 0x136   : > { %5404 = vmatmul.mubr.msk.bf16.gmra.mrb[8].mxu0 %vm458_vm3, %v3329_v17  ;;  %v1821_v21 = vsel %vm1669_vm4, %v1811_v54, %v1820_v31  ;;  %v1837_v17 = vrot.slane %v1835_v14, 2 }
 0x137   : > { %5407 = vmatprep.mubr.msk.bf16.mxu0 %vm458_vm3, %v3331_v29  ;;  %v1830_v29 = vsel %vm1669_vm4, %v1820_v31, %v1829_v57 }
 0x138   : > { %v1838_v44 = vor.u32 %v1837_v17, %v1834_v63 }
 0x13a   : > { %v1839_v7 = vsel %vm1669_vm4, %v1829_v57, %v1838_v44 }
 0x13c   : > { %5238 = vmatmul.mubr.msk.bf16.gmra.mrb[32].mxu1 %vm458_vm3, %v1392_v9  ;;  %v6729_v9 = vshrl.u32 %v3661_v56, 7 }
 0x13d   : > { %5263 = vmatprep.mubr.msk.bf16.mxu1 %vm458_vm3, %v1776_v59 }
 0x13e   : > { %5408 = vmatmul.mubr.msk.bf16.gmra.mrb[12].mxu0 %vm458_vm3, %v3333_v26  ;;  %v3664_v35 = vadd.s32 16, %v6729_v9  ;;  %v6736_v5 = vmul.u32.u64.low 3817748708, %v6729_v9  ;;  %v6737_v59 = vmul.u32.u64.high 3817748708, %v6729_v9, %v6736_v5  ;;  %v3665_v58 = vadd.s32 24, %v6729_v9 }
 0x13f   : > { %5411 = vmatprep.mubr.msk.bf16.mxu0 %vm458_vm3, %v3335_v23  ;;  %v3663_v37 = vadd.s32 8, %v6729_v9  ;;  %v3668_v34 = vadd.s32 48, %v6729_v9  ;;  %v6751_v32 = vadd.s32 32, %v6729_v9  ;;  %v6757_v43 = vadd.s32 56, %v6729_v9 }
 0x140   : > { %v6732_v19 = vmul.u32.u64.low 3817748708, %v3664_v35  ;;  %v6733_v20 = vmul.u32.u64.high 3817748708, %v3664_v35, %v6732_v19  ;;  %v6741_v8 = vmul.u32.u64.low 3817748708, %v3665_v58  ;;  %v6742_v26 = vmul.u32.u64.high 3817748708, %v3665_v58, %v6741_v8 }
 0x141   : > { %v6745_v12 = vmul.u32.u64.low 3817748708, %v3663_v37  ;;  %v6746_v47 = vmul.u32.u64.high 3817748708, %v3663_v37, %v6745_v12  ;;  %v3704_v27 = vshrl.u32 %v6737_v59, 4  ;;  %v6773_v45 = vadd.s32 64, %v6729_v9 }
 0x142   : > { %v3726_v23 = vshrl.u32 %v6733_v20, 4  ;;  %v3737_v55 = vshrl.u32 %v6742_v26, 4  ;;  %v6764_v6 = vmul.u32.u64.low 3817748708, %v6751_v32  ;;  %v6765_v0 = vmul.u32.u64.high 3817748708, %v6751_v32, %v6764_v6 }
 0x143   : > { %v3705_v62 = vmul.u32 18, %v3704_v27  ;;  %v3715_v50 = vshrl.u32 %v6746_v47, 4  ;;  %v6777_v48 = vmul.u32.u64.low 3817748708, %v6757_v43  ;;  %v6778_v54 = vmul.u32.u64.high 3817748708, %v6757_v43, %v6777_v48 }
 0x144   : > { %5264 = vmatmul.mubr.msk.bf16.vlgmr.msra.gmra.mrb[20].mxu1 %vm458_vm3, %v1785_v41  ;;  %v3727_v10 = vmul.u32 18, %v3726_v23  ;;  %v6753_v52 = vmul.u32.u64.low 3817748708, %v3668_v34  ;;  %v6754_v41 = vmul.u32.u64.high 3817748708, %v3668_v34, %v6753_v52  ;;  %v6792_v51 = vadd.s32 88, %v6729_v9 }
 0x145   : > { %5267 = vmatprep.mubr.msk.bf16.mxu1 %vm458_vm3, %v1794_v1  ;;  %v6761_v1 = vadd.s32 40, %v6729_v9  ;;  %v6781_v49 = vsub.s32 %v6729_v9, %v3705_v62  ;;  %v3738_v24 = vmul.u32 18, %v3737_v55  ;;  %v3716_v13 = vmul.u32 18, %v3715_v50 }
 0x146   : > { %5412 = vmatmul.mubr.msk.bf16.gmra.mrb[16].mxu0 %vm458_vm3, %v3337_v16  ;;  %v6768_v16 = vadd.s32 80, %v6729_v9  ;;  %v3748_v14 = vshrl.u32 %v6765_v0, 4  ;;  %v6814_v57 = vmul.u32.u64.low 3817748708, %v6792_v51  ;;  %v6815_v2 = vmul.u32.u64.high 3817748708, %v6792_v51, %v6814_v57 }
 0x147   : > { %5415 = vmatprep.mubr.msk.bf16.mxu0 %vm458_vm3, %v3339_v11  ;;  %v6770_v11 = vsub.s32 %v3664_v35, %v3727_v10  ;;  %vm4094_vm11 = vcmp.ne.s32.totalorder %v6781_v49, 0  ;;  %vm4130_vm12 = vcmp.lt.s32.totalorder %v6781_v49, 0  ;;  %v6806_v31 = vsub.s32 %v3665_v58, %v3738_v24 }
 0x148   : > { %v6788_v3 = vmul.u32.u64.low 3817748708, %v6768_v16  ;;  %v6789_v30 = vmul.u32.u64.high 3817748708, %v6768_v16, %v6788_v3  ;;  %v6821_v4 = vadd.s32 18, %v6781_v49  ;;  %vm6823_vm14 = vmand %vm4130_vm12, %vm4094_vm11  ;;  %v6827_v17 = vsub.s32 %v3663_v37, %v3716_v13 }
 0x149   : > { %vm4096_vm9 = vcmp.ne.s32.totalorder %v6770_v11, 0  ;;  %vm4132_vm10 = vcmp.lt.s32.totalorder %v6770_v11, 0  ;;  %vm4097_vm15 = vcmp.ne.s32.totalorder %v6806_v31, 0  ;;  %vm4133_vm0 = vcmp.lt.s32.totalorder %v6806_v31, 0 }
 0x14a   : > { %vm6808_vm13 = vmand %vm4132_vm10, %vm4096_vm9  ;;  %v3814_v28 = vshrl.u32 %v6789_v30, 4  ;;  %v6854_v35 = vadd.s32 96, %v6729_v9  ;;  %vm4095_vm2 = vcmp.ne.s32.totalorder %v6827_v17, 0  ;;  %v6869_v8 = vadd.s32 120, %v6729_v9 }
 0x14b   : > { %vm6856_vm1 = vmand %vm4133_vm0, %vm4097_vm15  ;;  %v6872_v26 = vadd.s32 18, %v6827_v17  ;;  %v3825_v47 = vshrl.u32 %v6815_v2, 4  ;;  %v6902_v0 = vadd.s32 104, %v6729_v9  ;;  %v6917_v24 = vadd.s32 144, %v6729_v9 }
 0x14c   : > { %5268 = vmatmul.mubr.msk.bf16.gmra.mrb[24].mxu1 %vm458_vm3, %v1803_v42  ;;  %v6784_v46 = vmul.u32.u64.low 3817748708, %v6761_v1  ;;  %v6785_v42 = vmul.u32.u64.high 3817748708, %v6761_v1, %v6784_v46  ;;  %v3815_v12 = vmul.u32 18, %v3814_v28  ;;  %v8562_v19 = vmov 0 }
 0x14d   : > { %5271 = vmatprep.mubr.msk.bf16.mxu1 %vm458_vm3, %v1812_v53  ;;  %v6797_v53 = vmul.u32.u64.low 3817748708, %v6773_v45  ;;  %v6798_v15 = vmul.u32.u64.high 3817748708, %v6773_v45, %v6797_v53  ;;  %v6883_v10 = vmul.u32.u64.low 3817748708, %v6854_v35  ;;  %v6884_v52 = vmul.u32.u64.high 3817748708, %v6854_v35, %v6883_v10 }
 0x14e   : > { %5416 = vmatmul.mubr.msk.bf16.gmra.mrb[20].mxu0 %vm458_vm3, %v3341_v22  ;;  %v3770_v22 = vshrl.u32 %v6754_v41, 4  ;;  %v3759_v61 = vshrl.u32 %v6785_v42, 4  ;;  %v6898_v55 = vmul.u32.u64.low 3817748708, %v6869_v8  ;;  %v6899_v6 = vmul.u32.u64.high 3817748708, %v6869_v8, %v6898_v55 }
 0x14f   : > { %5419 = vmatprep.mubr.msk.bf16.mxu0 %vm458_vm3, %v3343_v39  ;;  %v6802_v39 = vadd.s32 18, %v6770_v11  ;;  %v3792_v56 = vshrl.u32 %v6798_v15, 4  ;;  %v6906_v50 = vsub.s32 %v6768_v16, %v3815_v12  ;;  %v3826_v48 = vmul.u32 18, %v3825_v47 }
 0x150   : > { %v3760_v37 = vmul.u32 18, %v3759_v61  ;;  %v6923_v46 = vadd.s32 128, %v6729_v9  ;;  %v8457_v47 = vmov 0  ;;  %v7098_v12 = vadd.s32 176, %v6729_v9 }
 0x151   : > { %v3793_v27 = vmul.u32 18, %v3792_v56  ;;  %8435 = vst [vmem:[#allocation6_spill] sm:$0xff] %v6906_v50  ;;  %vm4104_vm0 = vcmp.ne.s32.totalorder %v6906_v50, 0  ;;  %v6950_v53 = vsub.s32 %v6792_v51, %v3826_v48  ;;  %v8444_v51 = vmov 0 }
 0x152   : > { %v6895_v62 = vsub.s32 %v6761_v1, %v3760_v37  ;;  %v8452_v56 = vmov 0 }
 0x153   : > { %v6914_v1 = vsub.s32 %v6773_v45, %v3793_v27  ;;  %v6936_v45 = vmul.u32.u64.low 3817748708, %v6902_v0  ;;  %v6937_v3 = vmul.u32.u64.high 3817748708, %v6902_v0, %v6936_v45  ;;  %8441 = vst [vmem:[#allocation8_spill] sm:$0xff] %v6950_v53 }
 0x154   : > { %5272 = vmatmul.mubr.msk.bf16.gmra.mrb[28].mxu1 %vm458_vm3, %v1821_v21  ;;  %v6818_v21 = vadd.s32 72, %v6729_v9  ;;  %8434 = vst [vmem:[#allocation5_spill] sm:$0xff] %v6895_v62  ;;  %vm4099_vm11 = vcmp.ne.s32.totalorder %v6895_v62, 0  ;;  %vm4135_vm12 = vcmp.lt.s32.totalorder %v6895_v62, 0  ;;  %v6991_v28 = vadd.s32 18, %v6895_v62 }
 0x155   : > { %5275 = vmatprep.mubr.msk.bf16.mxu1 %vm458_vm3, %v1830_v29  ;;  %v3771_v29 = vmul.u32 18, %v3770_v22  ;;  %8436 = vst [vmem:[#allocation7_spill] sm:$0xff] %v6914_v1  ;;  %v3836_v22 = vshrl.u32 %v6884_v52, 4 }
 0x156   : > { %5420 = vmatmul.mubr.msk.bf16.gmra.mrb[24].mxu0 %vm458_vm3, %v3345_v36  ;;  %v3781_v36 = vshrl.u32 %v6778_v54, 4  ;;  %8451 = vst [vmem:[#allocation12_spill] sm:$0xff] %v6991_v28 }
 0x157   : > { %5423 = vmatprep.mubr.msk.bf16.mxu0 %vm458_vm3, %v3347_v33  ;;  %v6831_v33 = vadd.s32 112, %v6729_v9  ;;  %v6860_v20 = vsub.s32 %v3668_v34, %v3771_v29  ;;  %v3837_v10 = vmul.u32 18, %v3836_v22 }
 0x158   : > { %v3782_v5 = vmul.u32 18, %v3781_v36  ;;  %v6976_v29 = vmul.u32.u64.low 3817748708, %v6923_v46  ;;  %v6977_v36 = vmul.u32.u64.high 3817748708, %v6923_v46, %v6976_v29 }
 0x159   : > { %8431 = vst [vmem:[#allocation2_spill] sm:$0xff] %v6860_v20  ;;  %v6863_v59 = vmul.u32.u64.low 3817748708, %v6831_v33  ;;  %v6864_v58 = vmul.u32.u64.high 3817748708, %v6831_v33, %v6863_v59  ;;  %vm4100_vm4 = vcmp.ne.s32.totalorder %v6860_v20, 0  ;;  %vm4136_vm5 = vcmp.lt.s32.totalorder %v6860_v20, 0 }
 0x15a   : > { %v6892_v41 = vsub.s32 %v6757_v43, %v3782_v5  ;;  %vm6943_vm15 = vmand %vm4136_vm5, %vm4100_vm4  ;;  %vm4102_vm4 = vcmp.ne.s32.totalorder %v6914_v1, 0  ;;  %v7006_v5 = vadd.s32 18, %v6906_v50  ;;  %v7009_v59 = vadd.s32 18, %v6914_v1 }
 0x15b   : > { %v3858_v16 = vshrl.u32 %v6864_v58, 4 }
 0x15c   : > { %5276 = vmatmul.mubr.msk.bf16.gmra.mrb[32].mxu1 %vm458_vm3, %v1839_v7  ;;  %v3749_v7 = vmul.u32 18, %v3748_v14  ;;  %8433 = vst [vmem:[#allocation4_spill] sm:$0xff] %v6892_v41  ;;  %vm4101_vm8 = vcmp.ne.s32.totalorder %v6892_v41, 0  ;;  %vm4137_vm9 = vcmp.lt.s32.totalorder %v6892_v41, 0  ;;  %v6980_v61 = vadd.s32 18, %v6892_v41  ;;  %8455 = vst [vmem:[#allocation14_spill] sm:$0xff] %v7006_v5 }
 0x15d   : > { %v6963_v14 = vmul.u32.u64.low 3817748708, %v6917_v24  ;;  %v6964_v57 = vmul.u32.u64.high 3817748708, %v6917_v24, %v6963_v14  ;;  %vm6970_vm5 = vmand %vm4137_vm9, %vm4101_vm8  ;;  %v3859_v2 = vmul.u32 18, %v3858_v16  ;;  %8456 = vst [vmem:[#allocation15_spill] sm:$0xff] %v7009_v59  ;;  %vm4105_vm9 = vcmp.ne.s32.totalorder %v6950_v53, 0 }
 0x15e   : > { %5424 = vmatmul.mubr.msk.bf16.gmra.mrb[28].mxu0 %vm458_vm3, %v3349_v25  ;;  %v6875_v23 = vsub.s32 %v6751_v32, %v3749_v7  ;;  %v6889_v32 = vadd.s32 18, %v6860_v20  ;;  %v8445_v51 = vsel %vm6970_vm5, 4294967295, %v8444_v51  ;;  %8447 = vst [vmem:[#allocation10_spill] sm:$0xff] %v6980_v61  ;;  %v8448_v7 = vmov 0 }
 0x15f   : > { %5427 = vmatprep.mubr.msk.bf16.mxu0 %vm458_vm3, %v3351_v18  ;;  %v6842_v25 = vmul.u32.u64.low 3817748708, %v6818_v21  ;;  %v6843_v18 = vmul.u32.u64.high 3817748708, %v6818_v21, %v6842_v25  ;;  %8446 = vst [vmem:[#allocation9_spill] sm:$0xff] %v8445_v51  ;;  %v7044_v48 = vsub.s32 %v6831_v33, %v3859_v2  ;;  %v7088_v2 = vsub.s32 %v6854_v35, %v3837_v10 }
 0x160   : > { %8432 = vst [vmem:[#allocation3_spill] sm:$0xff] %v6889_v32  ;;  %vm4098_vm6 = vcmp.ne.s32.totalorder %v6875_v23, 0  ;;  %vm4134_vm7 = vcmp.lt.s32.totalorder %v6875_v23, 0  ;;  %v6911_v43 = vadd.s32 18, %v6875_v23  ;;  %v3869_v25 = vshrl.u32 %v6899_v6, 4 }
 0x161   : > { %v3803_v54 = vshrl.u32 %v6843_v18, 4  ;;  %v6995_v18 = vadd.s32 152, %v6729_v9  ;;  %v7041_v6 = vadd.s32 18, %v6950_v53  ;;  %8461 = vst [vmem:[#allocation18_spill] sm:$0xff] %v7044_v48  ;;  %v3902_v29 = vshrl.u32 %v6964_v57, 4 }
 0x162   : > { %v3870_v45 = vmul.u32 18, %v3869_v25  ;;  %v3880_v25 = vshrl.u32 %v6977_v36, 4  ;;  %v7109_v57 = vadd.s32 18, %v7044_v48  ;;  %v7115_v36 = vadd.s32 184, %v6729_v9 }
 0x163   : > { %v3804_v15 = vmul.u32 18, %v3803_v54  ;;  %8460 = vst [vmem:[#allocation17_spill] sm:$0xff] %v7041_v6  ;;  %v7047_v54 = vadd.s32 136, %v6729_v9  ;;  %v7061_v22 = vmul.u32.u64.low 3817748708, %v6995_v18  ;;  %v7062_v33 = vmul.u32.u64.high 3817748708, %v6995_v18, %v7061_v22 }
 0x164   : > { %v7101_v55 = vsub.s32 %v6869_v8, %v3870_v45  ;;  %8466 = vst [vmem:[#allocation21_spill] sm:$0xff] %v7109_v57  ;;  %v3903_v8 = vmul.u32 18, %v3902_v29  ;;  %v7122_v45 = vadd.s32 168, %v6729_v9  ;;  %v3881_v40 = vmul.u32 18, %v3880_v25 }
 0x165   : > { %v7032_v27 = vsub.s32 %v6818_v21, %v3804_v15  ;;  %v8462_v21 = vmov 0  ;;  %v3847_v15 = vshrl.u32 %v6937_v3, 4  ;;  %v7112_v3 = vadd.s32 160, %v6729_v9 }
 0x166   : > { %5428 = vmatmul.mubr.msk.bf16.gmra.mrb[32].mxu0 %vm458_vm3, %v3353_v60  ;;  %v6850_v60 = vadd.s32 18, %v6806_v31  ;;  %vm4131_vm3 = vcmp.lt.s32.totalorder %v6827_v17, 0  ;;  %8465 = vst [vmem:[#allocation20_spill] sm:$0xff] %v7101_v55  ;;  %v7104_v35 = vmul.u32.u64.low 3817748708, %v7047_v54  ;;  %v7105_v10 = vmul.u32.u64.high 3817748708, %v7047_v54, %v7104_v35 }
 0x167   : > { %vm6929_vm10 = vmand %vm4131_vm3, %vm4095_vm2  ;;  %vm4140_vm2 = vcmp.lt.s32.totalorder %v6906_v50, 0  ;;  %v7085_v22 = vadd.s32 18, %v7032_v27  ;;  %v3848_v37 = vmul.u32 18, %v3847_v15  ;;  %v7127_v35 = vadd.s32 18, %v7088_v2 }
 0x168   : > { %vm6956_vm3 = vmand %vm4134_vm7, %vm4098_vm6  ;;  %vm4138_vm6 = vcmp.lt.s32.totalorder %v6914_v1, 0  ;;  %v3913_v29 = vshrl.u32 %v7062_v33, 4  ;;  %v7141_v50 = vadd.s32 208, %v6729_v9  ;;  %v7161_v33 = vadd.s32 192, %v6729_v9 }
 0x169   : > { %vm6986_vm7 = vmand %vm4135_vm12, %vm4099_vm11  ;;  %vm4141_vm11 = vcmp.lt.s32.totalorder %v6950_v53, 0  ;;  %v7130_v44 = vmul.u32.u64.low 3817748708, %v7098_v12  ;;  %v7131_v53 = vmul.u32.u64.high 3817748708, %v7098_v12, %v7130_v44  ;;  %v8554_v63 = vsel %vm6856_vm1, %v6850_v60, %v6806_v31 }
 0x16a   : > { %v8449_v7 = vsel %vm6986_vm7, 4294967295, %v8448_v7  ;;  %vm7001_vm8 = vmand %vm4140_vm2, %vm4104_vm0  ;;  %vm4103_vm2 = vcmp.ne.s32.totalorder %v7032_v27, 0  ;;  %v7191_v1 = vmul.u32.u64.low 3817748708, %v7141_v50  ;;  %v7192_v59 = vmul.u32.u64.high 3817748708, %v7141_v50, %v7191_v1 }
 0x16b   : > { %8450 = vst [vmem:[#allocation11_spill] sm:$0xff] %v8449_v7  ;;  %v8453_v56 = vsel %vm7001_vm8, 4294967295, %v8452_v56  ;;  %vm7027_vm12 = vmand %vm4138_vm6, %vm4102_vm4  ;;  %vm4139_vm4 = vcmp.lt.s32.totalorder %v7032_v27, 0  ;;  %vm8478_vm6 = vcmp.lt.s32.totalorder %v7044_v48, 0  ;;  %vm8483_vm8 = vcmp.ne.s32.totalorder %v7088_v2, 0 }
 0x16c   : > { %8454 = vst [vmem:[#allocation13_spill] sm:$0xff] %v8453_v56  ;;  %v8458_v47 = vsel %vm7027_vm12, 4294967295, %v8457_v47  ;;  %vm7055_vm0 = vmand %vm4141_vm11, %vm4105_vm9  ;;  %v7146_v25 = vmul.u32.u64.low 3817748708, %v7112_v3  ;;  %v7147_v56 = vmul.u32.u64.high 3817748708, %v7112_v3, %v7146_v25  ;;  %vm8477_vm9 = vcmp.ne.s32.totalorder %v7044_v48, 0 }
 0x16d   : > { %8459 = vst [vmem:[#allocation16_spill] sm:$0xff] %v8458_v47  ;;  %v8463_v21 = vsel %vm7055_vm0, 4294967295, %v8462_v21  ;;  %v7168_v25 = vsub.s32 %v6923_v46, %v3881_v40  ;;  %vm7183_vm11 = vmand %vm4139_vm4, %vm4103_vm2  ;;  %v3914_v46 = vmul.u32 18, %v3913_v29  ;;  %v8479_v47 = vmov 0 }
 0x16e   : > { %8464 = vst [vmem:[#allocation19_spill] sm:$0xff] %v8463_v21  ;;  %v7137_v21 = vsub.s32 %v6902_v0, %v3848_v37  ;;  %v7157_v0 = vmul.u32.u64.low 3817748708, %v7122_v45  ;;  %v7158_v37 = vmul.u32.u64.high 3817748708, %v7122_v45, %v7157_v0  ;;  %vm7200_vm0 = vmand %vm8478_vm6, %vm8477_vm9  ;;  %vm8484_vm12 = vcmp.lt.s32.totalorder %v7088_v2, 0 }
 0x16f   : > { %v8474_v0 = vmov 0  ;;  %v8480_v47 = vsel %vm7200_vm0, 4294967295, %v8479_v47  ;;  %vm7216_vm7 = vmand %vm8484_vm12, %vm8483_vm8  ;;  %v8485_v1 = vmov 0  ;;  %vm8488_vm9 = vcmp.ne.s32.totalorder %v7101_v55, 0 }
 0x170   : > { %8470 = vst [vmem:[#allocation25_spill] sm:$0xff] %v7137_v21  ;;  %v8475_v0 = vsel %vm7183_vm11, 4294967295, %v8474_v0  ;;  %v7188_v40 = vadd.s32 18, %v7137_v21  ;;  %8481 = vst [vmem:[#allocation30_spill] sm:$0xff] %v8480_v47  ;;  %v8486_v1 = vsel %vm7216_vm7, 4294967295, %v8485_v1  ;;  %vm8489_vm4 = vcmp.lt.s32.totalorder %v7101_v55, 0 }
 0x171   : > { %vm7232_vm2 = vmand %vm8489_vm4, %vm8488_vm9  ;;  %vm8494_vm8 = vcmp.ne.s32.totalorder %v7137_v21, 0  ;;  %vm8495_vm12 = vcmp.lt.s32.totalorder %v7137_v21, 0  ;;  %vm8505_vm4 = vcmp.ne.s32.totalorder %v7168_v25, 0  ;;  %v8569_v60 = vmov 0 }
 0x172   : > { %vm7249_vm6 = vmand %vm8495_vm12, %vm8494_vm8 }
 0x1cf   : > { %v7013_v58 = vpop.f32.mrb[0].mxu1 }
 0x1d0   : > { %v7034_v52 = vpop.f32.mrb[1].mxu1 }
 0x1d1   : > { %v7049_v16 = vpop.f32.mrb[2].mxu1 }
 0x1d2   : > { %v7064_v14 = vpop.f32.mrb[3].mxu1 }
 0x1d7   : > { %v7117_v34 = vpop.f32.mrb[4].mxu1 }
 0x1d8   : > { %8467 = vst [vmem:[#allocation22_spill] sm:$0xff] %v7117_v34  ;;  %v7124_v15 = vpop.f32.mrb[5].mxu1  ;;  %v7207_v29 = vmul.u32.u64.low 3817748708, %v7161_v33  ;;  %v7208_v34 = vmul.u32.u64.high 3817748708, %v7161_v33, %v7207_v29 }
 0x1d9   : > { %8468 = vst [vmem:[#allocation23_spill] sm:$0xff] %v7124_v15  ;;  %v7133_v6 = vpop.f32.mrb[6].mxu1  ;;  %v7150_v44 = vmul.u32.u64.low 3817748708, %v7115_v36  ;;  %v7151_v15 = vmul.u32.u64.high 3817748708, %v7115_v36, %v7150_v44  ;;  %v8490_v29 = vmov 0 }
 0x1da   : > { %8469 = vst [vmem:[#allocation24_spill] sm:$0xff] %v7133_v6  ;;  %v7143_v5 = vpop.f32.mrb[7].mxu1  ;;  %v7154_v6 = vsub.s32 %v6917_v24, %v3903_v8  ;;  %v7171_v44 = vadd.s32 216, %v6729_v9  ;;  %v3891_v24 = vshrl.u32 %v7105_v10, 4  ;;  %v7177_v8 = vadd.s32 200, %v6729_v9 }
 0x1db   : > { %8471 = vst [vmem:[#allocation26_spill] sm:$0xff] %v7143_v5  ;;  %v7165_v5 = vadd.s32 18, %v7101_v55  ;;  %v8491_v29 = vsel %vm7232_vm2, 4294967295, %v8490_v29  ;;  %vm8506_vm2 = vcmp.lt.s32.totalorder %v7168_v25, 0  ;;  %v3968_v21 = vshrl.u32 %v7208_v34, 4 }
 0x1dc   : > { %8472 = vst [vmem:[#allocation27_spill] sm:$0xff] %v7154_v6  ;;  %v7223_v28 = vmul.u32.u64.low 3817748708, %v7171_v44  ;;  %v7224_v7 = vmul.u32.u64.high 3817748708, %v7171_v44, %v7223_v28  ;;  %8492 = vst [vmem:[#allocation33_spill] sm:$0xff] %v8491_v29  ;;  %v7237_v61 = vmul.u32.u64.low 3817748708, %v7177_v8  ;;  %v7238_v51 = vmul.u32.u64.high 3817748708, %v7177_v8, %v7237_v61 }
 0x1dd   : > { %8473 = vst [vmem:[#allocation28_spill] sm:$0xff] %v7165_v5  ;;  %v8496_v28 = vmov 0  ;;  %v3924_v61 = vshrl.u32 %v7147_v56, 4  ;;  %vm8499_vm9 = vcmp.ne.s32.totalorder %v7154_v6, 0  ;;  %vm8500_vm8 = vcmp.lt.s32.totalorder %v7154_v6, 0 }
 0x1de   : > { %v8497_v28 = vsel %vm7249_vm6, 4294967295, %v8496_v28  ;;  %vm7280_vm12 = vmand %vm8500_vm8, %vm8499_vm9  ;;  %v7285_v32 = vadd.s32 18, %v7154_v6  ;;  %v3990_v56 = vshrl.u32 %v7192_v59, 4  ;;  %v4001_v34 = vshrl.u32 %v7224_v7, 4 }
 0x1df   : > { %v7194_v10 = vpop.f32.mrb[8].mxu1  ;;  %vm7298_vm9 = vmand %vm8506_vm2, %vm8505_vm4 }
 0x1e0   : > { %8476 = vst [vmem:[#allocation29_spill] sm:$0xff] %v7194_v10  ;;  %v7210_v62 = vpop.f32.mrb[9].mxu1  ;;  %v3946_v10 = vshrl.u32 %v7131_v53, 4  ;;  %v7241_v53 = vadd.s32 240, %v6729_v9  ;;  %8504 = vst [vmem:[#allocation37_spill] sm:$0xff] %v7285_v32 }
 0x1e1   : > { %8482 = vst [vmem:[#allocation31_spill] sm:$0xff] %v7210_v62  ;;  %v7226_v41 = vpop.f32.mrb[10].mxu1  ;;  %v3892_v62 = vmul.u32 18, %v3891_v24  ;;  %v7255_v24 = vsub.s32 %v6995_v18, %v3914_v46  ;;  %v3935_v46 = vshrl.u32 %v7158_v37, 4  ;;  %v7288_v18 = vadd.s32 18, %v7168_v25 }
 0x1e2   : > { %8487 = vst [vmem:[#allocation32_spill] sm:$0xff] %v7226_v41  ;;  %v7243_v20 = vpop.f32.mrb[11].mxu1  ;;  %v3957_v41 = vshrl.u32 %v7151_v15, 4  ;;  %v8501_v15 = vmov 0  ;;  %v3947_v37 = vmul.u32 18, %v3946_v10  ;;  %v3925_v10 = vmul.u32 18, %v3924_v61 }
 0x1e3   : > { %8493 = vst [vmem:[#allocation34_spill] sm:$0xff] %v7243_v20  ;;  %8498 = vst [vmem:[#allocation35_spill] sm:$0xff] %v7255_v24  ;;  %v8502_v15 = vsel %vm7280_vm12, 4294967295, %v8501_v15  ;;  %v8507_v20 = vmov 0  ;;  %v7303_v55 = vsub.s32 %v7047_v54, %v3892_v62  ;;  %vm4113_vm8 = vcmp.ne.s32.totalorder %v7255_v24, 0 }
 0x1e4   : > { %8503 = vst [vmem:[#allocation36_spill] sm:$0xff] %v8502_v15  ;;  %v8508_v20 = vsel %vm7298_vm9, 4294967295, %v8507_v20  ;;  %v7306_v5 = vmul.u32.u64.low 3817748708, %v7241_v53  ;;  %v7307_v29 = vmul.u32.u64.high 3817748708, %v7241_v53, %v7306_v5  ;;  %v3958_v48 = vmul.u32 18, %v3957_v41 }
 0x1e5   : > { %v3936_v47 = vmul.u32 18, %v3935_v46  ;;  %v7316_v62 = vadd.s32 224, %v6729_v9  ;;  %v7329_v59 = vsub.s32 %v7098_v12, %v3947_v37  ;;  %v7335_v46 = vadd.s32 18, %v7255_v24 }
 0x1e6   : > { %vm4111_vm4 = vcmp.ne.s32.totalorder %v7303_v55, 0  ;;  %vm4147_vm2 = vcmp.lt.s32.totalorder %v7303_v55, 0  ;;  %v3979_v5 = vshrl.u32 %v7238_v51, 4  ;;  %vm8514_vm12 = vcmp.lt.s32.totalorder %v7255_v24, 0 }
 0x1e7   : > { %v7311_v57 = vpop.f32.mrb[12].mxu1  ;;  %8510 = vst [vmem:[#allocation39_spill] sm:$0xff] %v7329_v59  ;;  %8512 = vst [vmem:[#allocation41_spill] sm:$0xff] %v7335_v46  ;;  %v8515_v12 = vmov 0  ;;  %v7351_v7 = vadd.s32 18, %v7303_v55  ;;  %v7354_v37 = vsub.s32 %v7112_v3, %v3925_v10  ;;  %v7357_v41 = vsub.s32 %v7115_v36, %v3958_v48 }
 0x1e8   : > { %v7318_v54 = vpop.f32.mrb[13].mxu1  ;;  %vm7346_vm9 = vmand %vm8514_vm12, %vm4113_vm8  ;;  %v3991_v51 = vmul.u32 18, %v3990_v56  ;;  %v7360_v32 = vsub.s32 %v7122_v45, %v3936_v47  ;;  %v3969_v15 = vmul.u32 18, %v3968_v21  ;;  %v7369_v3 = vadd.s32 248, %v6729_v9 }
 0x1e9   : > { %8509 = vst [vmem:[#allocation38_spill] sm:$0xff] %v7318_v54  ;;  %v7332_v61 = vpop.f32.mrb[14].mxu1  ;;  %v8516_v12 = vsel %vm7346_vm9, 4294967295, %v8515_v12  ;;  %8517 = vst [vmem:[#allocation43_spill] sm:$0xff] %v7357_v41  ;;  %v4002_v54 = vmul.u32 18, %v4001_v34  ;;  %v3980_v47 = vmul.u32 18, %v3979_v5 }
 0x1ea   : > { %8511 = vst [vmem:[#allocation40_spill] sm:$0xff] %v7332_v61  ;;  %v7340_v6 = vpop.f32.mrb[15].mxu1  ;;  %8518 = vst [vmem:[#allocation44_spill] sm:$0xff] %v7360_v32  ;;  %v4034_v21 = vshrl.u32 %v7307_v29, 4  ;;  %v7377_v36 = vadd.s32 232, %v6729_v9  ;;  %v7385_v45 = vsub.s32 %v7141_v50, %v3991_v51  ;;  %v8522_v29 = vmov 0 }
 0x1eb   : > { %8513 = vst [vmem:[#allocation42_spill] sm:$0xff] %v7340_v6  ;;  %v7363_v6 = vmul.u32.u64.low 3817748708, %v7316_v62  ;;  %v7364_v61 = vmul.u32.u64.high 3817748708, %v7316_v62, %v7363_v6  ;;  %vm7393_vm9 = vmand %vm4147_vm2, %vm4111_vm4  ;;  %v7401_v10 = vsub.s32 %v7161_v33, %v3969_v15  ;;  %v7407_v5 = vsub.s32 %v7171_v44, %v4002_v54 }
 0x1ec   : > { %v7380_v6 = vadd.s32 18, %v7329_v59  ;;  %8520 = vst [vmem:[#allocation46_spill] sm:$0xff] %v7385_v45  ;;  %v8523_v29 = vsel %vm7393_vm9, 4294967295, %v8522_v29  ;;  %v7410_v34 = vmul.u32.u64.low 3817748708, %v7369_v3  ;;  %v7411_v51 = vmul.u32.u64.high 3817748708, %v7369_v3, %v7410_v34 }
 0x1ed   : > { %8525 = vst [vmem:[#allocation49_spill] sm:$0xff] %v7407_v5  ;;  %vm8527_vm2 = vcmp.ne.s32.totalorder %v7329_v59, 0  ;;  %vm8528_vm4 = vcmp.lt.s32.totalorder %v7329_v59, 0  ;;  %v8529_v33 = vmov 0  ;;  %v7424_v15 = vsub.s32 %v7177_v8, %v3980_v47 }
 0x1ee   : > { %8519 = vst [vmem:[#allocation45_spill] sm:$0xff] %v7380_v6  ;;  %vm7419_vm8 = vmand %vm8528_vm4, %vm8527_vm2  ;;  %v7427_v44 = vmul.u32.u64.low 3817748708, %v7377_v36  ;;  %v7428_v54 = vmul.u32.u64.high 3817748708, %v7377_v36, %v7427_v44  ;;  %vm8534_vm2 = vcmp.ne.s32.totalorder %v7354_v37, 0  ;;  %vm8535_vm4 = vcmp.lt.s32.totalorder %v7354_v37, 0 }
 0x1ef   : > { %v7387_v56 = vpop.f32.mrb[16].mxu1  ;;  %v8530_v33 = vsel %vm7419_vm8, 4294967295, %v8529_v33  ;;  %8532 = vst [vmem:[#allocation52_spill] sm:$0xff] %v7424_v15  ;;  %vm7440_vm6 = vmand %vm8535_vm4, %vm8534_vm2  ;;  %v7447_v47 = vadd.s32 272, %v6729_v9  ;;  %v8541_v34 = vsel %vm6823_vm14, %v6821_v4, %v6781_v49  ;;  %vm8544_vm4 = vcmp.ne.s32.totalorder %v7357_v41, 0 }
 0x1f0   : > { %8521 = vst [vmem:[#allocation47_spill] sm:$0xff] %v7387_v56  ;;  %v7403_v50 = vpop.f32.mrb[17].mxu1  ;;  %8531 = vst [vmem:[#allocation51_spill] sm:$0xff] %v8530_v33  ;;  %vm7463_vm2 = vcmp.lt.s32.totalorder %v8541_v34, 16  ;;  %v4012_v49 = vshrl.u32 %v7364_v61, 4  ;;  %vm8550_vm14 = vcmp.ne.s32.totalorder %v7360_v32, 0  ;;  %v8557_v34 = vsel %vm6929_vm10, %v6872_v26, %v6827_v17 }
 0x1f1   : > { %8524 = vst [vmem:[#allocation48_spill] sm:$0xff] %v7403_v50  ;;  %v7413_v48 = vpop.f32.mrb[18].mxu1  ;;  %v4035_v50 = vmul.u32 18, %v4034_v21  ;;  %v8538_v21 = vsel %vm6808_vm13, %v6802_v39, %v6770_v11  ;;  %vm8545_vm13 = vcmp.lt.s32.totalorder %v7357_v41, 0  ;;  %v8546_v11 = vmov 0 }
 0x1f2   : > { %8526 = vst [vmem:[#allocation50_spill] sm:$0xff] %v7413_v48  ;;  %v7430_v56 = vpop.f32.mrb[19].mxu1  ;;  %vm7454_vm12 = vcmp.lt.s32.totalorder %v8538_v21, 16  ;;  %v7468_v48 = vadd.s32 18, %v7354_v37  ;;  %vm7474_vm7 = vmand %vm8545_vm13, %vm8544_vm4  ;;  %v7482_v39 = vadd.s32 18, %v7357_v41  ;;  %vm8551_vm11 = vcmp.lt.s32.totalorder %v7360_v32, 0 }
 0x1f3   : > { %8533 = vst [vmem:[#allocation53_spill] sm:$0xff] %v7430_v56  ;;  %v8547_v11 = vsel %vm7474_vm7, 4294967295, %v8546_v11  ;;  %vm7488_vm5 = vmand %vm8551_vm11, %vm8550_vm14  ;;  %v7493_v4 = vadd.s32 18, %v7360_v32  ;;  %vm7502_vm9 = vcmp.lt.s32.totalorder %v8554_v63, 16  ;;  %v8555_v61 = vmov 0  ;;  %v8596_v56 = vld [vmem:[#allocation10_spill] sm:$0xff] }
 0x1f4   : > { %8548 = vst [vmem:[#allocation54_spill] sm:$0xff] %v8547_v11  ;;  %8549 = vst [vmem:[#allocation55_spill] sm:$0xff] %v7482_v39  ;;  %v8556_v61 = vsel %vm7502_vm9, 4294967295, %v8555_v61  ;;  %vm7511_vm11 = vcmp.lt.s32.totalorder %v8557_v34, 16  ;;  %v8558_v21 = vmov 0  ;;  %vm8560_vm14 = vcmp.ne.s32.totalorder %v7385_v45, 0 }
 0x1f5   : > { %v8559_v21 = vsel %vm7511_vm11, 4294967295, %v8558_v21  ;;  %vm8561_vm13 = vcmp.lt.s32.totalorder %v7385_v45, 0  ;;  %v7524_v31 = vadd.s32 18, %v7385_v45  ;;  %vm4119_vm1 = vcmp.ne.s32.totalorder %v7424_v15, 0 }
 0x1f6   : > { %vm7519_vm4 = vmand %vm8561_vm13, %vm8560_vm14  ;;  %vm4155_vm0 = vcmp.lt.s32.totalorder %v7424_v15, 0  ;;  %v7529_v17 = vsub.s32 %v7241_v53, %v4035_v50  ;;  %vm8567_vm10 = vcmp.ne.s32.totalorder %v7401_v10, 0  ;;  %vm8568_vm11 = vcmp.lt.s32.totalorder %v7401_v10, 0 }
 0x1f7   : > { %v8563_v19 = vsel %vm7519_vm4, 4294967295, %v8562_v19  ;;  %8565 = vst [vmem:[#allocation57_spill] sm:$0xff] %v7524_v31  ;;  %vm7535_vm9 = vmand %vm8568_vm11, %vm8567_vm10  ;;  %v7540_v26 = vadd.s32 18, %v7401_v10  ;;  %v7543_v42 = vadd.s32 18, %v7407_v5  ;;  %vm8572_vm13 = vcmp.ne.s32.totalorder %v7407_v5, 0  ;;  %v8597_v31 = vld [vmem:[#allocation4_spill] sm:$0xff] }
 0x1f8   : > { %8564 = vst [vmem:[#allocation56_spill] sm:$0xff] %v8563_v19  ;;  %8566 = vst [vmem:[#allocation58_spill] sm:$0xff] %v7529_v17  ;;  %v8570_v60 = vsel %vm7535_vm9, 4294967295, %v8569_v60  ;;  %v7546_v63 = vmul.u32.u64.low 3817748708, %v7447_v47  ;;  %v7547_v34 = vmul.u32.u64.high 3817748708, %v7447_v47, %v7546_v63  ;;  %vm8573_vm11 = vcmp.lt.s32.totalorder %v7407_v5, 0 }
 0x1f9   : > { %8571 = vst [vmem:[#allocation59_spill] sm:$0xff] %v7543_v42  ;;  %vm7561_vm14 = vmand %vm8573_vm11, %vm8572_vm13  ;;  %v8574_v24 = vmov 0  ;;  %v7566_v63 = vadd.s32 18, %v7424_v15  ;;  %v4013_v46 = vmul.u32 18, %v4012_v49  ;;  %v8577_v59 = vmov 0  ;;  %v5397_v50 = vpop.f32.mrb[0].mxu0 }
 0x1fa   : > { %v8575_v24 = vsel %vm7561_vm14, 4294967295, %v8574_v24  ;;  %vm7578_vm10 = vmand %vm4155_vm0, %vm4119_vm1  ;;  %v4045_v6 = vshrl.u32 %v7411_v51, 4  ;;  %v7584_v49 = vadd.s32 256, %v6729_v9  ;;  %vm4124_vm13 = vcmp.ne.s32.totalorder %v7529_v17, 0  ;;  %v3445_v32 = vpop.f32.mrb[1].mxu0  ;;  %v8617_v15 = vld [vmem:[#allocation16_spill] sm:$0xff] }
 0x1fb   : > { %8576 = vst [vmem:[#allocation60_spill] sm:$0xff] %v8575_v24  ;;  %v8578_v59 = vsel %vm7578_vm10, 4294967295, %v8577_v59  ;;  %vm4160_vm11 = vcmp.lt.s32.totalorder %v7529_v17, 0  ;;  %v4023_v53 = vshrl.u32 %v7428_v54, 4  ;;  %v7590_v41 = vadd.s32 280, %v6729_v9  ;;  %v8594_v24 = vld [vmem:[#allocation9_spill] sm:$0xff] }
 0x1fc   : > { %v7605_v11 = vadd.s32 264, %v6729_v9  ;;  %v5433_v33 = vadd.f32 %v5397_v50, %v7013_v58  ;;  %v8579_v39 = vsel %vm6956_vm3, %v6911_v43, %v6875_v23  ;;  %v7622_v9 = vadd.s32 18, %v7529_v17  ;;  %v5398_v50 = vpop.f32.mrb[2].mxu0  ;;  %vm7632_vm3 = vmand %vm4160_vm11, %vm4124_vm13 }
 0x1fd   : > { %vm7613_vm0 = vcmp.lt.s32.totalorder %v8579_v39, 16  ;;  %v7625_v58 = vsub.s32 %v7316_v62, %v4013_v46  ;;  %v5434_v13 = vadd.f32 %v3445_v32, %v7034_v52  ;;  %v8583_v23 = vmov 0  ;;  %v3448_v32 = vpop.f32.mrb[3].mxu0 }
 0x1fe   : > { %8582 = vst [vmem:[#allocation61_spill] sm:$0xff] %v7622_v9  ;;  %v8584_v23 = vsel %vm7632_vm3, 4294967295, %v8583_v23  ;;  %v4046_v43 = vmul.u32 18, %v4045_v6  ;;  %v7637_v39 = vmul.u32.u64.low 3817748708, %v7584_v49  ;;  %v7638_v54 = vmul.u32.u64.high 3817748708, %v7584_v49, %v7637_v39 }
 0x1ff   : > { %8585 = vst [vmem:[#allocation62_spill] sm:$0xff] %v8584_v23  ;;  %vm8586_vm1 = vcmask 64512   ;;  %v5435_v62 = vadd.f32 %v5398_v50, %v7049_v16  ;;  %v4024_v52 = vmul.u32 18, %v4023_v53  ;;  %v4384_v5 = vsel %vm7454_vm12, %v5433_v33, 0.0  ;;  %v8588_v16 = vld [vmem:[#allocation3_spill] sm:$0xff]  ;;  %v8589_v50 = vld [vmem:[#allocation2_spill] sm:$0xff] }
 0x200   : > { %3627 = vst.msk [vmem:[%s5931_s22 + $0x10] sm:$0xff] %vm8586_vm1, %v5433_v33  ;;  %v7644_v46 = vmul.u32.u64.low 3817748708, %v7590_v41  ;;  %v7645_v51 = vmul.u32.u64.high 3817748708, %v7590_v41, %v7644_v46  ;;  %vm8587_vm13 = vmmov %vm8586_vm1  ;;  %v4382_v6 = vsel %vm7463_vm2, %v5434_v13, 0.0  ;;  %v5436_v39 = vadd.f32 %v3448_v32, %v7064_v14 }
 0x201   : > { %3625 = vst.msk [vmem:[%s5931_s22] sm:$0xff] %vm8587_vm13, %v5434_v13  ;;  %v8590_v42 = vsel %vm6943_vm15, %v8588_v16, %v8589_v50  ;;  %v4078_v46 = vshrl.u32 %v7547_v34, 4  ;;  %v4500_v44 = vmul.f32 %v5434_v13, %v4382_v6  ;;  %vm8593_vm12 = vmmov %vm8586_vm1  ;;  %vm8595_vm1 = vnez %v8594_v24  ;;  %v8607_v34 = vld [vmem:[#allocation5_spill] sm:$0xff] }
 0x202   : > { %vm7659_vm11 = vcmp.lt.s32.totalorder %v8590_v42, 16  ;;  %3628 = vst.msk [vmem:[%s5931_s22 + $0x18] sm:$0xff] %vm8593_vm12, %v5435_v62  ;;  %v8598_v19 = vsel %vm8595_vm1, %v8596_v56, %v8597_v31  ;;  %vm4122_vm15 = vcmp.ne.s32.totalorder %v7625_v58, 0  ;;  %vm8601_vm12 = vnez %v8556_v61  ;;  %vm8602_vm14 = vmmov %vm8587_vm13  ;;  %v8606_v31 = vld [vmem:[#allocation12_spill] sm:$0xff] }
 0x203   : > { %vm7671_vm2 = vcmp.lt.s32.totalorder %v8598_v19, 16  ;;  %v4385_v42 = vsel %vm8601_vm12, %v5435_v62, 0.0  ;;  %3626 = vst.msk [vmem:[%s5931_s22 + $0x8] sm:$0xff] %vm8602_vm14, %v5436_v39  ;;  %vm8603_vm1 = vnez %v8559_v21  ;;  %v8604_v19 = vld [vmem:[#allocation11_spill] sm:$0xff]  ;;  %v7697_v16 = vadd.s32 18, %v7625_v58  ;;  %vm8611_vm14 = vmmov %vm8587_vm13 }
 0x204   : > { %v4383_v24 = vsel %vm8603_vm1, %v5436_v39, 0.0  ;;  %vm8605_vm4 = vnez %v8604_v19  ;;  %v7700_v61 = vsub.s32 %v7369_v3, %v4046_v43  ;;  %v4502_v50 = vmul.f32 %v5433_v33, %v4384_v5  ;;  %vm8612_vm12 = vmmov %vm8587_vm13  ;;  %v8616_v43 = vld [vmem:[#allocation22_spill] sm:$0xff] }
 0x205   : > { %v8608_v13 = vsel %vm8605_vm4, %v8606_v31, %v8607_v34  ;;  %v4419_v56 = vsel %vm8611_vm14, %v4382_v6, 0.0  ;;  %v4420_v21 = vsel %vm8612_vm12, %v4383_v24, 0.0  ;;  %v4501_v30 = vmul.f32 %v5436_v39, %v4383_v24  ;;  %vm8613_vm1 = vmmov %vm8612_vm12  ;;  %v5401_v31 = vpop.f32.mrb[4].mxu0  ;;  %v8619_v39 = vld [vmem:[#allocation15_spill] sm:$0xff] }
 0x206   : > { %vm7692_vm10 = vcmp.lt.s32.totalorder %v8608_v13, 16  ;;  %v4422_v19 = vsel %vm8613_vm1, %v4384_v5, 0.0  ;;  %v4421_v17 = vadd.f32 %v4420_v21, %v4419_v56  ;;  %v7706_v34 = vsub.s32 %v7377_v36, %v4024_v52  ;;  %vm8614_vm4 = vmmov %vm8613_vm1  ;;  %v3461_v23 = vpop.f32.mrb[5].mxu0  ;;  %v8620_v5 = vld [vmem:[#allocation7_spill] sm:$0xff]  ;;  %v8628_v56 = vld [vmem:[#allocation13_spill] sm:$0xff] }
 0x207   : > { %v7708_v13 = vmul.u32 18, %v4078_v46  ;;  %v4536_v9 = vsel %vm8614_vm4, %v4500_v44, 0.0  ;;  %v4503_v3 = vmul.f32 %v5435_v62, %v4385_v42  ;;  %vm8615_vm13 = vmmov %vm8613_vm1  ;;  %v5437_v6 = vadd.f32 %v5401_v31, %v8616_v43  ;;  %v8627_v44 = vld [vmem:[#allocation23_spill] sm:$0xff]  ;;  %v8630_v21 = vld [vmem:[#allocation14_spill] sm:$0xff] }
 0x208   : > { %v4537_v33 = vsel %vm8615_vm13, %v4501_v30, 0.0  ;;  %vm8618_vm14 = vnez %v8617_v15  ;;  %vm8624_vm1 = vcmp.lt.s32.totalorder %v7625_v58, 0  ;;  %v8625_v62 = vmov 0  ;;  %v5402_v30 = vpop.f32.mrb[6].mxu0  ;;  %v8631_v31 = vld [vmem:[#allocation6_spill] sm:$0xff] }
 0x209   : > { %v8621_v24 = vsel %vm8618_vm14, %v8619_v39, %v8620_v5  ;;  %vm7726_vm4 = vmand %vm8624_vm1, %vm4122_vm15  ;;  %v4423_v52 = vadd.f32 %v4422_v19, %v4421_v17  ;;  %v4538_v46 = vadd.f32 %v4537_v33, %v4536_v9  ;;  %v5438_v15 = vadd.f32 %v3461_v23, %v8627_v44  ;;  %v8637_v17 = vld [vmem:[#allocation24_spill] sm:$0xff]  ;;  %v3464_v23 = vpop.f32.mrb[7].mxu0 }
 0x20a   : > { %vm7718_vm12 = vcmp.lt.s32.totalorder %v8621_v24, 16  ;;  %v8626_v62 = vsel %vm7726_vm4, 4294967295, %v8625_v62  ;;  %vm8629_vm13 = vnez %v8628_v56  ;;  %vm8635_vm15 = vcmask 64512  }
 0x20b   : > { %v8632_v43 = vsel %vm8629_vm13, %v8630_v21, %v8631_v31  ;;  %v4539_v24 = vsel %vm8635_vm15, %v4502_v50, 0.0  ;;  %vm8636_vm1 = vmmov %vm8635_vm15  ;;  %v5439_v9 = vadd.f32 %v5402_v30, %v8637_v17  ;;  %v4386_v21 = vsel %vm7613_vm0, %v5438_v15, 0.0 }
 0x20c   : > { %vm7736_vm14 = vcmp.lt.s32.totalorder %v8632_v43, 16  ;;  %3631 = vst.msk [vmem:[%s5931_s22 + $0x30] sm:$0xff] %vm8636_vm1, %v5437_v6  ;;  %v7746_v19 = vmul.u32.u64.low 3817748708, %v7605_v11  ;;  %v7747_v33 = vmul.u32.u64.high 3817748708, %v7605_v11, %v7746_v19  ;;  %vm8638_vm13 = vmmov %vm8636_vm1  ;;  %v4540_v56 = vadd.f32 %v4539_v24, %v4538_v46  ;;  %v8644_v46 = vld [vmem:[#allocation17_spill] sm:$0xff]  ;;  %v8645_v24 = vld [vmem:[#allocation8_spill] sm:$0xff] }
 0x20d   : > { %v4424_v44 = vsel %vm8638_vm13, %v4385_v42, 0.0  ;;  %vm8639_vm3 = vmmov %vm8636_vm1  ;;  %v4426_v43 = vsel %vm8636_vm1, %v4386_v21, 0.0  ;;  %v4504_v17 = vmul.f32 %v5438_v15, %v4386_v21  ;;  %v8642_v42 = vld [vmem:[#allocation19_spill] sm:$0xff]  ;;  %v4388_v21 = vsel %vm7659_vm11, %v5437_v6, 0.0 }
 0x20e   : > { %3629 = vst.msk [vmem:[%s5931_s22 + $0x20] sm:$0xff] %vm8639_vm3, %v5438_v15  ;;  %vm8640_vm15 = vmmov %vm8636_vm1  ;;  %v4425_v31 = vadd.f32 %v4424_v44, %v4423_v52  ;;  %vm8643_vm13 = vnez %v8642_v42  ;;  %vm8649_vm3 = vnez %v8475_v0  ;;  %vm8656_vm11 = vnez %v8486_v1  ;;  %v8668_v44 = vld [vmem:[#allocation25_spill] sm:$0xff] }
 0x20f   : > { %v4541_v30 = vsel %vm8640_vm15, %v4503_v3, 0.0  ;;  %vm8641_vm9 = vmmov %vm8636_vm1  ;;  %v8646_v19 = vsel %vm8643_vm13, %v8644_v46, %v8645_v24  ;;  %v8650_v3 = vsel %vm8649_vm3, %v7085_v22, %v7032_v27  ;;  %v8654_v46 = vld [vmem:[#allocation26_spill] sm:$0xff]  ;;  %v4389_v22 = vsel %vm7671_vm2, %v5439_v9, 0.0 }
 0x210   : > { %3632 = vst.msk [vmem:[%s5931_s22 + $0x38] sm:$0xff] %vm8641_vm9, %v5439_v9  ;;  %vm7768_vm0 = vcmp.lt.s32.totalorder %v8646_v19, 16  ;;  %vm7777_vm15 = vcmp.lt.s32.totalorder %v8650_v3, 16  ;;  %v4542_v15 = vadd.f32 %v4541_v30, %v4540_v56  ;;  %vm4125_vm9 = vcmp.ne.s32.totalorder %v7700_v61, 0  ;;  %vm8653_vm13 = vmmov %vm8636_vm1  ;;  %v5405_v19 = vpop.f32.mrb[8].mxu0  ;;  %v8655_v30 = vld [vmem:[#allocation29_spill] sm:$0xff] }
 0x211   : > { %v4427_v42 = vadd.f32 %v4426_v43, %v4425_v31  ;;  %v4543_v0 = vsel %vm8653_vm13, %v4504_v17, 0.0  ;;  %v5440_v24 = vadd.f32 %v3464_v23, %v8654_v46  ;;  %v7791_v56 = vadd.s32 18, %v7700_v61  ;;  %v3477_v43 = vpop.f32.mrb[9].mxu0  ;;  %v8664_v3 = vld [vmem:[#allocation31_spill] sm:$0xff] }
 0x212   : > { %v4544_v27 = vadd.f32 %v4543_v0, %v4542_v15  ;;  %v5441_v31 = vadd.f32 %v5405_v19, %v8655_v30  ;;  %v8657_v14 = vsel %vm8656_vm11, %v7127_v35, %v7088_v2  ;;  %vm8660_vm13 = vcmp.lt.s32.totalorder %v7700_v61, 0  ;;  %v5406_v0 = vpop.f32.mrb[10].mxu0  ;;  %v8666_v30 = vld [vmem:[#allocation32_spill] sm:$0xff] }
 0x213   : > { %3630 = vst.msk [vmem:[%s5931_s22 + $0x28] sm:$0xff] %vm8636_vm1, %v5440_v24  ;;  %v4387_v53 = vsel %vm7692_vm10, %v5440_v24, 0.0  ;;  %vm7804_vm2 = vcmp.lt.s32.totalorder %v8657_v14, 16  ;;  %vm7812_vm1 = vmand %vm8660_vm13, %vm4125_vm9  ;;  %v7818_v1 = vadd.s32 18, %v7706_v34  ;;  %v4506_v32 = vmul.f32 %v5437_v6, %v4388_v21  ;;  %v3480_v50 = vpop.f32.mrb[11].mxu0 }
 0x214   : > { %vm8663_vm11 = vcmask 64512   ;;  %v4505_v35 = vmul.f32 %v5440_v24, %v4387_v53  ;;  %v5442_v15 = vadd.f32 %v3477_v43, %v8664_v3  ;;  %v4507_v46 = vmul.f32 %v5439_v9, %v4389_v22 }
 0x215   : > { %v4428_v2 = vsel %vm8663_vm11, %v4387_v53, 0.0  ;;  %vm8665_vm3 = vmmov %vm8663_vm11  ;;  %v5443_v14 = vadd.f32 %v5406_v0, %v8666_v30  ;;  %vm8667_vm9 = vnez %v8497_v28  ;;  %v7836_v24 = vsub.s32 %v7447_v47, %v7708_v13  ;;  %v8674_v53 = vld [vmem:[#allocation30_spill] sm:$0xff] }
 0x216   : > { %v4429_v19 = vadd.f32 %v4428_v2, %v4427_v42  ;;  %3635 = vst.msk [vmem:[%s5931_s22 + $0x50] sm:$0xff] %vm8665_vm3, %v5441_v31  ;;  %v8669_v5 = vsel %vm8667_vm9, %v7188_v40, %v8668_v44  ;;  %vm8672_vm11 = vmmov %vm8665_vm3  ;;  %v4390_v28 = vsel %vm7718_vm12, %v5442_v15, 0.0  ;;  %vm8675_vm4 = vnez %v8674_v53  ;;  %v8676_v40 = vld [vmem:[#allocation21_spill] sm:$0xff]  ;;  %v8685_v30 = vld [vmem:[#allocation34_spill] sm:$0xff] }
 0x217   : > { %vm7830_vm13 = vcmp.lt.s32.totalorder %v8669_v5, 16  ;;  %v4430_v9 = vsel %vm8672_vm11, %v4388_v21, 0.0  ;;  %vm8673_vm10 = vmmov %vm8665_vm3  ;;  %3633 = vst.msk [vmem:[%s5931_s22 + $0x40] sm:$0xff] %vm8665_vm3, %v5442_v15  ;;  %v8677_v5 = vld [vmem:[#allocation18_spill] sm:$0xff]  ;;  %v4269_v47 = vsel %vm7812_vm1, %v7791_v56, %v7700_v61  ;;  %v4392_v36 = vsel %vm7736_vm14, %v5441_v31, 0.0 }
 0x218   : > { %v4545_v42 = vsel %vm8673_vm10, %v4505_v35, 0.0  ;;  %v8678_v44 = vsel %vm8675_vm4, %v8676_v40, %v8677_v5  ;;  %v4431_v13 = vadd.f32 %v4430_v9, %v4429_v19  ;;  %v4508_v2 = vmul.f32 %v5442_v15, %v4390_v28  ;;  %vm8681_vm12 = vmmov %vm8665_vm3  ;;  %v8686_v40 = vld [vmem:[#allocation33_spill] sm:$0xff]  ;;  %v8688_v5 = vld [vmem:[#allocation28_spill] sm:$0xff] }
 0x219   : > { %vm7849_vm9 = vcmp.lt.s32.totalorder %v8678_v44, 16  ;;  %v4546_v21 = vadd.f32 %v4545_v42, %v4544_v27  ;;  %3636 = vst.msk [vmem:[%s5931_s22 + $0x58] sm:$0xff] %vm8681_vm12, %v5443_v14  ;;  %vm8682_vm10 = vmmov %vm8665_vm3  ;;  %v5444_v53 = vadd.f32 %v3480_v50, %v8685_v30  ;;  %v8689_v19 = vld [vmem:[#allocation20_spill] sm:$0xff]  ;;  %vm8694_vm12 = vcmp.ne.s32.totalorder %v7706_v34, 0 }
 0x21a   : > { %v4547_v35 = vsel %vm8682_vm10, %v4506_v32, 0.0  ;;  %vm8683_vm4 = vmmov %vm8665_vm3  ;;  %vm8695_vm10 = vcmp.lt.s32.totalorder %v7706_v34, 0  ;;  %v8698_v50 = vshrl.u32 %v7638_v54, 4 }
 0x21b   : > { %v4432_v3 = vsel %vm8683_vm4, %v4389_v22, 0.0  ;;  %vm8684_vm11 = vmmov %vm8665_vm3  ;;  %vm8687_vm3 = vnez %v8686_v40  ;;  %v4548_v9 = vadd.f32 %v4547_v35, %v4546_v21  ;;  %v5409_v21 = vpop.f32.mrb[12].mxu0 }
 0x21c   : > { %v4434_v0 = vsel %vm8684_vm11, %v4390_v28, 0.0  ;;  %v8690_v27 = vsel %vm8687_vm3, %v8688_v5, %v8689_v19  ;;  %vm8693_vm14 = vmmov %vm8683_vm4  ;;  %v4433_v42 = vadd.f32 %v4432_v3, %v4431_v13  ;;  %v7885_v32 = vmul.u32 18, %v8698_v50  ;;  %v3493_v54 = vpop.f32.mrb[13].mxu0 }
 0x21d   : > { %vm7870_vm1 = vcmp.lt.s32.totalorder %v8690_v27, 16  ;;  %v4549_v15 = vsel %vm8693_vm14, %v4507_v46, 0.0  ;;  %vm7879_vm4 = vmand %vm8695_vm10, %vm8694_vm12  ;;  %v4510_v28 = vmul.f32 %v5441_v31, %v4392_v36  ;;  %v4551_v44 = vsel %vm8684_vm11, %v4508_v2, 0.0  ;;  %v8705_v2 = vld [vmem:[#allocation38_spill] sm:$0xff]  ;;  %v5410_v5 = vpop.f32.mrb[14].mxu0 }
 0x21e   : > { %v4393_v46 = vsel %vm7768_vm0, %v5443_v14, 0.0  ;;  %vm8699_vm3 = vmmov %vm8684_vm11  ;;  %v4391_v13 = vsel %vm7777_vm15, %v5444_v53, 0.0  ;;  %v4435_v35 = vadd.f32 %v4434_v0, %v4433_v42  ;;  %v4550_v3 = vadd.f32 %v4549_v15, %v4548_v9  ;;  %v8708_v15 = vld [vmem:[#allocation40_spill] sm:$0xff] }
 0x21f   : > { %3634 = vst.msk [vmem:[%s5931_s22 + $0x48] sm:$0xff] %vm8699_vm3, %v5444_v53  ;;  %vm8700_vm14 = vmmov %vm8699_vm3  ;;  %v4509_v40 = vmul.f32 %v5444_v53, %v4391_v13  ;;  %vm8701_vm12 = vnez %v8508_v20  ;;  %v5445_v52 = vadd.f32 %v5409_v21, %v7311_v57  ;;  %v5446_v0 = vadd.f32 %v3493_v54, %v8705_v2  ;;  %v3496_v57 = vpop.f32.mrb[15].mxu0  ;;  %v8715_v21 = vld [vmem:[#allocation42_spill] sm:$0xff]  ;;  %v7945_v54 = vpop.f32.mrb[20].mxu1 }
 0x220   : > { %v4436_v30 = vsel %vm8700_vm14, %v4391_v13, 0.0  ;;  %v8702_v31 = vsel %vm8701_vm12, %v7288_v18, %v7168_v25  ;;  %v4267_v53 = vsel %vm7879_vm4, %v7818_v1, %v7706_v34  ;;  %v8706_v20 = vshrl.u32 %v7645_v51, 4  ;;  %vm8707_vm15 = vmmov %vm8699_vm3  ;;  %v8818_v34 = vld [vmem:[#allocation61_spill] sm:$0xff]  ;;  %v8819_v1 = vld [vmem:[#allocation58_spill] sm:$0xff] }
 0x221   : > { %vm7900_vm0 = vcmp.lt.s32.totalorder %v8702_v31, 16  ;;  %v4552_v25 = vadd.f32 %v4551_v44, %v4550_v3  ;;  %v4437_v18 = vadd.f32 %v4436_v30, %v4435_v35  ;;  %v4553_v27 = vsel %vm8707_vm15, %v4509_v40, 0.0  ;;  %vm8713_vm14 = vmmov %vm8699_vm3  ;;  %v8716_v35 = vld [vmem:[#allocation36_spill] sm:$0xff] }
 0x222   : > { %v7912_v19 = vmul.u32 18, %v8706_v20  ;;  %v5447_v9 = vadd.f32 %v5410_v5, %v8708_v15  ;;  %vm8709_vm10 = vnez %v8523_v29  ;;  %v4438_v51 = vsel %vm8699_vm3, %v4392_v36, 0.0  ;;  %3639 = vst.msk [vmem:[%s5931_s22 + $0x70] sm:$0xff] %vm8713_vm14, %v5445_v52  ;;  %vm8714_vm12 = vmmov %vm8699_vm3  ;;  %v7954_v20 = vpop.f32.mrb[21].mxu1 }
 0x223   : > { %v8710_v42 = vsel %vm8709_vm10, %v7351_v7, %v7303_v55  ;;  %v4511_v44 = vmul.f32 %v5443_v14, %v4393_v46  ;;  %3637 = vst.msk [vmem:[%s5931_s22 + $0x60] sm:$0xff] %vm8714_vm12, %v5446_v0  ;;  %v4394_v13 = vsel %vm7804_vm2, %v5446_v0, 0.0  ;;  %v5448_v29 = vadd.f32 %v3496_v57, %v8715_v21  ;;  %v8718_v55 = vld [vmem:[#allocation37_spill] sm:$0xff]  ;;  %v8719_v7 = vld [vmem:[#allocation27_spill] sm:$0xff]  ;;  %vm8723_vm14 = vmmov %vm8699_vm3  ;;  %v7967_v57 = vpop.f32.mrb[22].mxu1 }
 0x224   : > { %vm7921_vm11 = vcmp.lt.s32.totalorder %v8710_v42, 16  ;;  %vm8717_vm15 = vnez %v8716_v35  ;;  %v4555_v14 = vsel %vm8699_vm3, %v4510_v28, 0.0  ;;  %v4439_v36 = vadd.f32 %v4438_v51, %v4437_v18  ;;  %3640 = vst.msk [vmem:[%s5931_s22 + $0x78] sm:$0xff] %vm8723_vm14, %v5447_v9  ;;  %vm8724_vm12 = vmmov %vm8699_vm3  ;;  %v8728_v28 = vld [vmem:[#allocation41_spill] sm:$0xff]  ;;  %v7973_v21 = vpop.f32.mrb[23].mxu1 }
 0x225   : > { %v8720_v3 = vsel %vm8717_vm15, %v8718_v55, %v8719_v7  ;;  %v4554_v40 = vadd.f32 %v4553_v27, %v4552_v25  ;;  %vm4128_vm2 = vcmp.ne.s32.totalorder %v7836_v24, 0  ;;  %v4440_v23 = vsel %vm8724_vm12, %v4393_v46, 0.0  ;;  %vm8725_vm4 = vmmov %vm8699_vm3  ;;  %v8729_v25 = vld [vmem:[#allocation35_spill] sm:$0xff] }
 0x226   : > { %vm7938_vm10 = vcmp.lt.s32.totalorder %v8720_v3, 16  ;;  %v4442_v31 = vsel %vm8725_vm4, %v4394_v13, 0.0  ;;  %v4512_v2 = vmul.f32 %v5446_v0, %v4394_v13  ;;  %vm8726_vm15 = vmmov %vm8699_vm3  ;;  %v4395_v5 = vsel %vm7830_vm13, %v5448_v29, 0.0  ;;  %v5413_v13 = vpop.f32.mrb[16].mxu0  ;;  %v8735_v7 = vld [vmem:[#allocation47_spill] sm:$0xff] }
 0x227   : > { %3638 = vst.msk [vmem:[%s5931_s22 + $0x68] sm:$0xff] %vm8726_vm15, %v5448_v29  ;;  %vm8727_vm3 = vnez %v8516_v12  ;;  %v4556_v46 = vadd.f32 %v4555_v14, %v4554_v40  ;;  %v4396_v0 = vsel %vm7849_vm9, %v5445_v52, 0.0  ;;  %v4441_v15 = vadd.f32 %v4440_v23, %v4439_v36  ;;  %vm8733_vm12 = vmmov %vm8725_vm4  ;;  %v3509_v14 = vpop.f32.mrb[17].mxu0  ;;  %v8740_v23 = vld [vmem:[#allocation48_spill] sm:$0xff] }
 0x228   : > { %v8730_v18 = vsel %vm8727_vm3, %v8728_v28, %v8729_v25  ;;  %vm4164_vm13 = vcmp.lt.s32.totalorder %v7836_v24, 0  ;;  %v4557_v6 = vsel %vm8725_vm4, %v4511_v44, 0.0  ;;  %v4559_v12 = vsel %vm8733_vm12, %v4512_v2, 0.0  ;;  %vm8734_vm15 = vmmov %vm8725_vm4  ;;  %v5414_v39 = vpop.f32.mrb[18].mxu0 }
 0x229   : > { %vm7961_vm14 = vcmp.lt.s32.totalorder %v8730_v18, 16  ;;  %v4444_v42 = vsel %vm8734_vm15, %v4395_v5, 0.0  ;;  %v4513_v51 = vmul.f32 %v5448_v29, %v4395_v5  ;;  %v4443_v35 = vadd.f32 %v4442_v31, %v4441_v15  ;;  %vm8739_vm3 = vmmov %vm8725_vm4  ;;  %v3512_v28 = vpop.f32.mrb[19].mxu0 }
 0x22a   : > { %v4558_v55 = vadd.f32 %v4557_v6, %v4556_v46  ;;  %v4397_v43 = vsel %vm7870_vm1, %v5447_v9, 0.0  ;;  %v5449_v3 = vadd.f32 %v5413_v13, %v8735_v7  ;;  %v8736_v44 = vsel %vm7440_vm6, %v7468_v48, %v7354_v37  ;;  %vm8741_vm1 = vmmov %vm8739_vm3  ;;  %v8742_v37 = vld [vmem:[#allocation50_spill] sm:$0xff]  ;;  %v8752_v13 = vld [vmem:[#allocation39_spill] sm:$0xff] }
 0x22b   : > { %vm7983_vm9 = vcmp.lt.s32.totalorder %v8736_v44, 16  ;;  %v4514_v36 = vmul.f32 %v5445_v52, %v4396_v0  ;;  %v4561_v40 = vsel %vm8739_vm3, %v4513_v51, 0.0  ;;  %v5450_v31 = vadd.f32 %v3509_v14, %v8740_v23  ;;  %v8743_v52 = vld [vmem:[#allocation44_spill] sm:$0xff]  ;;  %vm8747_vm4 = vmmov %vm8741_vm1  ;;  %v8751_v51 = vld [vmem:[#allocation45_spill] sm:$0xff] }
 0x22c   : > { %v7990_v2 = vadd.s32 18, %v7836_v24  ;;  %v4560_v5 = vadd.f32 %v4559_v12, %v4558_v55  ;;  %v4445_v8 = vadd.f32 %v4444_v42, %v4443_v35  ;;  %3643 = vst.msk [vmem:[%s5931_s22 + $0x90] sm:$0xff] %vm8741_vm1, %v5449_v3  ;;  %v5451_v48 = vadd.f32 %v5414_v39, %v8742_v37  ;;  %vm8748_vm12 = vmmov %vm8741_vm1  ;;  %v8749_v12 = vld [vmem:[#allocation53_spill] sm:$0xff]  ;;  %v8762_v39 = vld [vmem:[#allocation55_spill] sm:$0xff] }
 0x22d   : > { %v8744_v25 = vsel %vm7488_vm5, %v7493_v4, %v8743_v52  ;;  %v8006_v46 = vsub.s32 %v7584_v49, %v7885_v32  ;;  %v4446_v15 = vsel %vm8747_vm4, %v4396_v0, 0.0  ;;  %v4515_v6 = vmul.f32 %v5447_v9, %v4397_v43  ;;  %3641 = vst.msk [vmem:[%s5931_s22 + $0x80] sm:$0xff] %vm8748_vm12, %v5450_v31  ;;  %vm8756_vm15 = vmmov %vm8741_vm1  ;;  %v8025_v9 = vpop.f32.mrb[24].mxu1 }
 0x22e   : > { %vm8000_vm6 = vcmp.lt.s32.totalorder %v8744_v25, 16  ;;  %v4398_v38 = vsel %vm7900_vm0, %v5450_v31, 0.0  ;;  %v5452_v42 = vadd.f32 %v3512_v28, %v8749_v12  ;;  %v8753_v35 = vsel %vm7419_vm8, %v8751_v51, %v8752_v13  ;;  %3644 = vst.msk [vmem:[%s5931_s22 + $0x98] sm:$0xff] %vm8756_vm15, %v5451_v48  ;;  %vm8757_vm0 = vmmov %vm8741_vm1  ;;  %v8038_v23 = vpop.f32.mrb[25].mxu1 }
 0x22f   : > { %vm8019_vm5 = vcmp.lt.s32.totalorder %v8753_v35, 16  ;;  %v4447_v49 = vadd.f32 %v4446_v15, %v4445_v8  ;;  %v4562_v32 = vadd.f32 %v4561_v40, %v4560_v5  ;;  %v4516_v0 = vmul.f32 %v5450_v31, %v4398_v38  ;;  %vm8758_vm3 = vmmov %vm8757_vm0  ;;  %v8763_v5 = vld [vmem:[#allocation43_spill] sm:$0xff]  ;;  %v8051_v37 = vpop.f32.mrb[26].mxu1 }
 0x230   : > { %v8029_v45 = vsub.s32 %v7590_v41, %v7912_v19  ;;  %v4563_v7 = vsel %vm8757_vm0, %v4514_v36, 0.0  ;;  %v4448_v14 = vsel %vm8758_vm3, %v4397_v43, 0.0  ;;  %vm8759_vm8 = vmmov %vm8757_vm0  ;;  %v4399_v40 = vsel %vm7921_vm11, %v5452_v42, 0.0  ;;  %v8065_v12 = vpop.f32.mrb[27].mxu1 }
 0x231   : > { %v4450_v44 = vsel %vm8759_vm8, %v4398_v38, 0.0  ;;  %vm8760_vm1 = vmmov %vm8757_vm0  ;;  %v8764_v8 = vsel %vm7474_vm7, %v8762_v39, %v8763_v5  ;;  %v4564_v19 = vadd.f32 %v4563_v7, %v4562_v32  ;;  %v4400_v43 = vsel %vm7938_vm10, %v5449_v3, 0.0  ;;  %v5417_v38 = vpop.f32.mrb[20].mxu0  ;;  %v8786_v5 = vld [vmem:[#allocation57_spill] sm:$0xff]  ;;  %v8115_v29 = vpop.f32.mrb[28].mxu1 }
 0x232   : > { %3642 = vst.msk [vmem:[%s5931_s22 + $0x88] sm:$0xff] %vm8760_vm1, %v5452_v42  ;;  %vm8045_vm4 = vcmp.lt.s32.totalorder %v8764_v8, 16  ;;  %v4449_v36 = vadd.f32 %v4448_v14, %v4447_v49  ;;  %vm8057_vm11 = vmand %vm4164_vm13, %vm4128_vm2  ;;  %v4067_v28 = vshrl.u32 %v7747_v33, 4  ;;  %v4517_v15 = vmul.f32 %v5452_v42, %v4399_v40  ;;  %v3525_v49 = vpop.f32.mrb[21].mxu0 }
 0x233   : > { %vm8769_vm7 = vmmov %vm8757_vm0  ;;  %v4401_v13 = vsel %vm7961_vm14, %v5451_v48, 0.0  ;;  %v5453_v35 = vadd.f32 %v5417_v38, %v7945_v54  ;;  %vm8772_vm10 = vnez %v8570_v60  ;;  %v4518_v42 = vmul.f32 %v5449_v3, %v4400_v43  ;;  %v5418_v27 = vpop.f32.mrb[22].mxu0  ;;  %v8779_v3 = vld [vmem:[#allocation52_spill] sm:$0xff]  ;;  %v8798_v38 = vld [vmem:[#allocation59_spill] sm:$0xff] }
 0x234   : > { %v4565_v52 = vsel %vm8769_vm7, %v4515_v6, 0.0  ;;  %vm8770_vm12 = vmmov %vm8757_vm0  ;;  %v4451_v4 = vadd.f32 %v4450_v44, %v4449_v36  ;;  %v8773_v33 = vsel %vm8772_vm10, %v7540_v26, %v7401_v10  ;;  %v4272_v54 = vsel %vm8057_vm11, %v7990_v2, %v7836_v24  ;;  %v3528_v26 = vpop.f32.mrb[23].mxu0 }
 0x235   : > { %v4567_v25 = vsel %vm8770_vm12, %v4516_v0, 0.0  ;;  %vm8771_vm15 = vmmov %vm8757_vm0  ;;  %v4566_v51 = vadd.f32 %v4565_v52, %v4564_v19  ;;  %vm8075_vm2 = vcmp.lt.s32.totalorder %v8773_v33, 16  ;;  %v5454_v0 = vadd.f32 %v3525_v49, %v7954_v20 }
 0x236   : > { %v4452_v30 = vsel %vm8771_vm15, %v4399_v40, 0.0  ;;  %vm8776_vm13 = vmmov %vm8757_vm0  ;;  %v5455_v10 = vadd.f32 %v5418_v27, %v7967_v57  ;;  %v4068_v44 = vmul.u32 18, %v4067_v28  ;;  %v4519_v31 = vmul.f32 %v5451_v48, %v4401_v13 }
 0x237   : > { %v4569_v32 = vsel %vm8776_vm13, %v4517_v15, 0.0  ;;  %v4568_v60 = vadd.f32 %v4567_v25, %v4566_v51  ;;  %v4453_v7 = vadd.f32 %v4452_v30, %v4451_v4  ;;  %vm8777_vm14 = vmmov %vm8757_vm0  ;;  %vm8778_vm0 = vnez %v8578_v59  ;;  %3645 = vst.msk [vmem:[%s5931_s22 + $0xa0] sm:$0xff] %vm8760_vm1, %v5454_v0  ;;  %v8784_v59 = vld [vmem:[#allocation56_spill] sm:$0xff]  ;;  %v8125_v30 = vpop.f32.mrb[29].mxu1  ;;  %v8799_v4 = vld [vmem:[#allocation49_spill] sm:$0xff] }
 0x238   : > { %3647 = vst.msk [vmem:[%s5931_s22 + $0xb0] sm:$0xff] %vm8777_vm14, %v5453_v35  ;;  %v8780_v14 = vsel %vm8778_vm0, %v7566_v63, %v8779_v3  ;;  %vm8783_vm8 = vmmov %vm8760_vm1  ;;  %v4402_v57 = vsel %vm7983_vm9, %v5454_v0, 0.0  ;;  %v5456_v39 = vadd.f32 %v3528_v26, %v7973_v21  ;;  %vm8785_vm7 = vnez %v8784_v59  ;;  %v8787_v63 = vld [vmem:[#allocation46_spill] sm:$0xff]  ;;  %v8796_v15 = vld [vmem:[#allocation60_spill] sm:$0xff]  ;;  %v5421_v26 = vpop.f32.mrb[24].mxu0 }
 0x239   : > { %vm8093_vm3 = vcmp.lt.s32.totalorder %v8780_v14, 16  ;;  %v4454_v40 = vsel %vm8783_vm8, %v4400_v43, 0.0  ;;  %v8788_v8 = vsel %vm8785_vm7, %v8786_v5, %v8787_v63  ;;  %vm4126_vm15 = vcmp.ne.s32.totalorder %v8006_v46, 0  ;;  %vm8791_vm10 = vmmov %vm8760_vm1 }
 0x23a   : > { %vm8108_vm12 = vcmp.lt.s32.totalorder %v8788_v8, 16  ;;  %v4455_v43 = vadd.f32 %v4454_v40, %v4453_v7  ;;  %v4570_v48 = vadd.f32 %v4569_v32, %v4568_v60  ;;  %v4520_v36 = vmul.f32 %v5454_v0, %v4402_v57  ;;  %3648 = vst.msk [vmem:[%s5931_s22 + $0xb8] sm:$0xff] %vm8791_vm10, %v5455_v10  ;;  %vm8792_vm13 = vmmov %vm8760_vm1  ;;  %v8138_v32 = vpop.f32.mrb[30].mxu1 }
 0x23b   : > { %v4571_v21 = vsel %vm8792_vm13, %v4518_v42, 0.0  ;;  %vm8793_vm14 = vmmov %vm8760_vm1  ;;  %v4403_v25 = vsel %vm8000_vm6, %v5456_v39, 0.0  ;;  %v8141_v18 = vsub.s32 %v7605_v11, %v4068_v44  ;;  %v8146_v3 = vpop.f32.mrb[31].mxu1  ;;  %v4405_v40 = vsel %vm8045_vm4, %v5455_v10, 0.0  ;;  %v3541_v11 = vpop.f32.mrb[25].mxu0 }
 0x23c   : > { %v4456_v28 = vsel %vm8793_vm14, %v4401_v13, 0.0  ;;  %vm8794_vm0 = vmmov %vm8760_vm1  ;;  %vm8797_vm1 = vnez %v8796_v15  ;;  %v4572_v33 = vadd.f32 %v4571_v21, %v4570_v48  ;;  %v4404_v13 = vsel %vm8019_vm5, %v5453_v35, 0.0  ;;  %v5422_v41 = vpop.f32.mrb[26].mxu0  ;;  %v8816_v48 = vld [vmem:[#allocation62_spill] sm:$0xff]  ;;  %v8199_v6 = vpop.f32.mrb[32].mxu1 }
 0x23d   : > { %v4458_v52 = vsel %vm8794_vm0, %v4402_v57, 0.0  ;;  %vm8795_vm8 = vmmov %vm8794_vm0  ;;  %v8800_v51 = vsel %vm8797_vm1, %v8798_v38, %v8799_v4  ;;  %v4457_v42 = vadd.f32 %v4456_v28, %v4455_v43  ;;  %v4521_v7 = vmul.f32 %v5456_v39, %v4403_v25  ;;  %v8209_v38 = vpop.f32.mrb[33].mxu1 }
 0x23e   : > { %3646 = vst.msk [vmem:[%s5931_s22 + $0xa8] sm:$0xff] %vm8795_vm8, %v5456_v39  ;;  %vm8132_vm7 = vcmp.lt.s32.totalorder %v8800_v51, 16  ;;  %vm8803_vm6 = vmmov %vm8794_vm0  ;;  %v5457_v57 = vadd.f32 %v5421_v26, %v8025_v9  ;;  %vm8806_vm5 = vnez %v8626_v62  ;;  %v4522_v39 = vmul.f32 %v5453_v35, %v4404_v13 }
 0x23f   : > { %v4573_v0 = vsel %vm8803_vm6, %v4519_v31, 0.0  ;;  %vm8804_vm10 = vmmov %vm8794_vm0  ;;  %v4459_v14 = vadd.f32 %v4458_v52, %v4457_v42  ;;  %v8807_v44 = vsel %vm8806_vm5, %v7697_v16, %v7625_v58  ;;  %v4577_v59 = vsel %vm8794_vm0, %v4521_v7, 0.0  ;;  %v3544_v16 = vpop.f32.mrb[27].mxu0  ;;  %v8222_v42 = vpop.f32.mrb[34].mxu1 }
 0x240   : > { %v4575_v27 = vsel %vm8804_vm10, %v4520_v36, 0.0  ;;  %vm8805_vm13 = vmmov %vm8794_vm0  ;;  %v4574_v55 = vadd.f32 %v4573_v0, %v4572_v33  ;;  %vm8156_vm14 = vcmp.lt.s32.totalorder %v8807_v44, 16  ;;  %v5458_v5 = vadd.f32 %v3541_v11, %v8038_v23  ;;  %v5425_v19 = vpop.f32.mrb[28].mxu0  ;;  %v8236_v0 = vpop.f32.mrb[35].mxu1 }
 0x241   : > { %v4460_v60 = vsel %vm8805_vm13, %v4403_v25, 0.0  ;;  %v8163_v63 = vadd.s32 18, %v8006_v46  ;;  %vm8810_vm4 = vmmov %vm8794_vm0  ;;  %v5459_v58 = vadd.f32 %v5422_v41, %v8051_v37  ;;  %vm8173_vm1 = vcmp.lt.s32.totalorder %v4267_v53, 16 }
 0x242   : > { %v4576_v9 = vadd.f32 %v4575_v27, %v4574_v55  ;;  %v4461_v8 = vadd.f32 %v4460_v60, %v4459_v14  ;;  %3651 = vst.msk [vmem:[%s5931_s22 + $0xd0] sm:$0xff] %vm8810_vm4, %v5457_v57  ;;  %v8178_v23 = vadd.s32 18, %v8029_v45  ;;  %vm8814_vm6 = vmmov %vm8794_vm0  ;;  %v4523_v43 = vmul.f32 %v5455_v10, %v4405_v40  ;;  %v3557_v14 = vpop.f32.mrb[29].mxu0 }
 0x243   : > { %v4462_v35 = vsel %vm8814_vm6, %v4404_v13, 0.0  ;;  %vm8815_vm10 = vmmov %vm8794_vm0  ;;  %v4406_v37 = vsel %vm8075_vm2, %v5458_v5, 0.0  ;;  %v5460_v22 = vadd.f32 %v3544_v16, %v8065_v12  ;;  %vm8817_vm13 = vnez %v8816_v48  ;;  %v5426_v44 = vpop.f32.mrb[30].mxu0 }
 0x244   : > { %3649 = vst.msk [vmem:[%s5931_s22 + $0xc0] sm:$0xff] %vm8815_vm10, %v5458_v5  ;;  %v8820_v53 = vsel %vm8817_vm13, %v8818_v34, %v8819_v1  ;;  %vm4129_vm0 = vcmp.ne.s32.totalorder %v8029_v45, 0  ;;  %v4463_v10 = vadd.f32 %v4462_v35, %v4461_v8  ;;  %v4578_v21 = vadd.f32 %v4577_v59, %v4576_v9  ;;  %vm8823_vm8 = vmmov %vm8810_vm4 }
 0x245   : > { %vm8191_vm5 = vcmp.lt.s32.totalorder %v8820_v53, 16  ;;  %v4524_v28 = vmul.f32 %v5458_v5, %v4406_v37  ;;  %3652 = vst.msk [vmem:[%s5931_s22 + $0xd8] sm:$0xff] %vm8823_vm8, %v5459_v58  ;;  %vm4127_vm2 = vcmp.ne.s32.totalorder %v8141_v18, 0  ;;  %vm8824_vm6 = vmmov %vm8810_vm4  ;;  %v4407_v15 = vsel %vm8093_vm3, %v5460_v22, 0.0 }
 0x246   : > { %v4579_v12 = vsel %vm8824_vm6, %v4522_v39, 0.0  ;;  %vm8825_vm10 = vmmov %vm8810_vm4  ;;  %vm8216_vm8 = vcmp.lt.s32.totalorder %v4269_v47, 16  ;;  %v4408_v33 = vsel %vm8108_vm12, %v5457_v57, 0.0  ;;  %vm8831_vm3 = vcmp.lt.s32.totalorder %v8006_v46, 0 }
 0x247   : > { %v4464_v52 = vsel %vm8825_vm10, %v4405_v40, 0.0  ;;  %vm8826_vm13 = vmmov %vm8810_vm4  ;;  %v4580_v51 = vadd.f32 %v4579_v12, %v4578_v21  ;;  %v4581_v61 = vsel %vm8824_vm6, %v4523_v43, 0.0  ;;  %v4525_v20 = vmul.f32 %v5460_v22, %v4407_v15 }
 0x248   : > { %v4466_v25 = vsel %vm8826_vm13, %v4406_v37, 0.0  ;;  %vm8827_vm9 = vmmov %vm8810_vm4  ;;  %v4465_v13 = vadd.f32 %v4464_v52, %v4463_v10  ;;  %vm4163_vm4 = vcmp.lt.s32.totalorder %v8141_v18, 0  ;;  %v4409_v7 = vsel %vm8132_vm7, %v5459_v58, 0.0 }
 0x249   : > { %3650 = vst.msk [vmem:[%s5931_s22 + $0xc8] sm:$0xff] %vm8827_vm9, %v5460_v22  ;;  %vm8228_vm9 = vmand %vm8831_vm3, %vm4126_vm15  ;;  %v4582_v60 = vadd.f32 %v4581_v61, %v4580_v51  ;;  %v5461_v26 = vadd.f32 %v5425_v19, %v8115_v29  ;;  %v4526_v55 = vmul.f32 %v5457_v57, %v4408_v33  ;;  %v5462_v11 = vadd.f32 %v3557_v14, %v8125_v30  ;;  %v3560_v29 = vpop.f32.mrb[31].mxu0 }
 0x24a   : > { %vm8834_vm10 = vmmov %vm8824_vm6  ;;  %v4467_v27 = vadd.f32 %v4466_v25, %v4465_v13  ;;  %v4270_v39 = vsel %vm8228_vm9, %v8163_v63, %v8006_v46  ;;  %v5463_v49 = vadd.f32 %v5426_v44, %v8138_v32  ;;  %v4235_v57 = vadd.s32 18, %v8141_v18  ;;  %v5429_v53 = vpop.f32.mrb[32].mxu0 }
 0x24b   : > { %v4583_v56 = vsel %vm8834_vm10, %v4524_v28, 0.0  ;;  %vm8835_vm13 = vmmov %vm8824_vm6  ;;  %v4527_v30 = vmul.f32 %v5459_v58, %v4409_v7  ;;  %v4410_v9 = vsel %vm8156_vm14, %v5462_v11, 0.0  ;;  %v5464_v46 = vadd.f32 %v3560_v29, %v8146_v3  ;;  %v3573_v12 = vpop.f32.mrb[33].mxu0 }
 0x24c   : > { %v4468_v47 = vsel %vm8835_vm13, %v4407_v15, 0.0  ;;  %vm8836_vm12 = vmmov %vm8824_vm6  ;;  %v4584_v59 = vadd.f32 %v4583_v56, %v4582_v60  ;;  %vm8262_vm9 = vcmp.lt.s32.totalorder %v4272_v54, 16  ;;  %v4528_v3 = vmul.f32 %v5462_v11, %v4410_v9  ;;  %v5430_v15 = vpop.f32.mrb[34].mxu0 }
 0x24d   : > { %v4585_v40 = vsel %vm8836_vm12, %v4525_v20, 0.0  ;;  %v4469_v5 = vadd.f32 %v4468_v47, %v4467_v27  ;;  %vm8837_vm15 = vmmov %vm8824_vm6  ;;  %vm8276_vm10 = vcmp.lt.s32.totalorder %v4270_v39, 16  ;;  %v4411_v58 = vsel %vm8173_vm1, %v5464_v46, 0.0 }
 0x24e   : > { %3655 = vst.msk [vmem:[%s5931_s22 + $0xf0] sm:$0xff] %vm8837_vm15, %v5461_v26  ;;  %vm8838_vm7 = vmmov %vm8824_vm6  ;;  %v4586_v8 = vadd.f32 %v4585_v40, %v4584_v59  ;;  %v4412_v35 = vsel %vm8191_vm5, %v5461_v26, 0.0  ;;  %v4529_v1 = vmul.f32 %v5464_v46, %v4411_v58  ;;  %v4413_v21 = vsel %vm8216_vm8, %v5463_v49, 0.0 }
 0x24f   : > { %v4470_v41 = vsel %vm8838_vm7, %v4408_v33, 0.0  ;;  %vm8839_vm3 = vmmov %vm8824_vm6  ;;  %v5465_v28 = vadd.f32 %v5429_v53, %v8199_v6  ;;  %v4530_v52 = vmul.f32 %v5461_v26, %v4412_v35  ;;  %v5466_v25 = vadd.f32 %v3573_v12, %v8209_v38  ;;  %v3576_v6 = vpop.f32.mrb[35].mxu0 }
 0x250   : > { %3653 = vst.msk [vmem:[%s5931_s22 + $0xe0] sm:$0xff] %vm8839_vm3, %v5462_v11  ;;  %vm8270_vm6 = vmand %vm4163_vm4, %vm4127_vm2  ;;  %v4471_v31 = vadd.f32 %v4470_v41, %v4469_v5  ;;  %vm8851_vm2 = vcmp.lt.s32.totalorder %v8029_v45, 0  ;;  %v5467_v4 = vadd.f32 %v5430_v15, %v8222_v42  ;;  %v4531_v61 = vmul.f32 %v5463_v49, %v4413_v21 }
 0x251   : > { %vm8844_vm14 = vmmov %vm8839_vm3  ;;  %v4271_v22 = vsel %vm8270_vm6, %v4235_v57, %v8141_v18  ;;  %v4414_v38 = vsel %vm8276_vm10, %v5466_v25, 0.0  ;;  %v5468_v56 = vadd.f32 %v3576_v6, %v8236_v0 }
 0x252   : > { %3656 = vst.msk [vmem:[%s5931_s22 + $0xf8] sm:$0xff] %vm8844_vm14, %v5463_v49  ;;  %vm8847_vm11 = vmmov %vm8839_vm3  ;;  %vm4307_vm8 = vcmp.lt.s32.totalorder %v4271_v22, 16  ;;  %v4532_v47 = vmul.f32 %v5466_v25, %v4414_v38  ;;  %v4418_v22 = vld [vmem:[%s8356_s3] sm:$0x1] }
 0x253   : > { %v4587_v24 = vsel %vm8847_vm11, %v4526_v55, 0.0  ;;  %vm8848_vm13 = vmmov %vm8839_vm3  ;;  %v4415_v27 = vsel %vm4307_vm8, %v5468_v56, 0.0 }
 0x254   : > { %v4472_v2 = vsel %vm8848_vm13, %v4409_v7, 0.0  ;;  %vm8849_vm12 = vmmov %vm8839_vm3  ;;  %v4588_v16 = vadd.f32 %v4587_v24, %v4586_v8  ;;  %v4416_v7 = vsel %vm8262_vm9, %v5465_v28, 0.0  ;;  %v4533_v40 = vmul.f32 %v5468_v56, %v4415_v27 }
 0x255   : > { %v4474_v54 = vsel %vm8849_vm12, %v4410_v9, 0.0  ;;  %vm8850_vm15 = vmmov %vm8839_vm3  ;;  %v4473_v43 = vadd.f32 %v4472_v2, %v4471_v31  ;;  %v4534_v59 = vmul.f32 %v5465_v28, %v4416_v7 }
 0x256   : > { %3654 = vst.msk [vmem:[%s5931_s22 + $0xe8] sm:$0xff] %vm8850_vm15, %v5464_v46  ;;  %vm8293_vm4 = vmand %vm8851_vm2, %vm4129_vm0 }
 0x257   : > { %vm8854_vm7 = vmmov %vm8839_vm3  ;;  %v4475_v36 = vadd.f32 %v4474_v54, %v4473_v43  ;;  %v4273_v51 = vsel %vm8293_vm4, %v8178_v23, %v8029_v45 }
 0x258   : > { %v4589_v62 = vsel %vm8854_vm7, %v4527_v30, 0.0  ;;  %vm8855_vm1 = vmmov %vm8839_vm3  ;;  %vm4309_vm13 = vcmp.lt.s32.totalorder %v4273_v51, 16 }
 0x259   : > { %v4591_v48 = vsel %vm8855_vm1, %v4528_v3, 0.0  ;;  %vm8856_vm3 = vmmov %vm8855_vm1  ;;  %v4590_v10 = vadd.f32 %v4589_v62, %v4588_v16  ;;  %v4417_v39 = vsel %vm4309_vm13, %v5467_v4, 0.0 }
 0x25a   : > { %v4476_v34 = vsel %vm8856_vm3, %v4411_v58, 0.0  ;;  %vm8857_vm5 = vmmov %vm8855_vm1  ;;  %v4535_v41 = vmul.f32 %v5467_v4, %v4417_v39 }
 0x25b   : > { %v4593_v18 = vsel %vm8857_vm5, %v4529_v1, 0.0  ;;  %v4592_v33 = vadd.f32 %v4591_v48, %v4590_v10  ;;  %v4477_v13 = vadd.f32 %v4476_v34, %v4475_v36  ;;  %vm8858_vm0 = vmmov %vm8855_vm1  ;;  %v4499_v34 = vld [vmem:[%s8356_s3 + $0x1] sm:$0x1] }
 0x25c   : > { %3659 = vst.msk [vmem:[%s5931_s22 + $0x110] sm:$0xff] %vm8858_vm0, %v5465_v28  ;;  %vm8859_vm6 = vmmov %vm8858_vm0  ;;  %v4488_v32 = vsel %vm8858_vm0, %v4417_v39, 0.0 }
 0x25d   : > { %v4478_v17 = vsel %vm8859_vm6, %v4412_v35, 0.0  ;;  %vm8860_vm14 = vmmov %vm8858_vm0  ;;  %v4594_v23 = vadd.f32 %v4593_v18, %v4592_v33  ;;  %vm4497_vm6 = vcmask 57344  }
 0x25e   : > { %3657 = vst.msk [vmem:[%s5931_s22 + $0x100] sm:$0xff] %vm8860_vm14, %v5466_v25  ;;  %v4479_v45 = vadd.f32 %v4478_v17, %v4477_v13  ;;  %vm8861_vm11 = vmmov %vm8858_vm0 }
 0x25f   : > { %3660 = vst.msk [vmem:[%s5931_s22 + $0x118] sm:$0xff] %vm8861_vm11, %v5467_v4  ;;  %vm8862_vm12 = vmmov %vm8858_vm0 }
 0x260   : > { %v4595_v42 = vsel %vm8862_vm12, %v4530_v52, 0.0  ;;  %vm8863_vm15 = vmmov %vm8858_vm0 }
 0x261   : > { %v4480_v20 = vsel %vm8863_vm15, %v4413_v21, 0.0  ;;  %vm8864_vm2 = vmmov %vm8858_vm0  ;;  %v4596_v60 = vadd.f32 %v4595_v42, %v4594_v23 }
 0x262   : > { %v4482_v19 = vsel %vm8864_vm2, %v4414_v38, 0.0  ;;  %vm8865_vm4 = vmmov %vm8858_vm0  ;;  %v4481_v0 = vadd.f32 %v4480_v20, %v4479_v45 }
 0x263   : > { %3658 = vst.msk [vmem:[%s5931_s22 + $0x108] sm:$0xff] %vm8865_vm4, %v5468_v56  ;;  %vm8866_vm10 = vmmov %vm8858_vm0 }
 0x264   : > { %v4597_v26 = vsel %vm8866_vm10, %v4531_v61, 0.0  ;;  %vm8867_vm7 = vmmov %vm8858_vm0  ;;  %v4483_v11 = vadd.f32 %v4482_v19, %v4481_v0 }
 0x265   : > { %v4599_v14 = vsel %vm8867_vm7, %v4532_v47, 0.0  ;;  %vm8868_vm1 = vmmov %vm8858_vm0  ;;  %v4598_v44 = vadd.f32 %v4597_v26, %v4596_v60 }
 0x266   : > { %v4484_v55 = vsel %vm8868_vm1, %v4415_v27, 0.0  ;;  %vm8869_vm3 = vmmov %vm8858_vm0 }
 0x267   : > { %v4601_v5 = vsel %vm8869_vm3, %v4533_v40, 0.0  ;;  %v4600_v49 = vadd.f32 %v4599_v14, %v4598_v44  ;;  %v4485_v29 = vadd.f32 %v4484_v55, %v4483_v11  ;;  %vm8870_vm5 = vmmov %vm8858_vm0 }
 0x268   : > { %v4486_v57 = vsel %vm8870_vm5, %v4416_v7, 0.0  ;;  %vm8871_vm9 = vmmov %vm8858_vm0 }
 0x269   : > { %v4487_v30 = vadd.f32 %v4486_v57, %v4485_v29  ;;  %v4602_v9 = vadd.f32 %v4601_v5, %v4600_v49  ;;  %v4603_v46 = vsel %vm8871_vm9, %v4534_v59, 0.0  ;;  %vm8872_vm8 = vmmov %vm8858_vm0 }
 0x26a   : > { %v4605_v8 = vsel %vm8872_vm8, %v4535_v41, 0.0 }
 0x26b   : > { %v4489_v63 = vadd.f32 %v4488_v32, %v4487_v30  ;;  %v4604_v31 = vadd.f32 %v4603_v46, %v4602_v9 }
 0x26d   : > { %v4490_v3 = vrot.slane %v4489_v63, 4  ;;  %v4606_v50 = vadd.f32 %v4605_v8, %v4604_v31 }
 0x26f   : > { %v4491_v24 = vadd.f32 %v4490_v3, %v4489_v63  ;;  %v4607_v2 = vrot.slane %v4606_v50, 4 }
 0x271   : > { %v4492_v54 = vrot.slane %v4491_v24, 2  ;;  %v4608_v58 = vadd.f32 %v4607_v2, %v4606_v50 }
 0x273   : > { %v4493_v16 = vadd.f32 %v4492_v54, %v4491_v24  ;;  %v4609_v35 = vrot.slane %v4608_v58, 2 }
 0x275   : > { %v4494_v43 = vrot.slane %v4493_v16, 1  ;;  %v4610_v37 = vadd.f32 %v4609_v35, %v4608_v58 }
 0x277   : > { %v4495_v62 = vadd.f32 %v4494_v43, %v4493_v16  ;;  %v4611_v48 = vrot.slane %v4610_v37, 1 }
 0x279   : > { %v4496_v1 = vadd.f32 %v4495_v62, %v4418_v22  ;;  %v4612_v53 = vadd.f32 %v4611_v48, %v4610_v37 }
 0x27b   : > { %4498 = vst.msk [vmem:[%s8356_s3] sm:$0x1] %vm4497_vm6, %v4496_v1  ;;  %v4613_v36 = vadd.f32 %v4612_v53, %v4499_v34 }
 0x27d   : > { %4614 = vst.msk [vmem:[%s8356_s3 + $0x1] sm:$0x1] %vm4497_vm6, %v4613_v36 }
 0x27e PF: > { %s14_s12 = sadd.s32 1, %s5892_s12  }
 0x27f   : > { %p11_p5 = scmp.ge.s32.totalorder %s14_s12, 4  }
 0x281   :  { %13 = sbr.rel (!%p11_p5) target bundleno = 1 (0x1), region = 78 }

</bundles_post_ra>
